<compile_context>
chip_gen: v7x
topology: tpu7x:2x2x1
jax: 0.10.0
libtpu: 0.0.40
codegen_flags: <defaults>
</compile_context>

<pallas_src>
import functools

import jax
import jax.numpy as jnp
from jax.experimental import pallas as pl
from jax.experimental.pallas import tpu as pltpu


def _projection_head_kernel(
    x_ref,      # (TB, E)     f32
    wcat_ref,   # (E, H + P)  bf16  = [W1 | Ws]
    bcat_ref,   # (1, H + P)  f32   = [b1 | bs]
    w2_ref,     # (H, P)      bf16
    b2_ref,     # (1, P)      f32
    gamma_ref,  # (1, P)      f32
    beta_ref,   # (1, P)      f32
    o_ref,      # (TB, P)
    *,
    eps: float,
    hidden_dim: int,
    approx_gelu: bool,
):
    # bf16 operands on the MXU, f32 accumulation.
    xb = x_ref[...].astype(jnp.bfloat16)

    # --- Fused Linear(E -> H) and skip Linear(E -> P) in one MXU pass ---
    hs = jnp.dot(xb, wcat_ref[...], preferred_element_type=jnp.float32)
    hs = hs + bcat_ref[...]                       # f32 bias add
    h = hs[:, :hidden_dim]                        # (TB, H) pre-activation
    s = hs[:, hidden_dim:]                        # (TB, P) skip branch

    # --- GELU (exact erf form == torch.nn.GELU default) ---
    if approx_gelu:
        h = jax.nn.gelu(h, approximate=True)      # tanh form -> EUP slot
    else:
        h = 0.5 * h * (1.0 + jax.lax.erf(h * 0.7071067811865476))

    # --- Linear(H -> P), dominant matmul (K = 2048) ---
    p = jnp.dot(h.astype(jnp.bfloat16), w2_ref[...],
                preferred_element_type=jnp.float32) + b2_ref[...]

    # --- Dropout: identity at inference ---
    y = p + s

    # --- LayerNorm over last dim (biased variance, like torch.nn.LayerNorm) ---
    mean = jnp.mean(y, axis=-1, keepdims=True)
    yc = y - mean
    var = jnp.mean(yc * yc, axis=-1, keepdims=True)
    inv_std = jax.lax.rsqrt(var + eps)
    out = yc * inv_std * gamma_ref[...] + beta_ref[...]

    o_ref[...] = out.astype(o_ref.dtype)


def projection_head_forward(x, packed, *, eps=1e-5, block_b=256, approx_gelu=False):
    """x: (B, E) float32.  packed: dict from pack_params() (kernel-ready weights)."""
    B, E = x.shape
    H, P = packed["w2"].shape
    assert packed["w_cat"].shape == (E, H + P)
    # The in-register [h | skip] split is lane-tile aligned only if H, P are
    # multiples of 128 (H=2048, P=256 in this module).
    assert H % 128 == 0 and P % 128 == 0, "fused [W1|Ws] split needs H, P % 128 == 0"

    # Batch tile: for small batches use one full-batch step; otherwise a tile
    # of at least 128 rows (multiple of 8) to fill MXU rows and amortize the
    # per-grid-step overhead.  Default 256 keeps the tile comfortably inside
    # v7x's 64 MiB VMEM while still giving >=2 grid steps for larger batches
    # (so the "parallel" axis can shard across v7x's two TensorCores).
    if B <= block_b:
        tb = B
    else:
        tb = max(128, (block_b // 8) * 8)
        tb = min(tb, B)
    grid = (pl.cdiv(B, tb),)

    # Constant-index (VMEM-resident) operands: single-buffered, fetched once.
    def resident(shape):
        return pl.BlockSpec(shape, lambda i: (0, 0),
                            pipeline_mode=pl.Buffered(buffer_count=1))

    itemsize = lambda a: int(a.size) * a.dtype.itemsize
    cost = pl.CostEstimate(
        flops=2 * B * (E * (H + P) + H * P),
        transcendentals=B * H,  # one erf per hidden activation
        bytes_accessed=itemsize(x) + B * P * x.dtype.itemsize
        + sum(itemsize(v) for v in packed.values()),
    )

    return pl.pallas_call(
        functools.partial(_projection_head_kernel, eps=eps, hidden_dim=H,
                          approx_gelu=approx_gelu),
        out_shape=jax.ShapeDtypeStruct((B, P), x.dtype),
        grid=grid,
        in_specs=[
            pl.BlockSpec((tb, E), lambda i: (i, 0)),   # x: tiled along batch
            resident((E, H + P)),                      # w_cat (bf16, resident)
            resident((1, H + P)),                      # b_cat
            resident((H, P)),                          # w2   (bf16, resident)
            resident((1, P)),                          # b2
            resident((1, P)),                          # gamma
            resident((1, P)),                          # beta
        ],
        out_specs=pl.BlockSpec((tb, P), lambda i: (i, 0)),
        compiler_params=pltpu.CompilerParams(
            dimension_semantics=("parallel",),
            vmem_limit_bytes=32 * 1024 * 1024,
        ),
        cost_estimate=cost,
    )(x, packed["w_cat"], packed["b_cat"], packed["w2"], packed["b2"],
      packed["gamma"], packed["beta"])


def init_params(key, embedding_dim, projection_dim=256, hidden_dim=2048):
    """Deterministic synthetic parameter init (shapes match the nn.Module)."""
    k1, k2, k3 = jax.random.split(key, 3)
    scale1 = 1.0 / jnp.sqrt(embedding_dim)
    scale2 = 1.0 / jnp.sqrt(hidden_dim)
    return {
        # nn.Linear stores weight as (out, in); we keep (in, out) for row-major matmul.
        "w1": jax.random.normal(k1, (embedding_dim, hidden_dim), jnp.float32) * scale1,
        "b1": jnp.zeros((1, hidden_dim), jnp.float32),
        "w2": jax.random.normal(k2, (hidden_dim, projection_dim), jnp.float32) * scale2,
        "b2": jnp.zeros((1, projection_dim), jnp.float32),
        "ws": jax.random.normal(k3, (embedding_dim, projection_dim), jnp.float32) * scale1,
        "bs": jnp.zeros((1, projection_dim), jnp.float32),
        "gamma": jnp.ones((1, projection_dim), jnp.float32),
        "beta": jnp.zeros((1, projection_dim), jnp.float32),
    }


def pack_params(params):
    """One-time kernel-ready packing: fuse [W1|Ws]/[b1|bs], bf16 matmul weights."""
    return {
        "w_cat": jnp.concatenate([params["w1"], params["ws"]], axis=1)
                    .astype(jnp.bfloat16),                      # (E, H+P)
        "b_cat": jnp.concatenate([params["b1"], params["bs"]], axis=1)
                    .astype(jnp.float32),                       # (1, H+P)
        "w2": params["w2"].astype(jnp.bfloat16),                # (H, P)
        "b2": params["b2"].astype(jnp.float32),
        "gamma": params["gamma"].astype(jnp.float32),
        "beta": params["beta"].astype(jnp.float32),
    }


def _reference_forward(x, params, eps=1e-5):
    """Pure-JAX f32 reference for correctness check (exact module semantics)."""
    h = x @ params["w1"] + params["b1"]
    h = 0.5 * h * (1.0 + jax.lax.erf(h / jnp.sqrt(2.0)))
    p = h @ params["w2"] + params["b2"]
    s = x @ params["ws"] + params["bs"]
    y = p + s
    mean = jnp.mean(y, axis=-1, keepdims=True)
    var = jnp.mean((y - mean) ** 2, axis=-1, keepdims=True)
    return (y - mean) / jnp.sqrt(var + eps) * params["gamma"] + params["beta"]


if __name__ == "__main__":
    E = 32                    # small embedding dim
    P, H = 256, 2048          # projection_dim, hidden (hardcoded in the module)

    key = jax.random.PRNGKey(0)
    kx, kp, kx2 = jax.random.split(key, 3)
    params = init_params(kp, embedding_dim=E, projection_dim=P, hidden_dim=H)
    packed = pack_params(params)

    # Small batch: single full-batch grid step.
    B = 64
    x = jax.random.normal(kx, (B, E), jnp.float32)
    out = jax.block_until_ready(projection_head_forward(x, packed))
    ref = _reference_forward(x, params)
    assert out.shape == (B, P)
    # bf16 MXU operands -> loosened tolerance (LayerNorm keeps error ~1e-2).
    assert jnp.allclose(out, ref, atol=5e-2, rtol=5e-2)

    # Larger batch: exercises the multi-step pipelined grid (tb=256, 2 steps).
    B2 = 512
    x2 = jax.random.normal(kx2, (B2, E), jnp.float32)
    out2 = jax.block_until_ready(projection_head_forward(x2, packed))
    ref2 = _reference_forward(x2, params)
    assert out2.shape == (B2, P)
    assert jnp.allclose(out2, ref2, atol=5e-2, rtol=5e-2)

    print("KERNEL_OK")
</pallas_src>

<mosaic_0001>
module attributes {stable_mosaic.version = 11 : i64} {
  func.func @_projection_head_kernel(%arg0: i32, %arg1: memref<64x32xf32, #tpu.memory_space<vmem>>, %arg2: memref<32x2304xbf16, #tpu.memory_space<vmem>>, %arg3: memref<1x2304xf32, #tpu.memory_space<vmem>>, %arg4: memref<2048x256xbf16, #tpu.memory_space<vmem>>, %arg5: memref<1x256xf32, #tpu.memory_space<vmem>>, %arg6: memref<1x256xf32, #tpu.memory_space<vmem>>, %arg7: memref<1x256xf32, #tpu.memory_space<vmem>>, %arg8: memref<64x256xf32, #tpu.memory_space<vmem>>) attributes {dimension_semantics = [#tpu.dimension_semantics<parallel>], iteration_bounds = array<i64: 1>, scalar_prefetch = 0 : i64, scratch_operands = 0 : i64, tpu.core_type = #tpu.core_type<tc>, window_params = [{transform_indices = @transform_0, window_bounds = array<i64: 64, 32>}, {pipeline_mode = #tpu.pipeline_mode<synchronous>, transform_indices = @transform_1, window_bounds = array<i64: 32, 2304>}, {pipeline_mode = #tpu.pipeline_mode<synchronous>, transform_indices = @transform_2, window_bounds = array<i64: 1, 2304>}, {pipeline_mode = #tpu.pipeline_mode<synchronous>, transform_indices = @transform_3, window_bounds = array<i64: 2048, 256>}, {pipeline_mode = #tpu.pipeline_mode<synchronous>, transform_indices = @transform_4, window_bounds = array<i64: 1, 256>}, {pipeline_mode = #tpu.pipeline_mode<synchronous>, transform_indices = @transform_5, window_bounds = array<i64: 1, 256>}, {pipeline_mode = #tpu.pipeline_mode<synchronous>, transform_indices = @transform_6, window_bounds = array<i64: 1, 256>}, {transform_indices = @transform_7, window_bounds = array<i64: 64, 256>}]} {
    %c0 = arith.constant 0 : index
    %c0_0 = arith.constant 0 : index
    %0 = vector.load %arg1[%c0, %c0_0] : memref<64x32xf32, #tpu.memory_space<vmem>>, vector<64x32xf32>
    %1 = arith.truncf %0 : vector<64x32xf32> to vector<64x32xbf16>
    %c0_1 = arith.constant 0 : index
    %c0_2 = arith.constant 0 : index
    %2 = vector.load %arg2[%c0_1, %c0_2] : memref<32x2304xbf16, #tpu.memory_space<vmem>>, vector<32x2304xbf16>
    %cst = arith.constant dense<0.000000e+00> : vector<64x2304xf32>
    %3 = tpu.matmul %1, %2, %cst {dimension_numbers = #tpu.dot_dimension_numbers<[1], [0], [0], [1], [0, 0, 1, 1], [], []>} : vector<64x32xbf16>, vector<32x2304xbf16>, vector<64x2304xf32> -> vector<64x2304xf32>
    %c0_3 = arith.constant 0 : index
    %c0_4 = arith.constant 0 : index
    %4 = vector.load %arg3[%c0_3, %c0_4] : memref<1x2304xf32, #tpu.memory_space<vmem>>, vector<1x2304xf32>
    %5 = vector.broadcast %4 : vector<1x2304xf32> to vector<64x2304xf32>
    %6 = arith.addf %3, %5 : vector<64x2304xf32>
    %7 = vector.extract_strided_slice %6 {offsets = [0, 0], sizes = [64, 2048], strides = [1, 1]} : vector<64x2304xf32> to vector<64x2048xf32>
    %8 = vector.extract_strided_slice %6 {offsets = [0, 2048], sizes = [64, 256], strides = [1, 1]} : vector<64x2304xf32> to vector<64x256xf32>
    %cst_5 = arith.constant 5.000000e-01 : f32
    %9 = vector.broadcast %cst_5 : f32 to vector<64x2048xf32>
    %10 = arith.mulf %9, %7 : vector<64x2048xf32>
    %cst_6 = arith.constant 0.707106769 : f32
    %11 = vector.broadcast %cst_6 : f32 to vector<64x2048xf32>
    %12 = arith.mulf %7, %11 : vector<64x2048xf32>
    %13 = math.erf %12 : vector<64x2048xf32>
    %cst_7 = arith.constant 1.000000e+00 : f32
    %14 = vector.broadcast %cst_7 : f32 to vector<64x2048xf32>
    %15 = arith.addf %14, %13 : vector<64x2048xf32>
    %16 = arith.mulf %10, %15 : vector<64x2048xf32>
    %17 = arith.truncf %16 : vector<64x2048xf32> to vector<64x2048xbf16>
    %c0_8 = arith.constant 0 : index
    %c0_9 = arith.constant 0 : index
    %18 = vector.load %arg4[%c0_8, %c0_9] : memref<2048x256xbf16, #tpu.memory_space<vmem>>, vector<2048x256xbf16>
    %cst_10 = arith.constant dense<0.000000e+00> : vector<64x256xf32>
    %19 = tpu.matmul %17, %18, %cst_10 {dimension_numbers = #tpu.dot_dimension_numbers<[1], [0], [0], [1], [0, 0, 1, 1], [], []>} : vector<64x2048xbf16>, vector<2048x256xbf16>, vector<64x256xf32> -> vector<64x256xf32>
    %c0_11 = arith.constant 0 : index
    %c0_12 = arith.constant 0 : index
    %20 = vector.load %arg5[%c0_11, %c0_12] : memref<1x256xf32, #tpu.memory_space<vmem>>, vector<1x256xf32>
    %21 = vector.broadcast %20 : vector<1x256xf32> to vector<64x256xf32>
    %22 = arith.addf %19, %21 : vector<64x256xf32>
    %23 = arith.addf %22, %8 : vector<64x256xf32>
    %cst_13 = arith.constant dense<0.000000e+00> : vector<64xf32>
    %24 = vector.multi_reduction <add>, %23, %cst_13 [1] : vector<64x256xf32> to vector<64xf32>
    %25 = vector.shape_cast %24 : vector<64xf32> to vector<64x1xf32>
    %cst_14 = arith.constant 2.560000e+02 : f32
    %26 = vector.broadcast %cst_14 : f32 to vector<64x1xf32>
    %27 = arith.divf %25, %26 : vector<64x1xf32>
    %28 = vector.broadcast %27 : vector<64x1xf32> to vector<64x256xf32>
    %29 = arith.subf %23, %28 : vector<64x256xf32>
    %30 = arith.mulf %29, %29 : vector<64x256xf32>
    %cst_15 = arith.constant dense<0.000000e+00> : vector<64xf32>
    %31 = vector.multi_reduction <add>, %30, %cst_15 [1] : vector<64x256xf32> to vector<64xf32>
    %32 = vector.shape_cast %31 : vector<64xf32> to vector<64x1xf32>
    %cst_16 = arith.constant 2.560000e+02 : f32
    %33 = vector.broadcast %cst_16 : f32 to vector<64x1xf32>
    %34 = arith.divf %32, %33 : vector<64x1xf32>
    %cst_17 = arith.constant 9.99999974E-6 : f32
    %35 = vector.broadcast %cst_17 : f32 to vector<64x1xf32>
    %36 = arith.addf %34, %35 : vector<64x1xf32>
    %37 = math.rsqrt %36 : vector<64x1xf32>
    %38 = vector.broadcast %37 : vector<64x1xf32> to vector<64x256xf32>
    %39 = arith.mulf %29, %38 : vector<64x256xf32>
    %c0_18 = arith.constant 0 : index
    %c0_19 = arith.constant 0 : index
    %40 = vector.load %arg6[%c0_18, %c0_19] : memref<1x256xf32, #tpu.memory_space<vmem>>, vector<1x256xf32>
    %41 = vector.broadcast %40 : vector<1x256xf32> to vector<64x256xf32>
    %42 = arith.mulf %39, %41 : vector<64x256xf32>
    %c0_20 = arith.constant 0 : index
    %c0_21 = arith.constant 0 : index
    %43 = vector.load %arg7[%c0_20, %c0_21] : memref<1x256xf32, #tpu.memory_space<vmem>>, vector<1x256xf32>
    %44 = vector.broadcast %43 : vector<1x256xf32> to vector<64x256xf32>
    %45 = arith.addf %42, %44 : vector<64x256xf32>
    %c0_22 = arith.constant 0 : index
    %c0_23 = arith.constant 0 : index
    %46 = vector.load %arg8[%c0_22, %c0_23] : memref<64x256xf32, #tpu.memory_space<vmem>>, vector<64x256xf32>
    tpu.vector_store %arg8[%c0_22, %c0_23], %45 {strides = array<i32>} : memref<64x256xf32, #tpu.memory_space<vmem>>, vector<64x256xf32>,
    return
  }
  func.func @transform_0(%arg0: i32) -> (i32, i32) {
    %c0_i32 = arith.constant 0 : i32
    %c0_i32_0 = arith.constant 0 : i32
    return %arg0, %c0_i32 : i32, i32
  }
  func.func @transform_1(%arg0: i32) -> (i32, i32) {
    %c0_i32 = arith.constant 0 : i32
    %c0_i32_0 = arith.constant 0 : i32
    %c0_i32_1 = arith.constant 0 : i32
    return %c0_i32, %c0_i32_0 : i32, i32
  }
  func.func @transform_2(%arg0: i32) -> (i32, i32) {
    %c0_i32 = arith.constant 0 : i32
    %c0_i32_0 = arith.constant 0 : i32
    %c0_i32_1 = arith.constant 0 : i32
    return %c0_i32, %c0_i32_0 : i32, i32
  }
  func.func @transform_3(%arg0: i32) -> (i32, i32) {
    %c0_i32 = arith.constant 0 : i32
    %c0_i32_0 = arith.constant 0 : i32
    %c0_i32_1 = arith.constant 0 : i32
    return %c0_i32, %c0_i32_0 : i32, i32
  }
  func.func @transform_4(%arg0: i32) -> (i32, i32) {
    %c0_i32 = arith.constant 0 : i32
    %c0_i32_0 = arith.constant 0 : i32
    %c0_i32_1 = arith.constant 0 : i32
    return %c0_i32, %c0_i32_0 : i32, i32
  }
  func.func @transform_5(%arg0: i32) -> (i32, i32) {
    %c0_i32 = arith.constant 0 : i32
    %c0_i32_0 = arith.constant 0 : i32
    %c0_i32_1 = arith.constant 0 : i32
    return %c0_i32, %c0_i32_0 : i32, i32
  }
  func.func @transform_6(%arg0: i32) -> (i32, i32) {
    %c0_i32 = arith.constant 0 : i32
    %c0_i32_0 = arith.constant 0 : i32
    %c0_i32_1 = arith.constant 0 : i32
    return %c0_i32, %c0_i32_0 : i32, i32
  }
  func.func @transform_7(%arg0: i32) -> (i32, i32) {
    %c0_i32 = arith.constant 0 : i32
    %c0_i32_0 = arith.constant 0 : i32
    return %arg0, %c0_i32 : i32, i32
  }
}

</mosaic_0001>

<bundles_post_ra>
// kernel: tpu_custom_call.1
= control target key start
LH: loop header
LB: loop body
LE: loop exit
PB: predicated region body
PF: predicated region fallthrough
CT: control target
= control target key end

     0   :  { %12 = vsyncpa [#allocation3], 0  ;;  %s7311_s0 = inlined_call_operand.vmem [shape: f32[64,32], index: 0, kind: input, shape index: {}]   ;;  %s7312_s1 = inlined_call_operand.hbm [shape: bf16[32,2304], index: 1, kind: input, shape index: {}]   ;;  %s7313_s2 = inlined_call_operand.vmem [shape: f32[1,2304], index: 2, kind: input, shape index: {}]   ;;  %s7314_s3 = inlined_call_operand.hbm [shape: bf16[2048,256], index: 3, kind: input, shape index: {}]   ;;  %s7315_s4 = inlined_call_operand.vmem [shape: f32[1,256], index: 4, kind: input, shape index: {}]   ;;  %s7316_s5 = inlined_call_operand.vmem [shape: f32[1,256], index: 5, kind: input, shape index: {}]   ;;  %s7317_s6 = inlined_call_operand.vmem [shape: f32[1,256], index: 6, kind: input, shape index: {}]   ;;  %s7318_s7 = inlined_call_operand.hbm [shape: f32[64,256], index: 7, kind: output, shape index: {}]  }
   0x1   :  { %13 = vsyncpa [#allocation6], 0 }
   0x2   :  { %14 = vsyncpa [#allocation4], 0  ;;  %s5406_s24 = smov [#allocation2]   ;;  %s5334_s28 = scalar_lea.hbm %s7312_s1, 4608 }
   0x3   :  { %s22_s25 = sshll.u32 %s5406_s24, 4  ;;  %p5335_p0 = scmp.ne.s32.totalorder %s7312_s1, %s5334_s28  ;;  %s23_s25 = int_to_ptr.vmem [resolvable:$true] %s22_s25 }
   0x4   :  { %p5338_p1 = scmp.lt.u32.totalorder %s5334_s28, %s7312_s1 }
   0x6   :  { %p5340_p2 = pnand %p5338_p1, %p5335_p0 }
   0x8   :  { %5343 = shalt.err (!%p5340_p2)
}
   0x9   :  { %s5344_s10 = scalar_lea.vmem %s23_s25, 4608  ;;  %p5349_p4 = scmp.lt.s32.totalorder %s23_s25, %s23_s25 }
   0xa   :  { %p5345_p3 = scmp.ne.s32.totalorder %s23_s25, %s5344_s10  ;;  %p5350_p5 = scmp.lt.s32.totalorder %s5344_s10, %s5344_s10 }
   0xc   :  { %p5351_p6 = por %p5350_p5, %p5349_p4 }
   0xe   :  { %p5352_p7 = pnand %p5351_p6, %p5345_p3 }
  0x10   :  { %5355 = shalt.err (!%p5352_p7)
}
  0x11   :  { %s5407_s11 = smov 1152   ;;  %s5408_s12 = smov 72  }
  0x12   :  { %28 = dma.hbm_to_vmem [thread:$0]  %s7312_s1, 4608, %s23_s25, [#allocation3], %s5407_s11, %s5407_s11, %s5408_s12  }
  0x13   :  { %s5409_s15 = smov [#allocation5]   ;;  %s5356_s19 = scalar_lea.hbm %s7314_s3, 32768 }
  0x14   :  { %s36_s16 = sshll.u32 %s5409_s15, 4  ;;  %p5357_p8 = scmp.ne.s32.totalorder %s7314_s3, %s5356_s19  ;;  %s37_s16 = int_to_ptr.vmem [resolvable:$true] %s36_s16 }
  0x15   :  { %p5360_p9 = scmp.lt.u32.totalorder %s5356_s19, %s7314_s3 }
  0x17   :  { %p5362_p10 = pnand %p5360_p9, %p5357_p8 }
  0x19   :  { %5365 = shalt.err (!%p5362_p10)
}
  0x1a   :  { %s5366_s24 = scalar_lea.vmem %s37_s16, 32768  ;;  %p5371_p12 = scmp.lt.s32.totalorder %s37_s16, %s37_s16 }
  0x1b   :  { %p5367_p11 = scmp.ne.s32.totalorder %s37_s16, %s5366_s24  ;;  %p5372_p13 = scmp.lt.s32.totalorder %s5366_s24, %s5366_s24 }
  0x1d   :  { %p5373_p0 = por %p5372_p13, %p5371_p12 }
  0x1f   :  { %p5374_p1 = pnand %p5373_p0, %p5367_p11 }
  0x21   :  { %5377 = shalt.err (!%p5374_p1)
}
  0x22   :  { %s5410_s1 = smov 128   ;;  %s5411_s25 = smov 8  }
  0x23   :  { %42 = dma.hbm_to_vmem [thread:$0]  %s7314_s3, 32768, %s37_s16, [#allocation6], %s5410_s1, %s5410_s1, %s5411_s25  }
  0x24   :  { %5400 = dma.done.wait [#allocation3], 4608  }
  0x25   :  { %5401 = vsyncadd [#allocation3], 4294962688 }
  0x26   :  { %5402 = dma.done.wait [#allocation6], 32768  }
  0x27   :  { %5403 = vsyncadd [#allocation6], 4294934528  ;;  %v5412_v0 = vmov 0   ;;  %v4623_v1 = vld [vmem:[#allocation2 + $0x4] ss:$72 sps:$4 sm:$0xff]   ;;  %vm380_vm0 = vcmask 261120  }
  0x28   :  { %425 = vmatprep.mubr.bf16.mxu0 %v5412_v0  ;;  %445 = vmatprep.mubr.bf16.mxu1 %v5412_v0  ;;  %v4625_v2 = vld [vmem:[#allocation2] ss:$72 sps:$4 sm:$0xff]   ;;  %v4626_v3 = vld [vmem:[#allocation2 + $0x94] ss:$72 sps:$4 sm:$0xff]   ;;  %v4628_v4 = vld [vmem:[#allocation2 + $0x90] ss:$72 sps:$4 sm:$0xff]  }
  0x29   :  { %393 = vmatprep.subr.bf16.mxu0 %v4623_v1  ;;  %v56_v5 = vld [vmem:[%s7311_s0] sm:$0xff]  ;;  %4449 = vmatprep.subr.bf16.mxu1 %v4623_v1  ;;  %v57_v6 = vld [vmem:[%s7311_s0 + $0x8] sm:$0xff]  ;;  %v4631_v7 = vld [vmem:[#allocation2 + $0x14] ss:$72 sps:$4 sm:$0xff]  }
  0x2a   :  { %394 = vmatpush1.bf16.msra.mxu0 %v4625_v2  ;;  %4451 = vmatpush1.bf16.msra.mxu1 %v4625_v2  ;;  %v5488_v8 = vpack.c.bf16 %v57_v6, %v56_v5  ;;  %v4629_v9 = vld [vmem:[#allocation2 + $0x10] ss:$72 sps:$4 sm:$0xff]   ;;  %v60_v10 = vld [vmem:[%s7311_s0 + $0x20] sm:$0xff]  ;;  %v61_v11 = vld [vmem:[%s7311_s0 + $0x28] sm:$0xff] }
  0x2b   :  { %395 = vmatprep.subr.bf16.mxu0 %v4626_v3  ;;  %4450 = vmatprep.subr.bf16.mxu1 %v4626_v3  ;;  %v4634_v12 = vld [vmem:[#allocation2 + $0xa4] ss:$72 sps:$4 sm:$0xff]   ;;  %v5496_v13 = vpack.c.bf16 %v61_v11, %v60_v10  ;;  %v58_v14 = vld [vmem:[%s7311_s0 + $0x10] sm:$0xff]  ;;  %v59_v15 = vld [vmem:[%s7311_s0 + $0x18] sm:$0xff] }
  0x2c   :  { %v4632_v16 = vld [vmem:[#allocation2 + $0xa0] ss:$72 sps:$4 sm:$0xff]   ;;  %v62_v17 = vld [vmem:[%s7311_s0 + $0x30] sm:$0xff]  ;;  %v63_v20 = vld [vmem:[%s7311_s0 + $0x38] sm:$0xff]  ;;  %v5516_v23 = vpack.c.bf16 %v59_v15, %v58_v14 }
  0x2d   :  { %v4638_v18 = vld [vmem:[#allocation2 + $0x8] ss:$72 sps:$4 sm:$0xff]   ;;  %v4640_v19 = vld [vmem:[#allocation2 + $0xc] ss:$72 sps:$4 sm:$0xff]   ;;  %v4643_v21 = vld [vmem:[#allocation2 + $0x9c] ss:$72 sps:$4 sm:$0xff]   ;;  %v5518_v24 = vpack.c.bf16 %v63_v20, %v62_v17 }
  0x2e   :  { %396 = vmatpush1.bf16.msra.mxu0 %v4628_v4  ;;  %4452 = vmatpush1.bf16.msra.mxu1 %v4628_v4  ;;  %v4637_v22 = vld [vmem:[#allocation2 + $0x24] ss:$72 sps:$4 sm:$0xff]   ;;  %v4641_v25 = vld [vmem:[#allocation2 + $0x98] ss:$72 sps:$4 sm:$0xff]   ;;  %v4646_v28 = vld [vmem:[#allocation2 + $0xb4] ss:$72 sps:$4 sm:$0xff]  }
  0x2f   :  { %539 = vmatprep.subr.bf16.mxu0 %v4631_v7  ;;  %466 = vmatprep.subr.bf16.mxu1 %v4640_v19  ;;  %v4649_v26 = vld [vmem:[#allocation2 + $0x1c] ss:$72 sps:$4 sm:$0xff]   ;;  %v4635_v27 = vld [vmem:[#allocation2 + $0x20] ss:$72 sps:$4 sm:$0xff]   ;;  %v4652_v30 = vld [vmem:[#allocation2 + $0xac] ss:$72 sps:$4 sm:$0xff]  }
  0x30   :  { %v4647_v29 = vld [vmem:[#allocation2 + $0x18] ss:$72 sps:$4 sm:$0xff]   ;;  %v4661_v32 = vld [vmem:[#allocation2 + $0x34] ss:$72 sps:$4 sm:$0xff]   ;;  %v4650_v33 = vld [vmem:[#allocation2 + $0xa8] ss:$72 sps:$4 sm:$0xff]  }
  0x31   :  { %4157 = vmatmul.mubr.msk.bf16.vlgmr.msra.gmra.mrb[0].mxu0 %vm380_vm0, %v5488_v8  ;;  %4159 = vmatmul.mubr.msk.bf16.vlgmr.msra.gmra.mrb[0].mxu1 %vm380_vm0, %v5496_v13  ;;  %v4644_v31 = vld [vmem:[#allocation2 + $0xb0] ss:$72 sps:$4 sm:$0xff]   ;;  %v4655_v34 = vld [vmem:[#allocation2 + $0x2c] ss:$72 sps:$4 sm:$0xff]   ;;  %v4658_v37 = vld [vmem:[#allocation2 + $0xbc] ss:$72 sps:$4 sm:$0xff]  }
  0x32   :  { %540 = vmatpush1.bf16.msra.mxu0 %v4629_v9  ;;  %435 = vmatprep.mubr.bf16.mxu0 %v5412_v0  ;;  %v4653_v35 = vld [vmem:[#allocation2 + $0x28] ss:$72 sps:$4 sm:$0xff]   ;;  %v4664_v38 = vld [vmem:[#allocation2 + $0xc4] ss:$72 sps:$4 sm:$0xff]   ;;  %v4656_v39 = vld [vmem:[#allocation2 + $0xb8] ss:$72 sps:$4 sm:$0xff]  }
  0x33   :  { %541 = vmatprep.subr.bf16.mxu0 %v4634_v12  ;;  %455 = vmatprep.mubr.bf16.mxu1 %v5412_v0  ;;  %v4659_v36 = vld [vmem:[#allocation2 + $0x30] ss:$72 sps:$4 sm:$0xff]   ;;  %v4662_v40 = vld [vmem:[#allocation2 + $0xc0] ss:$72 sps:$4 sm:$0xff]   ;;  %v4667_v41 = vld [vmem:[#allocation2 + $0x3c] ss:$72 sps:$4 sm:$0xff]  }
  0x34   :  { %467 = vmatpush1.bf16.msra.mxu1 %v4638_v18  ;;  %v4688_v42 = vld [vmem:[#allocation2 + $0x44] ss:$72 sps:$4 sm:$0xff]   ;;  %v4665_v43 = vld [vmem:[#allocation2 + $0x38] ss:$72 sps:$4 sm:$0xff]   ;;  %v4703_v46 = vld [vmem:[#allocation2 + $0xd4] ss:$72 sps:$4 sm:$0xff]  }
  0x35   :  { %468 = vmatprep.subr.bf16.mxu1 %v4643_v21  ;;  %v4670_v44 = vld [vmem:[#allocation2 + $0xcc] ss:$72 sps:$4 sm:$0xff]   ;;  %v4686_v45 = vld [vmem:[#allocation2 + $0x40] ss:$72 sps:$4 sm:$0xff]   ;;  %v4701_v49 = vld [vmem:[#allocation2 + $0xd0] ss:$72 sps:$4 sm:$0xff]  }
  0x36   :  { %542 = vmatpush1.bf16.msra.mxu0 %v4632_v16  ;;  %v4668_v47 = vld [vmem:[#allocation2 + $0xc8] ss:$72 sps:$4 sm:$0xff]   ;;  %v4673_v48 = vld [vmem:[#allocation5 + $0x4] ss:$8 sps:$4 sm:$0xff]   ;;  %v4676_v52 = vld [vmem:[#allocation5 + $0x14] ss:$8 sps:$4 sm:$0xff]  }
  0x37   :  { %685 = vmatprep.subr.bf16.mxu0 %v4637_v22  ;;  %v4718_v50 = vld [vmem:[#allocation5 + $0x404] ss:$8 sps:$4 sm:$0xff]   ;;  %v4671_v51 = vld [vmem:[#allocation5] ss:$8 sps:$4 sm:$0xff]   ;;  %v4674_v54 = vld [vmem:[#allocation5 + $0x10] ss:$8 sps:$4 sm:$0xff]  }
  0x38   :  { %469 = vmatpush1.bf16.msra.mxu1 %v4641_v25  ;;  %v4716_v53 = vld [vmem:[#allocation5 + $0x400] ss:$8 sps:$4 sm:$0xff]   ;;  %v4724_v55 = vld [vmem:[#allocation5 + $0x414] ss:$8 sps:$4 sm:$0xff]   ;;  %v4679_v56 = vld [vmem:[#allocation5 + $0x24] ss:$8 sps:$4 sm:$0xff]  }
  0x39   :  { %4158 = vmatmul.mubr.msk.bf16.gmra.mrb[4].mxu0 %vm380_vm0, %v5516_v23  ;;  %4160 = vmatmul.mubr.msk.bf16.gmra.mrb[4].mxu1 %vm380_vm0, %v5518_v24  ;;  %v4722_v57 = vld [vmem:[#allocation5 + $0x410] ss:$8 sps:$4 sm:$0xff]   ;;  %v4677_v58 = vld [vmem:[#allocation5 + $0x20] ss:$8 sps:$4 sm:$0xff]   ;;  %v4730_v59 = vld [vmem:[#allocation5 + $0x424] ss:$8 sps:$4 sm:$0xff]  }
  0x3a   :  { %571 = vmatprep.mubr.bf16.mxu0 %v5412_v0  ;;  %498 = vmatprep.mubr.bf16.mxu1 %v5412_v0  ;;  %v4682_v60 = vld [vmem:[#allocation5 + $0x34] ss:$8 sps:$4 sm:$0xff]   ;;  %v4728_v61 = vld [vmem:[#allocation5 + $0x420] ss:$8 sps:$4 sm:$0xff]   ;;  %v4680_v63 = vld [vmem:[#allocation5 + $0x30] ss:$8 sps:$4 sm:$0xff]  }
  0x3b   :  { %612 = vmatprep.subr.bf16.mxu1 %v4649_v26  ;;  %v4736_v62 = vld [vmem:[#allocation5 + $0x434] ss:$8 sps:$4 sm:$0xff]   ;;  %v4685_v1 = vld [vmem:[#allocation5 + $0x44] ss:$8 sps:$4 sm:$0xff]   ;;  %v4734_v2 = vld [vmem:[#allocation5 + $0x430] ss:$8 sps:$4 sm:$0xff]  }
  0x3c   :  { %v4742_v3 = vld [vmem:[#allocation5 + $0x444] ss:$8 sps:$4 sm:$0xff]   ;;  %v4683_v4 = vld [vmem:[#allocation5 + $0x40] ss:$8 sps:$4 sm:$0xff]   ;;  %v4691_v5 = vld [vmem:[#allocation5 + $0x54] ss:$8 sps:$4 sm:$0xff]  }
  0x3d   :  { %v4740_v6 = vld [vmem:[#allocation5 + $0x440] ss:$8 sps:$4 sm:$0xff]   ;;  %v4748_v7 = vld [vmem:[#allocation5 + $0x454] ss:$8 sps:$4 sm:$0xff]   ;;  %v4694_v9 = vld [vmem:[#allocation5 + $0x64] ss:$8 sps:$4 sm:$0xff]  }
  0x3e   :  { %v4746_v10 = vld [vmem:[#allocation5 + $0x450] ss:$8 sps:$4 sm:$0xff]   ;;  %v4754_v11 = vld [vmem:[#allocation5 + $0x464] ss:$8 sps:$4 sm:$0xff]   ;;  %v4692_v12 = vld [vmem:[#allocation5 + $0x60] ss:$8 sps:$4 sm:$0xff]  }
  0x3f   :  { %v4697_v14 = vld [vmem:[#allocation5 + $0x74] ss:$8 sps:$4 sm:$0xff]   ;;  %v4752_v15 = vld [vmem:[#allocation5 + $0x460] ss:$8 sps:$4 sm:$0xff]   ;;  %v4695_v16 = vld [vmem:[#allocation5 + $0x70] ss:$8 sps:$4 sm:$0xff]  }
  0x40   :  { %v4700_v17 = vld [vmem:[#allocation5 + $0x84] ss:$8 sps:$4 sm:$0xff]   ;;  %v4698_v19 = vld [vmem:[#allocation5 + $0x80] ss:$8 sps:$4 sm:$0xff]   ;;  %v4706_v20 = vld [vmem:[#allocation5 + $0x94] ss:$8 sps:$4 sm:$0xff]  }
  0x41   :  { %4165 = vmatmul.mubr.msk.bf16.vlgmr.msra.gmra.mrb[8].mxu0 %vm380_vm0, %v5488_v8  ;;  %4161 = vmatmul.mubr.msk.bf16.vlgmr.msra.gmra.mrb[8].mxu1 %vm380_vm0, %v5488_v8  ;;  %v4766_v18 = vld [vmem:[#allocation5 + $0x484] ss:$8 sps:$4 sm:$0xff]   ;;  %v4764_v21 = vld [vmem:[#allocation5 + $0x480] ss:$8 sps:$4 sm:$0xff]   ;;  %v4772_v22 = vld [vmem:[#allocation5 + $0x494] ss:$8 sps:$4 sm:$0xff]  }
  0x42   :  { %686 = vmatpush1.bf16.msra.mxu0 %v4635_v27  ;;  %581 = vmatprep.mubr.bf16.mxu0 %v5412_v0  ;;  %v4770_v25 = vld [vmem:[#allocation5 + $0x490] ss:$8 sps:$4 sm:$0xff]   ;;  %v4778_v26 = vld [vmem:[#allocation5 + $0x4a4] ss:$8 sps:$4 sm:$0xff]   ;;  %v4707_v27 = vld [vmem:[#allocation5 + $0xa0] ss:$8 sps:$4 sm:$0xff]  }
  0x43   :  { %687 = vmatprep.subr.bf16.mxu0 %v4646_v28  ;;  %508 = vmatprep.mubr.bf16.mxu1 %v5412_v0  ;;  %v4712_v28 = vld [vmem:[#allocation5 + $0xb4] ss:$8 sps:$4 sm:$0xff]  }
  0x44   :  { %613 = vmatpush1.bf16.msra.mxu1 %v4647_v29  ;;  %v4776_v29 = vld [vmem:[#allocation5 + $0x4a0] ss:$8 sps:$4 sm:$0xff]  }
  0x45   :  { %614 = vmatprep.subr.bf16.mxu1 %v4652_v30  ;;  %v4710_v30 = vld [vmem:[#allocation5 + $0xb0] ss:$8 sps:$4 sm:$0xff]  }
  0x46   :  { %688 = vmatpush1.bf16.msra.mxu0 %v4644_v31  ;;  %v4715_v31 = vld [vmem:[#allocation5 + $0xc4] ss:$8 sps:$4 sm:$0xff]  }
  0x47   :  { %831 = vmatprep.subr.bf16.mxu0 %v4661_v32  ;;  %v4784_v32 = vld [vmem:[#allocation5 + $0x4b4] ss:$8 sps:$4 sm:$0xff]  }
  0x48   :  { %615 = vmatpush1.bf16.msra.mxu1 %v4650_v33  ;;  %v4782_v33 = vld [vmem:[#allocation5 + $0x4b0] ss:$8 sps:$4 sm:$0xff]  }
  0x49   :  { %4166 = vmatmul.mubr.msk.bf16.gmra.mrb[12].mxu0 %vm380_vm0, %v5516_v23  ;;  %4162 = vmatmul.mubr.msk.bf16.gmra.mrb[12].mxu1 %vm380_vm0, %v5516_v23 }
  0x4a   :  { %591 = vmatprep.mubr.bf16.mxu0 %v5412_v0  ;;  %518 = vmatprep.mubr.bf16.mxu1 %v5412_v0 }
  0x4b   :  { %758 = vmatprep.subr.bf16.mxu1 %v4655_v34  ;;  %v4713_v34 = vld [vmem:[#allocation5 + $0xc0] ss:$8 sps:$4 sm:$0xff]  }
  0x51   :  { %4167 = vmatmul.mubr.msk.bf16.gmra.mrb[16].mxu0 %vm380_vm0, %v5496_v13  ;;  %4163 = vmatmul.mubr.msk.bf16.gmra.mrb[16].mxu1 %vm380_vm0, %v5496_v13 }
  0x52   :  { %601 = vmatprep.mubr.bf16.mxu0 %v5412_v0  ;;  %528 = vmatprep.mubr.bf16.mxu1 %v5412_v0 }
  0x59   :  { %4168 = vmatmul.mubr.msk.bf16.gmra.mrb[20].mxu0 %vm380_vm0, %v5518_v24  ;;  %4164 = vmatmul.mubr.msk.bf16.gmra.mrb[20].mxu1 %vm380_vm0, %v5518_v24 }
  0x5a   :  { %717 = vmatprep.mubr.bf16.mxu0 %v5412_v0  ;;  %644 = vmatprep.mubr.bf16.mxu1 %v5412_v0 }
  0x61   :  { %4173 = vmatmul.mubr.msk.bf16.vlgmr.msra.gmra.mrb[24].mxu0 %vm380_vm0, %v5488_v8  ;;  %4169 = vmatmul.mubr.msk.bf16.vlgmr.msra.gmra.mrb[24].mxu1 %vm380_vm0, %v5488_v8 }
  0x62   :  { %727 = vmatprep.mubr.bf16.mxu0 %v5412_v0  ;;  %654 = vmatprep.mubr.bf16.mxu1 %v5412_v0 }
  0x63   :  { %759 = vmatpush1.bf16.msra.mxu1 %v4653_v35  ;;  %832 = vmatpush1.bf16.msra.mxu0 %v4659_v36  ;;  %v4721_v35 = vld [vmem:[#allocation5 + $0xd4] ss:$8 sps:$4 sm:$0xff]   ;;  %v4790_v36 = vld [vmem:[#allocation5 + $0x4c4] ss:$8 sps:$4 sm:$0xff]  }
  0x64   :  { %760 = vmatprep.subr.bf16.mxu1 %v4658_v37  ;;  %833 = vmatprep.subr.bf16.mxu0 %v4664_v38  ;;  %v4788_v37 = vld [vmem:[#allocation5 + $0x4c0] ss:$8 sps:$4 sm:$0xff]   ;;  %v4719_v38 = vld [vmem:[#allocation5 + $0xd0] ss:$8 sps:$4 sm:$0xff]  }
  0x67   :  { %761 = vmatpush1.bf16.msra.mxu1 %v4656_v39  ;;  %834 = vmatpush1.bf16.msra.mxu0 %v4662_v40  ;;  %v4727_v39 = vld [vmem:[#allocation5 + $0xe4] ss:$8 sps:$4 sm:$0xff]   ;;  %v4796_v40 = vld [vmem:[#allocation5 + $0x4d4] ss:$8 sps:$4 sm:$0xff]  }
  0x68   :  { %904 = vmatprep.subr.bf16.mxu1 %v4667_v41  ;;  %977 = vmatprep.subr.bf16.mxu0 %v4688_v42  ;;  %v4794_v41 = vld [vmem:[#allocation5 + $0x4d0] ss:$8 sps:$4 sm:$0xff]   ;;  %v4725_v42 = vld [vmem:[#allocation5 + $0xe0] ss:$8 sps:$4 sm:$0xff]  }
  0x69   :  { %4174 = vmatmul.mubr.msk.bf16.gmra.mrb[28].mxu0 %vm380_vm0, %v5516_v23  ;;  %4170 = vmatmul.mubr.msk.bf16.gmra.mrb[28].mxu1 %vm380_vm0, %v5516_v23 }
  0x6a   :  { %737 = vmatprep.mubr.bf16.mxu0 %v5412_v0  ;;  %664 = vmatprep.mubr.bf16.mxu1 %v5412_v0 }
  0x71   :  { %4175 = vmatmul.mubr.msk.bf16.gmra.mrb[32].mxu0 %vm380_vm0, %v5496_v13  ;;  %4171 = vmatmul.mubr.msk.bf16.gmra.mrb[32].mxu1 %vm380_vm0, %v5496_v13 }
  0x72   :  { %747 = vmatprep.mubr.bf16.mxu0 %v5412_v0  ;;  %674 = vmatprep.mubr.bf16.mxu1 %v5412_v0 }
  0x79   :  { %4176 = vmatmul.mubr.msk.bf16.gmra.mrb[36].mxu0 %vm380_vm0, %v5518_v24  ;;  %4172 = vmatmul.mubr.msk.bf16.gmra.mrb[36].mxu1 %vm380_vm0, %v5518_v24 }
  0x7a   :  { %790 = vmatprep.mubr.bf16.mxu1 %v5412_v0  ;;  %863 = vmatprep.mubr.bf16.mxu0 %v5412_v0 }
  0x81   :  { %4177 = vmatmul.mubr.msk.bf16.vlgmr.msra.gmra.mrb[40].mxu1 %vm380_vm0, %v5488_v8  ;;  %4181 = vmatmul.mubr.msk.bf16.vlgmr.msra.gmra.mrb[40].mxu0 %vm380_vm0, %v5488_v8 }
  0x82   :  { %800 = vmatprep.mubr.bf16.mxu1 %v5412_v0  ;;  %905 = vmatpush1.bf16.msra.mxu1 %v4665_v43  ;;  %v4733_v43 = vld [vmem:[#allocation5 + $0xf4] ss:$8 sps:$4 sm:$0xff]  }
  0x83   :  { %906 = vmatprep.subr.bf16.mxu1 %v4670_v44  ;;  %873 = vmatprep.mubr.bf16.mxu0 %v5412_v0  ;;  %v4802_v44 = vld [vmem:[#allocation5 + $0x4e4] ss:$8 sps:$4 sm:$0xff]  }
  0x84   :  { %978 = vmatpush1.bf16.msra.mxu0 %v4686_v45  ;;  %v4800_v45 = vld [vmem:[#allocation5 + $0x4e0] ss:$8 sps:$4 sm:$0xff]  }
  0x85   :  { %979 = vmatprep.subr.bf16.mxu0 %v4703_v46  ;;  %v4731_v46 = vld [vmem:[#allocation5 + $0xf0] ss:$8 sps:$4 sm:$0xff]  }
  0x86   :  { %907 = vmatpush1.bf16.msra.mxu1 %v4668_v47  ;;  %v4739_v47 = vld [vmem:[#allocation5 + $0x104] ss:$8 sps:$4 sm:$0xff]  }
  0x87   :  { %3302 = vmatprep.subr.bf16.mxu1 %v4673_v48  ;;  %v4808_v48 = vld [vmem:[#allocation5 + $0x4f4] ss:$8 sps:$4 sm:$0xff]  }
  0x88   :  { %980 = vmatpush1.bf16.msra.mxu0 %v4701_v49  ;;  %v4806_v49 = vld [vmem:[#allocation5 + $0x4f0] ss:$8 sps:$4 sm:$0xff]  }
  0x89   :  { %4178 = vmatmul.mubr.msk.bf16.gmra.mrb[44].mxu1 %vm380_vm0, %v5516_v23  ;;  %4182 = vmatmul.mubr.msk.bf16.gmra.mrb[44].mxu0 %vm380_vm0, %v5516_v23 }
  0x8a   :  { %810 = vmatprep.mubr.bf16.mxu1 %v5412_v0  ;;  %883 = vmatprep.mubr.bf16.mxu0 %v5412_v0 }
  0x8b   :  { %3594 = vmatprep.subr.bf16.mxu0 %v4718_v50  ;;  %v4814_v50 = vld [vmem:[#allocation5 + $0x504] ss:$8 sps:$4 sm:$0xff]  }
  0x91   :  { %4179 = vmatmul.mubr.msk.bf16.gmra.mrb[48].mxu1 %vm380_vm0, %v5496_v13  ;;  %4183 = vmatmul.mubr.msk.bf16.gmra.mrb[48].mxu0 %vm380_vm0, %v5496_v13 }
  0x92   :  { %820 = vmatprep.mubr.bf16.mxu1 %v5412_v0  ;;  %893 = vmatprep.mubr.bf16.mxu0 %v5412_v0 }
  0x99   :  { %4180 = vmatmul.mubr.msk.bf16.gmra.mrb[52].mxu1 %vm380_vm0, %v5518_v24  ;;  %4184 = vmatmul.mubr.msk.bf16.gmra.mrb[52].mxu0 %vm380_vm0, %v5518_v24 }
  0x9a   :  { %936 = vmatprep.mubr.bf16.mxu1 %v5412_v0  ;;  %1009 = vmatprep.mubr.bf16.mxu0 %v5412_v0 }
  0xa1   :  { %4185 = vmatmul.mubr.msk.bf16.vlgmr.msra.gmra.mrb[56].mxu1 %vm380_vm0, %v5488_v8  ;;  %4189 = vmatmul.mubr.msk.bf16.vlgmr.msra.gmra.mrb[56].mxu0 %vm380_vm0, %v5488_v8  ;;  %v4689_v8 = vld [vmem:[#allocation5 + $0x50] ss:$8 sps:$4 sm:$0xff]  }
  0xa2   :  { %3303 = vmatpush1.bf16.msra.mxu1 %v4671_v51  ;;  %946 = vmatprep.mubr.bf16.mxu1 %v5412_v0  ;;  %v110_v51 = vlaneseq }
  0xa3   :  { %3304 = vmatprep.subr.bf16.mxu1 %v4676_v52  ;;  %3595 = vmatpush1.bf16.msra.mxu0 %v4716_v53 }
  0xa4   :  { %3596 = vmatprep.subr.bf16.mxu0 %v4724_v55  ;;  %1019 = vmatprep.mubr.bf16.mxu0 %v5412_v0  ;;  %v5620_v52 = vshrl.u32 %v110_v51, 7 }
  0xa6   :  { %3305 = vmatpush1.bf16.msra.mxu1 %v4674_v54  ;;  %7357 = vst [vmem:[#allocation11_spill] sm:$0xff] %v5620_v52  ;;  %v5623_v53 = vsub.s32 0, %v5620_v52  ;;  %v5628_v54 = vld [vmem:[%s7313_s2] sm:$0xff]  ;;  %v5631_v55 = vsub.s32 1, %v5620_v52 }
  0xa7   :  { %3306 = vmatprep.subr.bf16.mxu1 %v4679_v56  ;;  %3597 = vmatpush1.bf16.msra.mxu0 %v4722_v57 }
  0xa8   :  { %3598 = vmatprep.subr.bf16.mxu0 %v4730_v59  ;;  %7358 = vst [vmem:[#allocation12_spill] sm:$0xff] %v5623_v53  ;;  %7359 = vst [vmem:[#allocation13_spill] sm:$0xff] %v5631_v55  ;;  %v5635_v56 = vrot.slane %v5628_v54, %v5623_v53  ;;  %v5639_v57 = vrot.slane %v5628_v54, %v5631_v55 }
  0xa9   :  { %4186 = vmatmul.mubr.msk.bf16.gmra.mrb[60].mxu1 %vm380_vm0, %v5516_v23  ;;  %4190 = vmatmul.mubr.msk.bf16.gmra.mrb[60].mxu0 %vm380_vm0, %v5516_v23  ;;  %v4704_v23 = vld [vmem:[#allocation5 + $0x90] ss:$8 sps:$4 sm:$0xff]  }
  0xaa   :  { %3307 = vmatpush1.bf16.msra.mxu1 %v4677_v58  ;;  %956 = vmatprep.mubr.bf16.mxu1 %v5412_v0 }
  0xab   :  { %3308 = vmatprep.subr.bf16.mxu1 %v4682_v60  ;;  %3599 = vmatpush1.bf16.msra.mxu0 %v4728_v61 }
  0xac   :  { %3600 = vmatprep.subr.bf16.mxu0 %v4736_v62  ;;  %1029 = vmatprep.mubr.bf16.mxu0 %v5412_v0 }
  0xae   :  { %3309 = vmatpush1.bf16.msra.mxu1 %v4680_v63 }
  0xaf   :  { %3310 = vmatprep.subr.bf16.mxu1 %v4685_v1  ;;  %3601 = vmatpush1.bf16.msra.mxu0 %v4734_v2 }
  0xb0   :  { %3602 = vmatprep.subr.bf16.mxu0 %v4742_v3  ;;  %v7322_v3 = vsub.s32 4, %v5620_v52 }
  0xb1   :  { %4187 = vmatmul.mubr.msk.bf16.gmra.mrb[64].mxu1 %vm380_vm0, %v5496_v13  ;;  %4191 = vmatmul.mubr.msk.bf16.gmra.mrb[64].mxu0 %vm380_vm0, %v5496_v13  ;;  %v4760_v13 = vld [vmem:[#allocation5 + $0x474] ss:$8 sps:$4 sm:$0xff]  }
  0xb2   :  { %3311 = vmatpush1.bf16.msra.mxu1 %v4683_v4  ;;  %966 = vmatprep.mubr.bf16.mxu1 %v5412_v0 }
  0xb3   :  { %3312 = vmatprep.subr.bf16.mxu1 %v4691_v5  ;;  %3603 = vmatpush1.bf16.msra.mxu0 %v4740_v6 }
  0xb4   :  { %3604 = vmatprep.subr.bf16.mxu0 %v4748_v7  ;;  %1039 = vmatprep.mubr.bf16.mxu0 %v5412_v0  ;;  %v4758_v0 = vld [vmem:[#allocation5 + $0x470] ss:$8 sps:$4 sm:$0xff]  }
  0xb6   :  { %3313 = vmatpush1.bf16.msra.mxu1 %v4689_v8 }
  0xb7   :  { %3314 = vmatprep.subr.bf16.mxu1 %v4694_v9  ;;  %3605 = vmatpush1.bf16.msra.mxu0 %v4746_v10  ;;  %v7321_v9 = vsub.s32 5, %v5620_v52 }
  0xb8   :  { %3606 = vmatprep.subr.bf16.mxu0 %v4754_v11 }
  0xb9   :  { %4188 = vmatmul.mubr.msk.bf16.gmra.mrb[68].mxu1 %vm380_vm0, %v5518_v24  ;;  %4192 = vmatmul.mubr.msk.bf16.gmra.mrb[68].mxu0 %vm380_vm0, %v5518_v24  ;;  %v4709_v24 = vld [vmem:[#allocation5 + $0xa4] ss:$8 sps:$4 sm:$0xff]  }
  0xba   :  { %3315 = vmatpush1.bf16.msra.mxu1 %v4692_v12 }
  0xbb   :  { %3316 = vmatprep.subr.bf16.mxu1 %v4697_v14  ;;  %3607 = vmatpush1.bf16.msra.mxu0 %v4752_v15  ;;  %v7324_v14 = vsub.s32 2, %v5620_v52  ;;  %v7323_v15 = vsub.s32 3, %v5620_v52 }
  0xbc   :  { %3608 = vmatprep.subr.bf16.mxu0 %v4760_v13 }
  0xbe   :  { %3317 = vmatpush1.bf16.msra.mxu1 %v4695_v16 }
  0xbf   :  { %3318 = vmatprep.subr.bf16.mxu1 %v4700_v17  ;;  %3609 = vmatpush1.bf16.msra.mxu0 %v4758_v0  ;;  %v5656_v0 = vrot.slane %v5628_v54, %v7322_v3 }
  0xc0   :  { %3610 = vmatprep.subr.bf16.mxu0 %v4766_v18 }
  0xc2   :  { %3319 = vmatpush1.bf16.msra.mxu1 %v4698_v19  ;;  %v5662_v19 = vrot.slane %v5628_v54, %v7321_v9 }
  0xc3   :  { %3320 = vmatprep.subr.bf16.mxu1 %v4706_v20  ;;  %3611 = vmatpush1.bf16.msra.mxu0 %v4764_v21 }
  0xc4   :  { %3612 = vmatprep.subr.bf16.mxu0 %v4772_v22  ;;  %v105_v22 = vld [vmem:[%s7313_s2 + $0x8] sm:$0xff] }
  0xc6   :  { %3321 = vmatpush1.bf16.msra.mxu1 %v4704_v23 }
  0xc7   :  { %3322 = vmatprep.subr.bf16.mxu1 %v4709_v24  ;;  %3613 = vmatpush1.bf16.msra.mxu0 %v4770_v25  ;;  %v5672_v25 = vrot.slane %v5628_v54, %v7324_v14  ;;  %v4763_v14 = vld [vmem:[#allocation5 + $0x144] ss:$8 sps:$4 sm:$0xff]  }
  0xc8   :  { %3614 = vmatprep.subr.bf16.mxu0 %v4778_v26  ;;  %v5677_v26 = vrot.slane %v5628_v54, %v7323_v15 }
  0xca   :  { %3323 = vmatpush1.bf16.msra.mxu1 %v4707_v27  ;;  %v7320_v27 = vsub.s32 6, %v5620_v52 }
  0xcb   :  { %3324 = vmatprep.subr.bf16.mxu1 %v4712_v28  ;;  %3615 = vmatpush1.bf16.msra.mxu0 %v4776_v29 }
  0xcc   :  { %3616 = vmatprep.subr.bf16.mxu0 %v4784_v32  ;;  %v7319_v32 = vsub.s32 7, %v5620_v52 }
  0xce   :  { %3325 = vmatpush1.bf16.msra.mxu1 %v4710_v30 }
  0xcf   :  { %3326 = vmatprep.subr.bf16.mxu1 %v4715_v31  ;;  %3617 = vmatpush1.bf16.msra.mxu0 %v4782_v33 }
  0xd0   :  { %3618 = vmatprep.subr.bf16.mxu0 %v4790_v36 }
  0xd2   :  { %3327 = vmatpush1.bf16.msra.mxu1 %v4713_v34 }
  0xd3   :  { %3328 = vmatprep.subr.bf16.mxu1 %v4721_v35  ;;  %3619 = vmatpush1.bf16.msra.mxu0 %v4788_v37  ;;  %v5686_v37 = vrot.slane %v105_v22, %v5623_v53 }
  0xd4   :  { %3620 = vmatprep.subr.bf16.mxu0 %v4796_v40 }
  0xd6   :  { %3329 = vmatpush1.bf16.msra.mxu1 %v4719_v38 }
  0xd7   :  { %3330 = vmatprep.subr.bf16.mxu1 %v4727_v39  ;;  %3621 = vmatpush1.bf16.msra.mxu0 %v4794_v41 }
  0xd8   :  { %3622 = vmatprep.subr.bf16.mxu0 %v4802_v44 }
  0xda   :  { %3331 = vmatpush1.bf16.msra.mxu1 %v4725_v42  ;;  %v5692_v42 = vrot.slane %v105_v22, %v5631_v55 }
  0xdb   :  { %3332 = vmatprep.subr.bf16.mxu1 %v4733_v43  ;;  %3623 = vmatpush1.bf16.msra.mxu0 %v4800_v45  ;;  %v5698_v45 = vrot.slane %v5628_v54, %v7320_v27 }
  0xdc   :  { %3624 = vmatprep.subr.bf16.mxu0 %v4808_v48  ;;  %v5704_v48 = vrot.slane %v5628_v54, %v7319_v32 }
  0xde   :  { %3333 = vmatpush1.bf16.msra.mxu1 %v4731_v46  ;;  %7360 = vst [vmem:[#allocation14_spill] sm:$0xff] %v5704_v48 }
  0xdf   :  { %3375 = vmatprep.subr.bf16.mxu1 %v4739_v47  ;;  %3625 = vmatpush1.bf16.msra.mxu0 %v4806_v49 }
  0xe0   :  { %3667 = vmatprep.subr.bf16.mxu0 %v4814_v50 }
 0x104   :  { %v427_v58 = vpop.f32.mrb[0].mxu0  ;;  %v447_v59 = vpop.f32.mrb[0].mxu1 }
 0x105   :  { %v428_v60 = vadd.f32 %v427_v58, %v5635_v56  ;;  %v429_v61 = vpop.f32.mrb[1].mxu0  ;;  %v448_v62 = vadd.f32 %v447_v59, %v5635_v56  ;;  %v449_v63 = vpop.f32.mrb[1].mxu1 }
 0x106   :  { %v430_v1 = vadd.f32 %v429_v61, %v5639_v57  ;;  %v431_v2 = vpop.f32.mrb[2].mxu0  ;;  %v5646_v4 = vadd.f32 %v449_v63, %v5639_v57  ;;  %v451_v5 = vpop.f32.mrb[2].mxu1 }
 0x107   :  { %v1178_v6 = vmul.f32 0.70710677, %v428_v60  ;;  %v432_v7 = vadd.f32 %v431_v2, %v5635_v56  ;;  %v433_v8 = vpop.f32.mrb[3].mxu0  ;;  %v453_v10 = vpop.f32.mrb[3].mxu1  ;;  %v1242_v16 = vmul.f32 0.70710677, %v448_v62  ;;  %v452_v20 = vadd.f32 %v451_v5, %v5635_v56 }
 0x108   :  { %v1179_v11 = vmul.f32 0.70710677, %v430_v1  ;;  %v434_v12 = vadd.f32 %v433_v8, %v5639_v57  ;;  %v1243_v18 = vmul.f32 0.70710677, %v5646_v4  ;;  %v454_v21 = vadd.f32 %v453_v10, %v5639_v57 }
 0x109   :  { %5061 = verf.f32 %v1178_v6  ;;  %v1194_v13 = vmul.f32 0.70710677, %v432_v7  ;;  %v1258_v30 = vmul.f32 0.70710677, %v452_v20  ;;  %v1050_v49 = vmul.f32 0.5, %v428_v60 }
 0x10a   :  { %5063 = verf.f32 %v1179_v11  ;;  %v1195_v17 = vmul.f32 0.70710677, %v434_v12  ;;  %v1259_v35 = vmul.f32 0.70710677, %v454_v21  ;;  %v5706_v51 = vmul.f32 0.5, %v448_v62 }
 0x10b   :  { %5065 = verf.f32 %v1194_v13  ;;  %v1051_v61 = vmul.f32 0.5, %v430_v1  ;;  %v1066_v63 = vmul.f32 0.5, %v432_v7  ;;  %v1067_v8 = vmul.f32 0.5, %v434_v12 }
 0x10c   :  { %5067 = verf.f32 %v1195_v17  ;;  %v437_v23 = vpop.f32.mrb[4].mxu0  ;;  %v457_v24 = vpop.f32.mrb[4].mxu1  ;;  %v5712_v54 = vmul.f32 0.5, %v5646_v4  ;;  %v5719_v1 = vmul.f32 0.5, %v452_v20  ;;  %v5721_v7 = vmul.f32 0.5, %v454_v21 }
 0x10d   :  { %v438_v28 = vadd.f32 %v437_v23, %v5635_v56  ;;  %v439_v29 = vpop.f32.mrb[5].mxu0  ;;  %5069 = verf.f32 %v1242_v16  ;;  %v459_v31 = vpop.f32.mrb[5].mxu1  ;;  %v458_v47 = vadd.f32 %v457_v24, %v5635_v56 }
 0x10e   :  { %v440_v33 = vadd.f32 %v439_v29, %v5639_v57  ;;  %v441_v34 = vpop.f32.mrb[6].mxu0  ;;  %5071 = verf.f32 %v1243_v18  ;;  %v5683_v36 = vpop.f32.mrb[6].mxu1  ;;  %v5709_v58 = vadd.f32 %v459_v31, %v5639_v57 }
 0x10f   :  { %v1210_v38 = vmul.f32 0.70710677, %v438_v28  ;;  %v442_v39 = vadd.f32 %v441_v34, %v5635_v56  ;;  %v443_v40 = vpop.f32.mrb[7].mxu0  ;;  %5073 = verf.f32 %v1258_v30  ;;  %v5689_v41 = vpop.f32.mrb[7].mxu1  ;;  %v1274_v2 = vmul.f32 0.70710677, %v458_v47 }
 0x110   :  { %v1211_v43 = vmul.f32 0.70710677, %v440_v33  ;;  %v444_v44 = vadd.f32 %v443_v40, %v5639_v57  ;;  %5075 = verf.f32 %v1259_v35  ;;  %v1275_v23 = vmul.f32 0.70710677, %v5709_v58 }
 0x111   :  { %5077 = verf.f32 %v1210_v38  ;;  %v1226_v46 = vmul.f32 0.70710677, %v442_v39  ;;  %v5729_v31 = vmul.f32 0.5, %v438_v28 }
 0x112   :  { %v1227_v50 = vmul.f32 0.70710677, %v444_v44  ;;  %5079 = verf.f32 %v1211_v43  ;;  %v5734_v43 = vmul.f32 0.5, %v440_v33  ;;  %v462_v33 = vadd.f32 %v5683_v36, %v5635_v56 }
 0x113   :  { %v5062_v59 = vpop.eup %5061  ;;  %5081 = verf.f32 %v1226_v46  ;;  %v5736_v46 = vmul.f32 0.5, %v442_v39 }
 0x114   :  { %v5064_v5 = vpop.eup %5063  ;;  %v1434_v6 = vadd.f32 1.0, %v5062_v59  ;;  %v573_v10 = vpop.f32.mrb[8].mxu0  ;;  %5083 = verf.f32 %v1227_v50 }
 0x115   :  { %v5714_v60 = vpop.f32.mrb[8].mxu1  ;;  %v5066_v62 = vpop.eup %5065  ;;  %v5717_v11 = vadd.f32 %v573_v10, %v5656_v0  ;;  %v1435_v17 = vadd.f32 1.0, %v5064_v5  ;;  %5085 = verf.f32 %v1274_v2  ;;  %v5738_v5 = vmul.f32 0.5, %v444_v44 }
 0x116   :  { %v575_v13 = vpop.f32.mrb[9].mxu0  ;;  %v5723_v16 = vpop.f32.mrb[9].mxu1  ;;  %v1450_v18 = vadd.f32 1.0, %v5066_v62  ;;  %v1562_v38 = vmul.f32 %v1434_v6, %v1050_v49 }
 0x117   :  { %v5068_v12 = vpop.eup %5067  ;;  %v576_v4 = vadd.f32 %v575_v13, %v5662_v19  ;;  %v577_v22 = vpop.f32.mrb[10].mxu0  ;;  %v1182_v20 = vmul.f32 0.70710677, %v5717_v11  ;;  %v1563_v62 = vmul.f32 %v1435_v17, %v1051_v61 }
 0x118   :  { %v5727_v24 = vpop.f32.mrb[10].mxu1  ;;  %v5070_v29 = vpop.eup %5069  ;;  %v1451_v30 = vadd.f32 1.0, %v5068_v12  ;;  %v1578_v40 = vmul.f32 %v1450_v18, %v1066_v63  ;;  %v578_v28 = vadd.f32 %v577_v22, %v5656_v0  ;;  %v5741_v12 = vmul.f32 0.5, %v458_v47  ;;  %v4737_v22 = vld [vmem:[#allocation5 + $0x100] ss:$8 sps:$4 sm:$0xff]  }
 0x119   :  { %v579_v21 = vpop.f32.mrb[11].mxu0  ;;  %v5732_v34 = vpop.f32.mrb[11].mxu1  ;;  %5087 = verf.f32 %v1182_v20  ;;  %v1183_v2 = vmul.f32 0.70710677, %v576_v4  ;;  %v1498_v49 = vadd.f32 1.0, %v5070_v29 }
 0x11a   :  { %v5072_v35 = vpop.eup %5071  ;;  %v1579_v59 = vmul.f32 %v1451_v30, %v1067_v8  ;;  %v1690_v13 = vpack.c.bf16 %v1578_v40, %v1562_v38  ;;  %v1198_v63 = vmul.f32 0.70710677, %v578_v28  ;;  %5089 = verf.f32 %v1275_v23  ;;  %v4745_v23 = vld [vmem:[#allocation5 + $0x114] ss:$8 sps:$4 sm:$0xff]  }
 0x11b   :  { %v5074_v50 = vpop.eup %5073  ;;  %v1499_v39 = vadd.f32 1.0, %v5072_v35  ;;  %v580_v44 = vadd.f32 %v579_v21, %v5662_v19  ;;  %v5752_v21 = vmul.f32 0.5, %v5709_v58  ;;  %v5754_v35 = vmul.f32 0.5, %v462_v33 }
 0x11c   :  { %v5076_v10 = vpop.eup %5075  ;;  %v1514_v6 = vadd.f32 1.0, %v5074_v50  ;;  %v583_v8 = vpop.f32.mrb[12].mxu0  ;;  %v1691_v18 = vpack.c.bf16 %v1579_v59, %v1563_v62  ;;  %5091 = verf.f32 %v1198_v63  ;;  %v5759_v59 = vmul.f32 %v1498_v49, %v5706_v51 }
 0x11d   :  { %v5078_v32 = vpop.eup %5077  ;;  %v5746_v30 = vpop.f32.mrb[12].mxu1  ;;  %v1515_v47 = vadd.f32 1.0, %v5076_v10  ;;  %v584_v29 = vadd.f32 %v583_v8, %v5656_v0  ;;  %5093 = verf.f32 %v1183_v2  ;;  %v1199_v36 = vmul.f32 0.70710677, %v580_v44 }
 0x11e   :  { %v5080_v61 = vpop.eup %5079  ;;  %v1466_v17 = vadd.f32 1.0, %v5078_v32  ;;  %v585_v20 = vpop.f32.mrb[13].mxu0  ;;  %3334 = vmatprep.mubr.bf16.mxu1 %v1691_v18  ;;  %v5762_v10 = vmul.f32 0.5, %v5717_v11  ;;  %v5764_v62 = vmul.f32 0.5, %v576_v4  ;;  %v5769_v8 = vmul.f32 %v1499_v39, %v5712_v54  ;;  %v4743_v11 = vld [vmem:[#allocation5 + $0x110] ss:$8 sps:$4 sm:$0xff]  }
 0x11f   :  { %v5749_v38 = vpop.f32.mrb[13].mxu1  ;;  %v5082_v56 = vpop.eup %5081  ;;  %v1214_v2 = vmul.f32 0.70710677, %v584_v29  ;;  %3335 = vmatmul.mubr.bf16.vlgmr.msra.gmra.mrb[72].mxu1 %v1690_v13  ;;  %v5772_v18 = vmul.f32 %v1514_v6, %v5719_v1  ;;  %v5774_v27 = vmul.f32 0.5, %v578_v28  ;;  %v5777_v51 = vadd.f32 %v585_v20, %v5662_v19  ;;  %v4751_v39 = vld [vmem:[#allocation5 + $0x124] ss:$8 sps:$4 sm:$0xff]  }
 0x120   :  { %v587_v40 = vpop.f32.mrb[14].mxu0  ;;  %v5756_v50 = vpop.f32.mrb[14].mxu1  ;;  %3376 = vmatpush1.bf16.msra.mxu1 %v4737_v22  ;;  %v5780_v49 = vmul.f32 %v1466_v17, %v5729_v31  ;;  %v1467_v13 = vadd.f32 1.0, %v5080_v61  ;;  %v5783_v9 = vmul.f32 %v1515_v47, %v5721_v7  ;;  %v1290_v54 = vmul.f32 0.70710677, %v462_v33 }
 0x121   :  { %v5084_v32 = vpop.eup %5083  ;;  %v589_v63 = vpop.f32.mrb[15].mxu0  ;;  %3377 = vmatprep.subr.bf16.mxu1 %v4745_v23  ;;  %5095 = verf.f32 %v1199_v36  ;;  %v1215_v28 = vmul.f32 0.70710677, %v5777_v51  ;;  %v588_v6 = vadd.f32 %v587_v40, %v5656_v0  ;;  %v1482_v22 = vadd.f32 1.0, %v5082_v56  ;;  %v4749_v7 = vld [vmem:[#allocation5 + $0x120] ss:$8 sps:$4 sm:$0xff]  }
 0x122   :  { %v5766_v58 = vpop.f32.mrb[15].mxu1  ;;  %v5086_v4 = vpop.eup %5085  ;;  %v1483_v1 = vadd.f32 1.0, %v5084_v32  ;;  %5097 = verf.f32 %v1214_v2  ;;  %v5789_v31 = vadd.f32 %v5689_v41, %v5639_v57  ;;  %v5792_v61 = vadd.f32 %v589_v63, %v5662_v19  ;;  %v4757_v2 = vld [vmem:[#allocation5 + $0x134] ss:$8 sps:$4 sm:$0xff]  }
 0x123   :  { %v5088_v20 = vpop.eup %5087  ;;  %v5794_v33 = vmul.f32 0.5, %v580_v44  ;;  %v1530_v17 = vadd.f32 1.0, %v5086_v4  ;;  %5099 = verf.f32 %v1290_v54  ;;  %v1230_v47 = vmul.f32 0.70710677, %v588_v6 }
 0x124   :  { %3378 = vmatpush1.bf16.msra.mxu1 %v4743_v11  ;;  %v593_v23 = vpop.f32.mrb[16].mxu0  ;;  %v5796_v36 = vpop.f32.mrb[16].mxu1  ;;  %v1595_v56 = vmul.f32 %v1467_v13, %v5734_v43  ;;  %v1438_v32 = vadd.f32 1.0, %v5088_v20  ;;  %5101 = verf.f32 %v1215_v28  ;;  %v1291_v57 = vmul.f32 0.70710677, %v5789_v31 }
 0x125   :  { %v5090_v40 = vpop.eup %5089  ;;  %v595_v41 = vpop.f32.mrb[17].mxu0  ;;  %3379 = vmatprep.subr.bf16.mxu1 %v4751_v39  ;;  %v1611_v44 = vmul.f32 %v1483_v1, %v5738_v5  ;;  %v5801_v63 = vmul.f32 0.5, %v584_v29  ;;  %v1231_v4 = vmul.f32 0.70710677, %v5792_v61  ;;  %v594_v11 = vadd.f32 %v593_v23, %v5656_v0 }
 0x126   :  { %v597_v54 = vpop.f32.mrb[18].mxu0  ;;  %v5805_v3 = vpop.f32.mrb[17].mxu1  ;;  %v1610_v43 = vmul.f32 %v1482_v22, %v5736_v46  ;;  %5103 = verf.f32 %v1230_v47  ;;  %v5810_v13 = vadd.f32 %v5714_v60, %v5672_v25  ;;  %v5813_v39 = vadd.f32 %v595_v41, %v5662_v19  ;;  %v4755_v46 = vld [vmem:[#allocation5 + $0x130] ss:$8 sps:$4 sm:$0xff]  }
 0x127   :  { %v5092_v15 = vpop.eup %5091  ;;  %v599_v5 = vpop.f32.mrb[19].mxu0  ;;  %v5818_v20 = vmul.f32 %v1530_v17, %v5741_v12  ;;  %v1531_v23 = vadd.f32 1.0, %v5090_v40  ;;  %5105 = verf.f32 %v1291_v57  ;;  %v5823_v60 = vmul.f32 %v1438_v32, %v5762_v10  ;;  %v4761_v57 = vld [vmem:[#allocation5 + $0x140] ss:$8 sps:$4 sm:$0xff]  }
 0x128   :  { %v5815_v29 = vpop.f32.mrb[18].mxu1  ;;  %v5094_v1 = vpop.eup %5093  ;;  %v1454_v28 = vadd.f32 1.0, %v5092_v15  ;;  %3380 = vmatpush1.bf16.msra.mxu1 %v4749_v7  ;;  %5107 = verf.f32 %v1231_v4  ;;  %v1246_v47 = vmul.f32 0.70710677, %v594_v11  ;;  %v1180_v41 = vmul.f32 0.70710677, %v5810_v13 }
 0x129   :  { %v5820_v22 = vpop.f32.mrb[19].mxu1  ;;  %7361 = vst [vmem:[#allocation15_spill] sm:$0xff] %v5823_v60  ;;  %3381 = vmatprep.subr.bf16.mxu1 %v4757_v2  ;;  %v1247_v12 = vmul.f32 0.70710677, %v5813_v39  ;;  %v1707_v17 = vpack.c.bf16 %v1611_v44, %v1595_v56  ;;  %v503_v7 = vadd.f32 %v5723_v16, %v5677_v26  ;;  %v1439_v40 = vadd.f32 1.0, %v5094_v1 }
 0x12a   :  { %v5827_v15 = vmul.f32 %v1454_v28, %v5774_v27  ;;  %5109 = verf.f32 %v1180_v41  ;;  %v598_v10 = vadd.f32 %v597_v54, %v5656_v0  ;;  %v1706_v32 = vpack.c.bf16 %v1610_v43, %v5780_v49  ;;  %v4769_v44 = vld [vmem:[#allocation5 + $0x154] ss:$8 sps:$4 sm:$0xff]   ;;  %v4767_v60 = vld [vmem:[#allocation5 + $0x150] ss:$8 sps:$4 sm:$0xff]  }
 0x12b   :  { %v5096_v4 = vpop.eup %5095  ;;  %v5837_v27 = vmul.f32 %v1531_v23, %v5752_v21  ;;  %v5840_v28 = vmul.f32 0.5, %v5777_v51  ;;  %v5842_v56 = vmul.f32 0.5, %v588_v6  ;;  %3344 = vmatprep.mubr.bf16.mxu1 %v1707_v17  ;;  %v5847_v43 = vmul.f32 0.5, %v5789_v31 }
 0x12c   :  { %7362 = vst [vmem:[#allocation16_spill] sm:$0xff] %v5827_v15  ;;  %3382 = vmatpush1.bf16.msra.mxu1 %v4755_v46  ;;  %v603_v16 = vpop.f32.mrb[20].mxu0  ;;  %v5844_v54 = vpop.f32.mrb[20].mxu1  ;;  %5111 = verf.f32 %v1246_v47  ;;  %v1181_v1 = vmul.f32 0.70710677, %v503_v7  ;;  %v5850_v6 = vmul.f32 0.5, %v5792_v61  ;;  %v505_v23 = vadd.f32 %v5727_v24, %v5672_v25 }
 0x12d   :  { %v5098_v49 = vpop.eup %5097  ;;  %v1262_v41 = vmul.f32 0.70710677, %v598_v10  ;;  %3345 = vmatmul.mubr.bf16.gmra.mrb[76].mxu1 %v1706_v32  ;;  %v605_v21 = vpop.f32.mrb[21].mxu0  ;;  %3383 = vmatprep.subr.bf16.mxu1 %v4763_v14  ;;  %5113 = verf.f32 %v1247_v12  ;;  %v600_v46 = vadd.f32 %v599_v5, %v5662_v19  ;;  %v5860_v2 = vmul.f32 %v1439_v40, %v5764_v62 }
 0x12e   :  { %v5100_v51 = vpop.eup %5099  ;;  %v5855_v17 = vpop.f32.mrb[22].mxu0  ;;  %v1455_v32 = vadd.f32 1.0, %v5096_v4  ;;  %v5862_v14 = vmul.f32 0.5, %v594_v11  ;;  %v507_v61 = vadd.f32 %v5732_v34, %v5677_v26  ;;  %v1470_v24 = vadd.f32 1.0, %v5098_v49  ;;  %v4775_v4 = vld [vmem:[#allocation5 + $0x164] ss:$8 sps:$4 sm:$0xff]  }
 0x12f   :  { %v5857_v31 = vpop.f32.mrb[21].mxu1  ;;  %v5102_v47 = vpop.eup %5101  ;;  %7363 = vst [vmem:[#allocation17_spill] sm:$0xff] %v5860_v2  ;;  %5115 = verf.f32 %v1181_v1  ;;  %v1196_v5 = vmul.f32 0.70710677, %v505_v23  ;;  %v604_v53 = vadd.f32 %v603_v16, %v5656_v0  ;;  %v1546_v40 = vadd.f32 1.0, %v5100_v51 }
 0x130   :  { %v5866_v12 = vpop.f32.mrb[23].mxu0  ;;  %v5868_v55 = vpop.f32.mrb[22].mxu1  ;;  %3384 = vmatpush1.bf16.msra.mxu1 %v4761_v57  ;;  %v5874_v11 = vmul.f32 0.5, %v5810_v13  ;;  %5117 = verf.f32 %v1262_v41  ;;  %v1263_v34 = vmul.f32 0.70710677, %v600_v46  ;;  %v1471_v52 = vadd.f32 1.0, %v5102_v47 }
 0x131   :  { %v5871_v15 = vpop.f32.mrb[23].mxu1  ;;  %v5104_v62 = vpop.eup %5103  ;;  %3385 = vmatprep.subr.bf16.mxu1 %v4769_v44  ;;  %v5877_v49 = vmul.f32 0.5, %v5813_v39  ;;  %5119 = verf.f32 %v1196_v5  ;;  %v1197_v16 = vmul.f32 0.70710677, %v507_v61  ;;  %v5880_v1 = vmul.f32 %v1455_v32, %v5794_v33  ;;  %v4773_v47 = vld [vmem:[#allocation5 + $0x160] ss:$8 sps:$4 sm:$0xff]  }
 0x132   :  { %v5106_v2 = vpop.eup %5105  ;;  %v5882_v48 = vmul.f32 0.5, %v503_v7  ;;  %v5884_v51 = vmul.f32 0.5, %v598_v10  ;;  %5121 = verf.f32 %v1263_v34  ;;  %v5887_v13 = vmul.f32 %v1470_v24, %v5801_v63 }
 0x133   :  { %v5108_v57 = vpop.eup %5107  ;;  %7364 = vst [vmem:[#allocation18_spill] sm:$0xff] %v5880_v1  ;;  %5123 = verf.f32 %v1197_v16  ;;  %v1278_v44 = vmul.f32 0.70710677, %v604_v53  ;;  %v511_v39 = vadd.f32 %v5746_v30, %v5672_v25  ;;  %v5896_v7 = vmul.f32 %v1546_v40, %v5754_v35  ;;  %v4781_v30 = vld [vmem:[#allocation5 + $0x174] ss:$8 sps:$4 sm:$0xff]  }
 0x134   :  { %7365 = vst [vmem:[#allocation19_spill] sm:$0xff] %v5887_v13  ;;  %3386 = vmatpush1.bf16.msra.mxu1 %v4767_v60  ;;  %v5891_v41 = vpop.f32.mrb[24].mxu0  ;;  %v5893_v5 = vpop.f32.mrb[24].mxu1  ;;  %v1486_v10 = vadd.f32 1.0, %v5104_v62  ;;  %v5899_v32 = vadd.f32 %v605_v21, %v5662_v19  ;;  %v1723_v63 = vpack.c.bf16 %v5783_v9, %v5769_v8  ;;  %v5908_v34 = vmul.f32 %v1471_v52, %v5840_v28 }
 0x135   :  { %v5110_v33 = vpop.eup %5109  ;;  %v5903_v24 = vpop.f32.mrb[25].mxu0  ;;  %3387 = vmatprep.subr.bf16.mxu1 %v4775_v4  ;;  %v1547_v16 = vadd.f32 1.0, %v5106_v2  ;;  %v5910_v13 = vmul.f32 0.5, %v505_v23  ;;  %v1212_v35 = vmul.f32 0.70710677, %v511_v39  ;;  %v1487_v1 = vadd.f32 1.0, %v5108_v57 }
 0x136   :  { %v5905_v60 = vpop.f32.mrb[25].mxu1  ;;  %7366 = vst [vmem:[#allocation20_spill] sm:$0xff] %v5908_v34  ;;  %v5912_v62 = vpop.f32.mrb[26].mxu0  ;;  %v5916_v9 = vmul.f32 0.5, %v600_v46  ;;  %v5918_v8 = vmul.f32 0.5, %v507_v61  ;;  %5125 = verf.f32 %v1278_v44  ;;  %3354 = vmatprep.mubr.bf16.mxu1 %v1723_v63  ;;  %v1436_v28 = vadd.f32 1.0, %v5110_v33 }
 0x137   :  { %v5914_v21 = vpop.f32.mrb[26].mxu1  ;;  %v5112_v40 = vpop.eup %5111  ;;  %v1279_v23 = vmul.f32 0.70710677, %v5899_v32  ;;  %v513_v34 = vadd.f32 %v5749_v38, %v5677_v26  ;;  %v608_v57 = vadd.f32 %v5855_v17, %v5656_v0  ;;  %v4779_v46 = vld [vmem:[#allocation5 + $0x170] ss:$8 sps:$4 sm:$0xff]   ;;  %v5930_v61 = vmul.f32 %v1486_v10, %v5842_v56 }
 0x138   :  { %7367 = vst [vmem:[#allocation21_spill] sm:$0xff] %v5914_v21  ;;  %v5920_v4 = vpop.f32.mrb[27].mxu0  ;;  %v5922_v52 = vpop.f32.mrb[27].mxu1  ;;  %3388 = vmatpush1.bf16.msra.mxu1 %v4773_v47  ;;  %v5932_v44 = vmul.f32 0.5, %v604_v53  ;;  %v1722_v63 = vpack.c.bf16 %v5772_v18, %v5759_v59  ;;  %v515_v33 = vadd.f32 %v5756_v50, %v5672_v25  ;;  %v5939_v38 = vmul.f32 %v1547_v16, %v5847_v43  ;;  %v4785_v16 = vld [vmem:[#allocation5 + $0x180] ss:$8 sps:$4 sm:$0xff]  }
 0x139   :  { %7368 = vst [vmem:[#allocation22_spill] sm:$0xff] %v5922_v52  ;;  %v5114_v2 = vpop.eup %5113  ;;  %7369 = vst [vmem:[#allocation23_spill] sm:$0xff] %v5930_v61  ;;  %3389 = vmatprep.subr.bf16.mxu1 %v4781_v30  ;;  %v4787_v52 = vld [vmem:[#allocation5 + $0x184] ss:$8 sps:$4 sm:$0xff]   ;;  %v1502_v0 = vadd.f32 1.0, %v5112_v40  ;;  %5127 = verf.f32 %v1212_v35  ;;  %v5942_v56 = vmul.f32 %v1487_v1, %v5850_v6  ;;  %v5944_v10 = vmul.f32 0.5, %v511_v39 }
 0x13a   :  { %v5116_v21 = vpop.eup %5115  ;;  %v1213_v17 = vmul.f32 0.70710677, %v513_v34  ;;  %v1503_v53 = vadd.f32 1.0, %v5114_v2  ;;  %v1294_v59 = vmul.f32 0.70710677, %v608_v57  ;;  %3355 = vmatmul.mubr.bf16.gmra.mrb[80].mxu1 %v1722_v63  ;;  %v5947_v50 = vmul.f32 %v1436_v28, %v5874_v11 }
 0x13b   :  { %v5118_v47 = vpop.eup %5117  ;;  %7370 = vst [vmem:[#allocation24_spill] sm:$0xff] %v5942_v56  ;;  %5129 = verf.f32 %v1279_v23  ;;  %v610_v43 = vadd.f32 %v5866_v12, %v5662_v19  ;;  %v517_v30 = vadd.f32 %v5766_v58, %v5677_v26  ;;  %v4793_v6 = vld [vmem:[#allocation5 + $0x194] ss:$8 sps:$4 sm:$0xff]   ;;  %v1228_v2 = vmul.f32 0.70710677, %v515_v33 }
 0x13c   :  { %v5120_v18 = vpop.eup %5119  ;;  %3390 = vmatpush1.bf16.msra.mxu1 %v4779_v46  ;;  %v5953_v1 = vpop.f32.mrb[28].mxu0  ;;  %5131 = verf.f32 %v1213_v17  ;;  %v720_v11 = vadd.f32 %v5891_v41, %v5686_v37  ;;  %v5964_v12 = vmul.f32 %v1502_v0, %v5862_v14  ;;  %v5967_v23 = vmul.f32 0.5, %v5899_v32  ;;  %v4791_v63 = vld [vmem:[#allocation5 + $0x190] ss:$8 sps:$4 sm:$0xff]  }
 0x13d   :  { %v5955_v39 = vpop.f32.mrb[28].mxu1  ;;  %v5122_v35 = vpop.eup %5121  ;;  %v1452_v40 = vadd.f32 1.0, %v5120_v18  ;;  %3391 = vmatprep.subr.bf16.mxu1 %v4787_v52  ;;  %5133 = verf.f32 %v1294_v59  ;;  %v1295_v46 = vmul.f32 0.70710677, %v610_v43  ;;  %v5974_v41 = vmul.f32 %v1503_v53, %v5877_v49 }
 0x13e   :  { %v5959_v28 = vpop.f32.mrb[29].mxu0  ;;  %v5961_v19 = vpop.f32.mrb[29].mxu1  ;;  %7371 = vst [vmem:[#allocation25_spill] sm:$0xff] %v5964_v12  ;;  %v1437_v52 = vadd.f32 1.0, %v5116_v21  ;;  %v1229_v56 = vmul.f32 0.70710677, %v517_v30  ;;  %5135 = verf.f32 %v1228_v2  ;;  %v726_v49 = vadd.f32 %v5920_v4, %v5692_v42 }
 0x13f   :  { %v5124_v58 = vpop.eup %5123  ;;  %v5969_v17 = vpop.f32.mrb[30].mxu0  ;;  %7374 = vst [vmem:[#allocation28_spill] sm:$0xff] %v5974_v41  ;;  %v5977_v61 = vmul.f32 %v1452_v40, %v5910_v13  ;;  %v1518_v32 = vadd.f32 1.0, %v5118_v47  ;;  %v5983_v59 = vmul.f32 0.5, %v513_v34  ;;  %v5985_v12 = vmul.f32 0.5, %v608_v57 }
 0x140   :  { %7372 = vst [vmem:[#allocation26_spill] sm:$0xff] %v5969_v17  ;;  %v5971_v18 = vpop.f32.mrb[30].mxu1  ;;  %v5979_v14 = vpop.f32.mrb[31].mxu0  ;;  %v1186_v17 = vmul.f32 0.70710677, %v720_v11  ;;  %3392 = vmatpush1.bf16.msra.mxu1 %v4785_v16  ;;  %v1519_v21 = vadd.f32 1.0, %v5122_v35  ;;  %5137 = verf.f32 %v1295_v46  ;;  %v521_v40 = vadd.f32 %v5796_v36, %v5672_v25 }
 0x141   :  { %7373 = vst [vmem:[#allocation27_spill] sm:$0xff] %v5971_v18  ;;  %v5981_v0 = vpop.f32.mrb[31].mxu1  ;;  %v5126_v18 = vpop.eup %5125  ;;  %v1453_v53 = vadd.f32 1.0, %v5124_v58  ;;  %3393 = vmatprep.subr.bf16.mxu1 %v4793_v6  ;;  %v4799_v13 = vld [vmem:[#allocation5 + $0x1a4] ss:$8 sps:$4 sm:$0xff]   ;;  %v722_v34 = vadd.f32 %v5903_v24, %v5692_v42  ;;  %v1739_v57 = vpack.c.bf16 %v5939_v38, %v5837_v27  ;;  %v5995_v47 = vmul.f32 0.5, %v515_v33 }
 0x142   :  { %5139 = verf.f32 %v1229_v56  ;;  %v523_v16 = vadd.f32 %v5805_v3, %v5677_v26  ;;  %v6001_v6 = vadd.f32 %v5912_v62, %v5686_v37  ;;  %v6004_v2 = vmul.f32 %v1437_v52, %v5882_v48  ;;  %v4797_v27 = vld [vmem:[#allocation5 + $0x1a0] ss:$8 sps:$4 sm:$0xff]   ;;  %v4805_v33 = vld [vmem:[#allocation5 + $0x1b4] ss:$8 sps:$4 sm:$0xff]  }
 0x143   :  { %v5128_v35 = vpop.eup %5127  ;;  %v6007_v36 = vmul.f32 %v1518_v32, %v5884_v51  ;;  %v1534_v24 = vadd.f32 1.0, %v5126_v18  ;;  %5141 = verf.f32 %v1186_v17  ;;  %3364 = vmatprep.mubr.bf16.mxu1 %v1739_v57  ;;  %v6011_v3 = vmul.f32 0.5, %v610_v43 }
 0x144   :  { %3394 = vmatpush1.bf16.msra.mxu1 %v4791_v63  ;;  %v6009_v38 = vpop.f32.mrb[32].mxu0  ;;  %v6013_v56 = vmul.f32 0.5, %v517_v30  ;;  %v6015_v62 = vmul.f32 0.5, %v720_v11  ;;  %v1187_v58 = vmul.f32 0.70710677, %v722_v34  ;;  %v6017_v48 = vpop.f32.mrb[32].mxu1  ;;  %v6020_v46 = vmul.f32 %v1519_v21, %v5916_v9 }
 0x145   :  { %7375 = vst [vmem:[#allocation29_spill] sm:$0xff] %v6007_v36  ;;  %3395 = vmatprep.subr.bf16.mxu1 %v4799_v13  ;;  %v5130_v51 = vpop.eup %5129  ;;  %v6023_v63 = vmul.f32 %v1453_v53, %v5918_v8  ;;  %v1244_v17 = vmul.f32 0.70710677, %v521_v40  ;;  %v1202_v18 = vmul.f32 0.70710677, %v6001_v6  ;;  %v6026_v43 = vpop.f32.mrb[33].mxu0  ;;  %v1738_v13 = vpack.c.bf16 %v5896_v7, %v5818_v20 }
 0x146   :  { %7376 = vst [vmem:[#allocation30_spill] sm:$0xff] %v6020_v46  ;;  %v6028_v30 = vpop.f32.mrb[33].mxu1  ;;  %v5132_v11 = vpop.eup %5131  ;;  %v1468_v52 = vadd.f32 1.0, %v5128_v35  ;;  %v1245_v32 = vmul.f32 0.70710677, %v523_v16  ;;  %v525_v9 = vadd.f32 %v5815_v29, %v5672_v25  ;;  %v6039_v57 = vmul.f32 %v1534_v24, %v5932_v44 }
 0x147   :  { %v6034_v21 = vpop.f32.mrb[34].mxu0  ;;  %v6036_v8 = vpop.f32.mrb[34].mxu1  ;;  %5143 = verf.f32 %v1187_v58  ;;  %v6045_v35 = vadd.f32 %v5820_v22, %v5677_v26  ;;  %v4803_v20 = vld [vmem:[#allocation5 + $0x1b0] ss:$8 sps:$4 sm:$0xff]   ;;  %v1535_v36 = vadd.f32 1.0, %v5130_v51  ;;  %v6051_v46 = vmul.f32 0.5, %v521_v40  ;;  %3365 = vmatmul.mubr.bf16.gmra.mrb[84].mxu1 %v1738_v13 }
 0x148   :  { %v5134_v53 = vpop.eup %5133  ;;  %7377 = vst [vmem:[#allocation31_spill] sm:$0xff] %v6039_v57  ;;  %3396 = vmatpush1.bf16.msra.mxu1 %v4797_v27  ;;  %v6047_v7 = vpop.f32.mrb[35].mxu0  ;;  %v6053_v41 = vmul.f32 0.5, %v722_v34  ;;  %5145 = verf.f32 %v1202_v18  ;;  %v4811_v44 = vld [vmem:[#allocation5 + $0x1c4] ss:$8 sps:$4 sm:$0xff]   ;;  %v1469_v4 = vadd.f32 1.0, %v5132_v11  ;;  %v6056_v27 = vmul.f32 %v1468_v52, %v5944_v10 }
 0x149   :  { %7378 = vst [vmem:[#allocation32_spill] sm:$0xff] %v6047_v7  ;;  %v6049_v29 = vpop.f32.mrb[35].mxu1  ;;  %3397 = vmatprep.subr.bf16.mxu1 %v4805_v33  ;;  %5147 = verf.f32 %v1244_v17  ;;  %v1260_v24 = vmul.f32 0.70710677, %v525_v9  ;;  %v1203_v22 = vmul.f32 0.70710677, %v726_v49  ;;  %v5136_v58 = vpop.eup %5135  ;;  %v531_v33 = vadd.f32 %v5844_v54, %v5672_v25 }
 0x14a   :  { %7379 = vst [vmem:[#allocation33_spill] sm:$0xff] %v6056_v27  ;;  %v1550_v57 = vadd.f32 1.0, %v5134_v53  ;;  %v6058_v7 = vmul.f32 0.5, %v523_v16  ;;  %5149 = verf.f32 %v1245_v32  ;;  %v5138_v40 = vpop.eup %5137  ;;  %v1261_v34 = vmul.f32 0.70710677, %v6045_v35 }
 0x14b   :  { %5151 = verf.f32 %v1260_v24  ;;  %v6065_v51 = vadd.f32 %v5857_v31, %v5677_v26  ;;  %v4809_v17 = vld [vmem:[#allocation5 + $0x1c0] ss:$8 sps:$4 sm:$0xff]   ;;  %v6072_v11 = vmul.f32 %v1535_v36, %v5967_v23  ;;  %v1074_v52 = vmul.f32 0.5, %v6001_v6  ;;  %v4817_v32 = vld [vmem:[#allocation5 + $0x1d4] ss:$8 sps:$4 sm:$0xff]  }
 0x14c   :  { %3398 = vmatpush1.bf16.msra.mxu1 %v4803_v20  ;;  %v6067_v18 = vpop.f32.mrb[36].mxu0  ;;  %v6069_v10 = vpop.f32.mrb[36].mxu1  ;;  %5153 = verf.f32 %v1203_v22  ;;  %v1693_v54 = vpack.c.bf16 %v6023_v63, %v6004_v2  ;;  %v6082_v20 = vmul.f32 %v1469_v4, %v5983_v59  ;;  %v1484_v24 = vadd.f32 1.0, %v5136_v58 }
 0x14d   :  { %v5140_v16 = vpop.eup %5139  ;;  %7380 = vst [vmem:[#allocation34_spill] sm:$0xff] %v6072_v11  ;;  %3399 = vmatprep.subr.bf16.mxu1 %v4811_v44  ;;  %v6077_v31 = vpop.f32.mrb[37].mxu0  ;;  %v6084_v27 = vmul.f32 0.5, %v525_v9  ;;  %v1276_v23 = vmul.f32 0.70710677, %v531_v33  ;;  %v6091_v2 = vmul.f32 %v1550_v57, %v5985_v12  ;;  %v1551_v63 = vadd.f32 1.0, %v5138_v40 }
 0x14e   :  { %v6079_v13 = vpop.f32.mrb[37].mxu1  ;;  %v5142_v53 = vpop.eup %5141  ;;  %v1277_v44 = vmul.f32 0.70710677, %v6065_v51  ;;  %3407 = vmatprep.mubr.bf16.mxu1 %v1693_v54  ;;  %v535_v22 = vadd.f32 %v5868_v55, %v5672_v25  ;;  %v1485_v9 = vadd.f32 1.0, %v5140_v16  ;;  %5155 = verf.f32 %v1261_v34  ;;  %v4815_v57 = vld [vmem:[#allocation5 + $0x1d0] ss:$8 sps:$4 sm:$0xff]  }
 0x14f   :  { %v6086_v36 = vpop.f32.mrb[38].mxu0  ;;  %v6088_v6 = vpop.f32.mrb[38].mxu1  ;;  %7382 = vst [vmem:[#allocation36_spill] sm:$0xff] %v6091_v2  ;;  %v537_v58 = vadd.f32 %v5871_v15, %v5677_v26  ;;  %v6104_v12 = vadd.f32 %v5893_v5, %v5698_v45  ;;  %v1442_v40 = vadd.f32 1.0, %v5142_v53  ;;  %v1075_v54 = vmul.f32 0.5, %v726_v49  ;;  %v7386_v16 = vld [vmem:[#allocation14_spill] sm:$0xff] }
 0x150   :  { %7381 = vst [vmem:[#allocation35_spill] sm:$0xff] %v6088_v6  ;;  %v6096_v59 = vpop.f32.mrb[39].mxu0  ;;  %v6098_v4 = vpop.f32.mrb[39].mxu1  ;;  %3400 = vmatpush1.bf16.msra.mxu1 %v4809_v17  ;;  %5157 = verf.f32 %v1276_v23  ;;  %v1292_v2 = vmul.f32 0.70710677, %v535_v22  ;;  %v6107_v11 = vmul.f32 %v1484_v24, %v5995_v47  ;;  %v6111_v26 = vadd.f32 %v5905_v60, %v7386_v16 }
 0x151   :  { %7383 = vst [vmem:[#allocation37_spill] sm:$0xff] %v6096_v59  ;;  %7384 = vst [vmem:[#allocation38_spill] sm:$0xff] %v6098_v4  ;;  %3401 = vmatprep.subr.bf16.mxu1 %v4817_v32  ;;  %v4823_v55 = vld [vmem:[#allocation5 + $0x1e4] ss:$8 sps:$4 sm:$0xff]   ;;  %v5144_v25 = vpop.eup %5143  ;;  %5159 = verf.f32 %v1277_v44  ;;  %v1293_v34 = vmul.f32 0.70710677, %v537_v58  ;;  %v6114_v5 = vmul.f32 %v1551_v63, %v6011_v3  ;;  %v6121_v47 = vmul.f32 %v1485_v9, %v6013_v56 }
 0x152   :  { %7385 = vst [vmem:[#allocation39_spill] sm:$0xff] %v6107_v11  ;;  %v5146_v15 = vpop.eup %5145  ;;  %v6117_v49 = vmul.f32 0.5, %v6045_v35  ;;  %5161 = verf.f32 %v1292_v2  ;;  %v1184_v17 = vmul.f32 0.70710677, %v6104_v12  ;;  %v6123_v24 = vmul.f32 0.5, %v531_v33  ;;  %v7390_v44 = vld [vmem:[#allocation21_spill] sm:$0xff] }
 0x153   :  { %7387 = vst [vmem:[#allocation14_spill] sm:$0xff] %v6114_v5  ;;  %v5148_v32 = vpop.eup %5147  ;;  %v1458_v53 = vadd.f32 1.0, %v5146_v15  ;;  %5163 = verf.f32 %v1293_v34  ;;  %v4821_v60 = vld [vmem:[#allocation5 + $0x1e0] ss:$8 sps:$4 sm:$0xff]   ;;  %v6130_v35 = vmul.f32 %v1442_v40, %v6015_v62  ;;  %v1443_v2 = vadd.f32 1.0, %v5144_v25 }
 0x154   :  { %3402 = vmatpush1.bf16.msra.mxu1 %v4815_v57  ;;  %v6125_v23 = vpop.f32.mrb[40].mxu1  ;;  %v6127_v3 = vpop.f32.mrb[40].mxu0  ;;  %5165 = verf.f32 %v1184_v17  ;;  %v651_v56 = vadd.f32 %v7390_v44, %v5698_v45  ;;  %v4829_v9 = vld [vmem:[#allocation5 + $0x1f4] ss:$8 sps:$4 sm:$0xff]   ;;  %v1185_v5 = vmul.f32 0.70710677, %v6111_v26  ;;  %v730_v40 = vadd.f32 %v5953_v1, %v5686_v37 }
 0x155   :  { %7388 = vst [vmem:[#allocation40_spill] sm:$0xff] %v6125_v23  ;;  %7389 = vst [vmem:[#allocation41_spill] sm:$0xff] %v6127_v3  ;;  %v5150_v63 = vpop.eup %5149  ;;  %3403 = vmatprep.subr.bf16.mxu1 %v4823_v55  ;;  %v6134_v33 = vpop.f32.mrb[41].mxu1  ;;  %v6138_v15 = vmul.f32 %v1458_v53, %v1074_v52  ;;  %v7393_v3 = vld [vmem:[#allocation22_spill] sm:$0xff]  ;;  %v1500_v44 = vadd.f32 1.0, %v5148_v32  ;;  %v657_v52 = vadd.f32 %v5955_v39, %v5698_v45  ;;  %v6160_v23 = vmul.f32 0.5, %v535_v22 }
 0x156   :  { %7391 = vst [vmem:[#allocation21_spill] sm:$0xff] %v6134_v33  ;;  %v6136_v34 = vpop.f32.mrb[41].mxu0  ;;  %v5152_v57 = vpop.eup %5151  ;;  %v653_v62 = vadd.f32 %v7393_v3, %v7386_v16  ;;  %v6150_v33 = vmul.f32 0.5, %v6065_v51  ;;  %v1501_v3 = vadd.f32 1.0, %v5150_v63  ;;  %v4827_v32 = vld [vmem:[#allocation5 + $0x1f0] ss:$8 sps:$4 sm:$0xff]   ;;  %v1571_v51 = vmul.f32 %v1443_v2, %v6053_v41 }
 0x157   :  { %7392 = vst [vmem:[#allocation42_spill] sm:$0xff] %v6136_v34  ;;  %v6145_v25 = vpop.f32.mrb[42].mxu1  ;;  %v6147_v17 = vpop.f32.mrb[42].mxu0  ;;  %v1200_v34 = vmul.f32 0.70710677, %v651_v56  ;;  %v1698_v1 = vpack.c.bf16 %v6138_v15, %v6130_v35  ;;  %v1516_v6 = vadd.f32 1.0, %v5152_v57  ;;  %v6166_v22 = vmul.f32 %v1500_v44, %v6051_v46 }
 0x158   :  { %7394 = vst [vmem:[#allocation22_spill] sm:$0xff] %v6145_v25  ;;  %7395 = vst [vmem:[#allocation43_spill] sm:$0xff] %v6147_v17  ;;  %v5154_v55 = vpop.eup %5153  ;;  %v6154_v53 = vpop.f32.mrb[43].mxu1  ;;  %3404 = vmatpush1.bf16.msra.mxu1 %v4821_v60  ;;  %v6163_v17 = vmul.f32 0.5, %v537_v58  ;;  %v1201_v11 = vmul.f32 0.70710677, %v653_v62  ;;  %v6173_v58 = vadd.f32 %v5959_v28, %v5692_v42  ;;  %v6183_v46 = vadd.f32 %v5961_v19, %v7386_v16 }
 0x159   :  { %7396 = vst [vmem:[#allocation44_spill] sm:$0xff] %v6154_v53  ;;  %v6156_v4 = vpop.f32.mrb[43].mxu0  ;;  %v1459_v25 = vadd.f32 1.0, %v5154_v55  ;;  %5167 = verf.f32 %v1200_v34  ;;  %3405 = vmatprep.subr.bf16.mxu1 %v4829_v9  ;;  %v4835_v39 = vld [vmem:[#allocation5 + $0x204] ss:$8 sps:$4 sm:$0xff]   ;;  %v5156_v53 = vpop.eup %5155  ;;  %v6169_v60 = vmul.f32 0.5, %v6104_v12  ;;  %v6176_v34 = vmul.f32 %v1501_v3, %v6058_v7 }
 0x15a   :  { %7397 = vst [vmem:[#allocation45_spill] sm:$0xff] %v6156_v4  ;;  %5169 = verf.f32 %v1185_v5  ;;  %v1218_v63 = vmul.f32 0.70710677, %v730_v40  ;;  %v4812_v59 = vld [vmem:[#allocation5 + $0x500] ss:$8 sps:$4 sm:$0xff]   ;;  %v5158_v35 = vpop.eup %5157  ;;  %v6187_v55 = vmul.f32 0.5, %v651_v56  ;;  %v6193_v44 = vmul.f32 %v1516_v6, %v6084_v27 }
 0x15b   :  { %v1587_v4 = vmul.f32 %v1459_v25, %v1075_v54  ;;  %v1216_v41 = vmul.f32 0.70710677, %v657_v52  ;;  %v4820_v2 = vld [vmem:[#allocation5 + $0x514] ss:$8 sps:$4 sm:$0xff]   ;;  %v5160_v9 = vpop.eup %5159  ;;  %v6179_v54 = vmul.f32 0.5, %v6111_v26  ;;  %v1517_v25 = vadd.f32 1.0, %v5156_v53 }
 0x15c   :  { %3406 = vmatpush1.bf16.msra.mxu1 %v4827_v32  ;;  %v4833_v12 = vld [vmem:[#allocation5 + $0x200] ss:$8 sps:$4 sm:$0xff]   ;;  %v4841_v57 = vld [vmem:[#allocation5 + $0x214] ss:$8 sps:$4 sm:$0xff]   ;;  %v6185_v15 = vpop.f32.mrb[44].mxu1  ;;  %v5162_v28 = vpop.eup %5161  ;;  %5171 = verf.f32 %v1201_v11  ;;  %v6195_v19 = vmul.f32 0.5, %v653_v62 }
 0x15d   :  { %v1699_v5 = vpack.c.bf16 %v1587_v4, %v1571_v51  ;;  %v1219_v7 = vmul.f32 0.70710677, %v6173_v58  ;;  %3448 = vmatprep.subr.bf16.mxu1 %v4835_v39  ;;  %v6190_v26 = vpop.f32.mrb[45].mxu1  ;;  %v5164_v4 = vpop.eup %5163  ;;  %5173 = verf.f32 %v1218_v63  ;;  %v1217_v3 = vmul.f32 0.70710677, %v6183_v46  ;;  %v7401_v51 = vld [vmem:[#allocation26_spill] sm:$0xff] }
 0x15e   :  { %7398 = vst [vmem:[#allocation46_spill] sm:$0xff] %v6190_v26  ;;  %v6198_v32 = vpop.f32.mrb[46].mxu1  ;;  %v6200_v56 = vpop.f32.mrb[44].mxu0  ;;  %v6202_v53 = vmul.f32 0.5, %v730_v40  ;;  %5175 = verf.f32 %v1216_v41  ;;  %v6206_v39 = vadd.f32 %v7401_v51, %v5686_v37  ;;  %v7402_v27 = vld [vmem:[#allocation27_spill] sm:$0xff]  ;;  %v1532_v40 = vadd.f32 1.0, %v5158_v35 }
 0x15f   :  { %3626 = vmatprep.mubr.bf16.mxu0 %v1699_v5  ;;  %7399 = vst [vmem:[#allocation47_spill] sm:$0xff] %v6198_v32  ;;  %7400 = vst [vmem:[#allocation48_spill] sm:$0xff] %v6200_v56  ;;  %v5166_v11 = vpop.eup %5165  ;;  %v6210_v6 = vadd.f32 %v7402_v27, %v5698_v45  ;;  %v4818_v62 = vld [vmem:[#allocation5 + $0x510] ss:$8 sps:$4 sm:$0xff]   ;;  %v4826_v63 = vld [vmem:[#allocation5 + $0x524] ss:$8 sps:$4 sm:$0xff]   ;;  %v7403_v5 = vpack.c.bf16 %v5977_v61, %v5947_v50  ;;  %v6226_v26 = vmul.f32 %v1517_v25, %v6117_v49 }
 0x160   :  { %3627 = vmatmul.mubr.bf16.vlgmr.msra.gmra.mrb[72].mxu0 %v1698_v1  ;;  %v6215_v56 = vpop.f32.mrb[47].mxu1  ;;  %v1440_v32 = vadd.f32 1.0, %v5166_v11  ;;  %v6217_v41 = vmul.f32 0.5, %v657_v52  ;;  %v6221_v1 = vadd.f32 %v5979_v14, %v5692_v42  ;;  %v4839_v51 = vld [vmem:[#allocation5 + $0x210] ss:$8 sps:$4 sm:$0xff]   ;;  %v6223_v27 = vpop.f32.mrb[45].mxu0  ;;  %5177 = verf.f32 %v1219_v7 }
 0x161   :  { %3408 = vmatmul.mubr.bf16.vlgmr.msra.gmra.mrb[72].mxu1 %v7403_v5  ;;  %3668 = vmatpush1.bf16.msra.mxu0 %v4812_v59  ;;  %7404 = vst [vmem:[#allocation26_spill] sm:$0xff] %v6223_v27  ;;  %v1533_v61 = vadd.f32 1.0, %v5160_v9  ;;  %v1234_v50 = vmul.f32 0.70710677, %v6206_v39  ;;  %v4847_v52 = vld [vmem:[#allocation5 + $0x224] ss:$8 sps:$4 sm:$0xff]   ;;  %5179 = verf.f32 %v1217_v3  ;;  %v663_v49 = vadd.f32 %v5981_v0, %v7386_v16 }
 0x162   :  { %3449 = vmatpush1.bf16.msra.mxu1 %v4833_v12  ;;  %3669 = vmatprep.subr.bf16.mxu0 %v4820_v2  ;;  %v1548_v35 = vadd.f32 1.0, %v5162_v28  ;;  %v1549_v59 = vadd.f32 1.0, %v5164_v4  ;;  %v1232_v14 = vmul.f32 0.70710677, %v6210_v6  ;;  %v1235_v12 = vmul.f32 0.70710677, %v6221_v1 }
 0x163   :  { %3450 = vmatprep.subr.bf16.mxu1 %v4841_v57  ;;  %v5168_v11 = vpop.eup %5167  ;;  %5181 = verf.f32 %v1234_v50  ;;  %v6235_v9 = vadd.f32 %v6009_v38, %v5686_v37  ;;  %v4824_v25 = vld [vmem:[#allocation5 + $0x520] ss:$8 sps:$4 sm:$0xff]   ;;  %v4832_v2 = vld [vmem:[#allocation5 + $0x534] ss:$8 sps:$4 sm:$0xff]   ;;  %v6238_v28 = vmul.f32 %v1532_v40, %v6123_v24  ;;  %v6241_v7 = vmul.f32 %v1440_v32, %v6169_v60 }
 0x164   :  { %v5170_v57 = vpop.eup %5169  ;;  %v1456_v4 = vadd.f32 1.0, %v5168_v11  ;;  %v6245_v3 = vadd.f32 %v6017_v48, %v5698_v45  ;;  %v4845_v0 = vld [vmem:[#allocation5 + $0x220] ss:$8 sps:$4 sm:$0xff]   ;;  %v4853_v5 = vld [vmem:[#allocation5 + $0x234] ss:$8 sps:$4 sm:$0xff]   ;;  %v6247_v38 = vpop.f32.mrb[48].mxu1  ;;  %v6250_v50 = vmul.f32 %v1533_v61, %v6150_v33  ;;  %v6263_v40 = vmul.f32 %v1548_v35, %v6160_v23 }
 0x165   :  { %7405 = vst [vmem:[#allocation27_spill] sm:$0xff] %v6241_v7  ;;  %3670 = vmatpush1.bf16.msra.mxu0 %v4818_v62  ;;  %v6253_v24 = vmul.f32 0.5, %v6173_v58  ;;  %v6256_v60 = vmul.f32 0.5, %v6183_v46  ;;  %v1233_v32 = vmul.f32 0.70710677, %v663_v49  ;;  %v6258_v62 = vpop.f32.mrb[49].mxu1  ;;  %5183 = verf.f32 %v1232_v14 }
 0x166   :  { %3451 = vmatpush1.bf16.msra.mxu1 %v4839_v51  ;;  %3671 = vmatprep.subr.bf16.mxu0 %v4826_v63  ;;  %v6260_v48 = vpop.f32.mrb[46].mxu0  ;;  %v6266_v51 = vmul.f32 %v1456_v4, %v6187_v55  ;;  %v1250_v33 = vmul.f32 0.70710677, %v6235_v9  ;;  %v6269_v58 = vpop.f32.mrb[50].mxu1  ;;  %v6274_v63 = vmul.f32 %v1549_v59, %v6163_v17  ;;  %5185 = verf.f32 %v1235_v12  ;;  %v4830_v17 = vld [vmem:[#allocation5 + $0x530] ss:$8 sps:$4 sm:$0xff]  }
 0x167   :  { %3452 = vmatprep.subr.bf16.mxu1 %v4847_v52  ;;  %7406 = vst [vmem:[#allocation49_spill] sm:$0xff] %v6260_v48  ;;  %v6271_v46 = vpop.f32.mrb[47].mxu0  ;;  %v5172_v61 = vpop.eup %5171  ;;  %v1441_v52 = vadd.f32 1.0, %v5170_v57  ;;  %v1248_v11 = vmul.f32 0.70710677, %v6245_v3  ;;  %v6282_v14 = vmul.f32 0.5, %v6206_v39  ;;  %5187 = verf.f32 %v1233_v32 }
 0x168   :  { %7407 = vst [vmem:[#allocation50_spill] sm:$0xff] %v6266_v51  ;;  %7408 = vst [vmem:[#allocation51_spill] sm:$0xff] %v6271_v46  ;;  %v6277_v23 = vpop.f32.mrb[51].mxu1  ;;  %v5174_v35 = vpop.eup %5173  ;;  %v742_v4 = vadd.f32 %v6026_v43, %v5692_v42  ;;  %v4851_v59 = vld [vmem:[#allocation5 + $0x230] ss:$8 sps:$4 sm:$0xff]   ;;  %v6289_v46 = vmul.f32 0.5, %v6210_v6  ;;  %5189 = verf.f32 %v1250_v33  ;;  %v669_v55 = vadd.f32 %v6028_v30, %v7386_v16 }
 0x169   :  { %7409 = vst [vmem:[#allocation52_spill] sm:$0xff] %v6277_v23  ;;  %3672 = vmatpush1.bf16.msra.mxu0 %v4824_v25  ;;  %v6286_v12 = vpop.f32.mrb[48].mxu0  ;;  %v5176_v57 = vpop.eup %5175  ;;  %v744_v39 = vadd.f32 %v6034_v21, %v5686_v37  ;;  %v4838_v32 = vld [vmem:[#allocation5 + $0x544] ss:$8 sps:$4 sm:$0xff]   ;;  %v1457_v25 = vadd.f32 1.0, %v5172_v61  ;;  %5191 = verf.f32 %v1248_v11  ;;  %v6299_v33 = vmul.f32 %v1441_v52, %v6179_v54 }
 0x16a   :  { %3453 = vmatpush1.bf16.msra.mxu1 %v4845_v0  ;;  %7410 = vst [vmem:[#allocation53_spill] sm:$0xff] %v6286_v12  ;;  %3673 = vmatprep.subr.bf16.mxu0 %v4832_v2  ;;  %v4859_v43 = vld [vmem:[#allocation5 + $0x244] ss:$8 sps:$4 sm:$0xff]   ;;  %v6296_v0 = vmul.f32 0.5, %v6221_v1  ;;  %v1251_v7 = vmul.f32 0.70710677, %v742_v4  ;;  %v5178_v12 = vpop.eup %5177  ;;  %v671_v11 = vadd.f32 %v6036_v8, %v5698_v45 }
 0x16b   :  { %3454 = vmatprep.subr.bf16.mxu1 %v4853_v5  ;;  %v4836_v51 = vld [vmem:[#allocation5 + $0x540] ss:$8 sps:$4 sm:$0xff]   ;;  %7411 = vst [vmem:[#allocation54_spill] sm:$0xff] %v6299_v33  ;;  %v1474_v30 = vadd.f32 1.0, %v5174_v35  ;;  %v6301_v48 = vmul.f32 0.5, %v663_v49  ;;  %v6303_v27 = vpop.f32.mrb[49].mxu0  ;;  %v5180_v5 = vpop.eup %5179 }
 0x16c   :  { %v4857_v6 = vld [vmem:[#allocation5 + $0x240] ss:$8 sps:$4 sm:$0xff]   ;;  %v1249_v21 = vmul.f32 0.70710677, %v669_v55  ;;  %v4844_v2 = vld [vmem:[#allocation5 + $0x554] ss:$8 sps:$4 sm:$0xff]   ;;  %5193 = verf.f32 %v1251_v7 }
 0x16d   :  { %7412 = vst [vmem:[#allocation55_spill] sm:$0xff] %v6303_v27  ;;  %v1472_v61 = vadd.f32 1.0, %v5176_v57  ;;  %v1266_v1 = vmul.f32 0.70710677, %v744_v39  ;;  %3674 = vmatpush1.bf16.msra.mxu0 %v4830_v17  ;;  %v6307_v23 = vpop.f32.mrb[52].mxu1  ;;  %v6309_v54 = vpop.f32.mrb[50].mxu0 }
 0x16e   :  { %3455 = vmatpush1.bf16.msra.mxu1 %v4851_v59  ;;  %7413 = vst [vmem:[#allocation56_spill] sm:$0xff] %v6309_v54  ;;  %v5182_v52 = vpop.eup %5181  ;;  %v6312_v49 = vmul.f32 0.5, %v6235_v9  ;;  %v6315_v35 = vmul.f32 0.5, %v6245_v3  ;;  %5195 = verf.f32 %v1249_v21  ;;  %v7414_v7 = vld [vmem:[#allocation32_spill] sm:$0xff]  ;;  %3675 = vmatprep.subr.bf16.mxu0 %v4838_v32  ;;  %v4865_v8 = vld [vmem:[#allocation5 + $0x254] ss:$8 sps:$4 sm:$0xff]   ;;  %v6324_v54 = vmul.f32 %v1457_v25, %v6195_v19 }
 0x16f   :  { %v746_v57 = vadd.f32 %v7414_v7, %v5692_v42  ;;  %3456 = vmatprep.subr.bf16.mxu1 %v4859_v43  ;;  %v6319_v17 = vpop.f32.mrb[53].mxu1  ;;  %v6321_v59 = vpop.f32.mrb[51].mxu0  ;;  %v1475_v27 = vadd.f32 1.0, %v5178_v12  ;;  %v1264_v9 = vmul.f32 0.70710677, %v671_v11  ;;  %v673_v3 = vadd.f32 %v6049_v29, %v7386_v16 }
 0x170   :  { %7415 = vst [vmem:[#allocation32_spill] sm:$0xff] %v6319_v17  ;;  %7416 = vst [vmem:[#allocation57_spill] sm:$0xff] %v6321_v59  ;;  %v6328_v33 = vpop.f32.mrb[54].mxu1  ;;  %v6330_v21 = vpop.f32.mrb[52].mxu0  ;;  %v6333_v32 = vmul.f32 %v1474_v30, %v6202_v53  ;;  %v1473_v43 = vadd.f32 1.0, %v5180_v5  ;;  %5197 = verf.f32 %v1266_v1  ;;  %v6338_v12 = vmul.f32 %v1472_v61, %v6217_v41 }
 0x171   :  { %7417 = vst [vmem:[#allocation58_spill] sm:$0xff] %v6324_v54  ;;  %7418 = vst [vmem:[#allocation59_spill] sm:$0xff] %v6330_v21  ;;  %v1267_v7 = vmul.f32 0.70710677, %v746_v57  ;;  %v4842_v17 = vld [vmem:[#allocation5 + $0x550] ss:$8 sps:$4 sm:$0xff]   ;;  %v5184_v19 = vpop.eup %5183  ;;  %3676 = vmatpush1.bf16.msra.mxu0 %v4836_v51  ;;  %v750_v1 = vadd.f32 %v6067_v18, %v5686_v37  ;;  %v677_v41 = vadd.f32 %v6069_v10, %v5698_v45 }
 0x172   :  { %v6335_v59 = vpop.f32.mrb[55].mxu1  ;;  %7420 = vst [vmem:[#allocation61_spill] sm:$0xff] %v6338_v12  ;;  %v1490_v25 = vadd.f32 1.0, %v5182_v52  ;;  %v6340_v54 = vmul.f32 0.5, %v742_v4  ;;  %v6342_v29 = vmul.f32 0.5, %v669_v55  ;;  %3457 = vmatpush1.bf16.msra.mxu1 %v4857_v6  ;;  %v6344_v53 = vpop.f32.mrb[53].mxu0  ;;  %3677 = vmatprep.subr.bf16.mxu0 %v4844_v2  ;;  %v6353_v51 = vmul.f32 %v1475_v27, %v6253_v24 }
 0x173   :  { %7419 = vst [vmem:[#allocation60_spill] sm:$0xff] %v6335_v59  ;;  %v4863_v21 = vld [vmem:[#allocation5 + $0x250] ss:$8 sps:$4 sm:$0xff]   ;;  %7421 = vst [vmem:[#allocation62_spill] sm:$0xff] %v6344_v53  ;;  %v5186_v30 = vpop.eup %5185  ;;  %v6346_v5 = vmul.f32 0.5, %v744_v39  ;;  %5199 = verf.f32 %v1267_v7  ;;  %3458 = vmatprep.subr.bf16.mxu1 %v4865_v8  ;;  %v6357_v39 = vadd.f32 %v6077_v31, %v5692_v42  ;;  %v6359_v7 = vpop.f32.mrb[54].mxu0  ;;  %v6362_v10 = vmul.f32 %v1473_v43, %v6256_v60 }
 0x174   :  { %v4850_v4 = vld [vmem:[#allocation5 + $0x564] ss:$8 sps:$4 sm:$0xff]   ;;  %v5188_v61 = vpop.eup %5187  ;;  %5201 = verf.f32 %v1264_v9  ;;  %v1265_v6 = vmul.f32 0.70710677, %v673_v3  ;;  %v4848_v52 = vld [vmem:[#allocation5 + $0x560] ss:$8 sps:$4 sm:$0xff]   ;;  %v6369_v24 = vmul.f32 %v1490_v25, %v6282_v14  ;;  %v679_v43 = vadd.f32 %v6079_v13, %v7386_v16 }
 0x175   :  { %v4871_v55 = vld [vmem:[#allocation5 + $0x264] ss:$8 sps:$4 sm:$0xff]   ;;  %7422 = vst [vmem:[#allocation63_spill] sm:$0xff] %v6359_v7  ;;  %v5190_v18 = vpop.eup %5189  ;;  %7423 = vst [vmem:[#allocation64_spill] sm:$0xff] %v6362_v10  ;;  %v1488_v2 = vadd.f32 1.0, %v5184_v19  ;;  %v6364_v8 = vmul.f32 0.5, %v671_v11  ;;  %3678 = vmatpush1.bf16.msra.mxu0 %v4842_v17  ;;  %v1709_v17 = vpack.c.bf16 %v6121_v47, %v6082_v20 }
 0x176   :  { %v1282_v12 = vmul.f32 0.70710677, %v750_v1  ;;  %v6366_v53 = vpop.f32.mrb[55].mxu0  ;;  %v5192_v27 = vpop.eup %5191  ;;  %v1491_v9 = vadd.f32 1.0, %v5186_v30  ;;  %v6371_v31 = vmul.f32 0.5, %v746_v57  ;;  %v6373_v59 = vmul.f32 0.5, %v673_v3  ;;  %3459 = vmatpush1.bf16.msra.mxu1 %v4863_v21  ;;  %3679 = vmatprep.subr.bf16.mxu0 %v4850_v4 }
 0x177   :  { %7424 = vst [vmem:[#allocation65_spill] sm:$0xff] %v6366_v53  ;;  %v4856_v7 = vld [vmem:[#allocation5 + $0x574] ss:$8 sps:$4 sm:$0xff]   ;;  %v1280_v60 = vmul.f32 0.70710677, %v677_v41  ;;  %3460 = vmatprep.subr.bf16.mxu1 %v4871_v55  ;;  %v5194_v14 = vpop.eup %5193  ;;  %v1489_v25 = vadd.f32 1.0, %v5188_v61  ;;  %v754_v57 = vadd.f32 %v6086_v36, %v5686_v37  ;;  %v6389_v61 = vmul.f32 %v1488_v2, %v6289_v46  ;;  %3417 = vmatprep.mubr.bf16.mxu1 %v1709_v17 }
 0x178   :  { %5203 = verf.f32 %v1282_v12  ;;  %v1283_v11 = vmul.f32 0.70710677, %v6357_v39  ;;  %v4869_v19 = vld [vmem:[#allocation5 + $0x260] ss:$8 sps:$4 sm:$0xff]   ;;  %v4854_v3 = vld [vmem:[#allocation5 + $0x570] ss:$8 sps:$4 sm:$0xff]   ;;  %v5196_v12 = vpop.eup %5195  ;;  %v6392_v37 = vmul.f32 %v1491_v9, %v6296_v0 }
 0x179   :  { %5205 = verf.f32 %v1265_v6  ;;  %v4877_v21 = vld [vmem:[#allocation5 + $0x274] ss:$8 sps:$4 sm:$0xff]   ;;  %v1506_v30 = vadd.f32 1.0, %v5190_v18  ;;  %v1504_v10 = vadd.f32 1.0, %v5192_v27  ;;  %v6382_v53 = vmul.f32 0.5, %v750_v1  ;;  %v6384_v4 = vpop.f32.mrb[56].mxu1  ;;  %3680 = vmatpush1.bf16.msra.mxu0 %v4848_v52 }
 0x17a   :  { %5207 = verf.f32 %v1283_v11  ;;  %v4862_v13 = vld [vmem:[#allocation5 + $0x584] ss:$8 sps:$4 sm:$0xff]   ;;  %v6386_v55 = vpop.f32.mrb[56].mxu0  ;;  %v1281_v20 = vmul.f32 0.70710677, %v679_v43  ;;  %v6394_v47 = vpop.f32.mrb[57].mxu1  ;;  %3681 = vmatprep.subr.bf16.mxu0 %v4856_v7  ;;  %3461 = vmatpush1.bf16.msra.mxu1 %v4869_v19  ;;  %v6407_v52 = vmul.f32 %v1489_v25, %v6301_v48 }
 0x17b   :  { %7425 = vst [vmem:[#allocation66_spill] sm:$0xff] %v6386_v55  ;;  %v1298_v36 = vmul.f32 0.70710677, %v754_v57  ;;  %v6396_v1 = vpop.f32.mrb[57].mxu0  ;;  %v5198_v6 = vpop.eup %5197  ;;  %v1507_v18 = vadd.f32 1.0, %v5194_v14  ;;  %v6398_v27 = vmul.f32 0.5, %v677_v41  ;;  %5209 = verf.f32 %v1280_v60  ;;  %3462 = vmatprep.subr.bf16.mxu1 %v4877_v21 }
 0x17c   :  { %7426 = vst [vmem:[#allocation67_spill] sm:$0xff] %v6396_v1  ;;  %v7427_v11 = vld [vmem:[#allocation37_spill] sm:$0xff]  ;;  %v6404_v2 = vpop.f32.mrb[58].mxu1  ;;  %v1505_v9 = vadd.f32 1.0, %v5196_v12  ;;  %v7428_v17 = vld [vmem:[#allocation35_spill] sm:$0xff]  ;;  %v6417_v7 = vmul.f32 %v1504_v10, %v6315_v35  ;;  %v6420_v19 = vmul.f32 0.5, %v6357_v39 }
 0x17d   :  { %v6402_v46 = vadd.f32 %v7427_v11, %v5692_v42  ;;  %v4875_v0 = vld [vmem:[#allocation5 + $0x270] ss:$8 sps:$4 sm:$0xff]   ;;  %5211 = verf.f32 %v1298_v36  ;;  %v681_v14 = vadd.f32 %v7428_v17, %v5698_v45  ;;  %v4883_v41 = vld [vmem:[#allocation5 + $0x284] ss:$8 sps:$4 sm:$0xff]   ;;  %v6411_v60 = vpop.f32.mrb[59].mxu1  ;;  %v5200_v1 = vpop.eup %5199  ;;  %v6414_v42 = vmul.f32 %v1506_v30, %v6312_v49  ;;  %3682 = vmatpush1.bf16.msra.mxu0 %v4854_v3 }
 0x17e   :  { %7429 = vst [vmem:[#allocation37_spill] sm:$0xff] %v6417_v7  ;;  %v5202_v25 = vpop.eup %5201  ;;  %v1522_v12 = vadd.f32 1.0, %v5198_v6  ;;  %v6423_v36 = vmul.f32 0.5, %v679_v43  ;;  %5213 = verf.f32 %v1281_v20  ;;  %v6428_v45 = vld [vmem:[%s7313_s2 + $0x8] sm:$0xff]  ;;  %v7430_v49 = vld [vmem:[#allocation11_spill] sm:$0xff]  ;;  %v6435_v10 = vpop.f32.mrb[58].mxu0  ;;  %v6438_v30 = vmul.f32 %v1507_v18, %v6340_v54  ;;  %3683 = vmatprep.subr.bf16.mxu0 %v4862_v13  ;;  %3463 = vmatpush1.bf16.msra.mxu1 %v4875_v0 }
 0x17f   :  { %v1299_v48 = vmul.f32 0.70710677, %v6402_v46  ;;  %v7431_v21 = vsub.s32 2, %v7430_v49  ;;  %v4860_v39 = vld [vmem:[#allocation5 + $0x580] ss:$8 sps:$4 sm:$0xff]   ;;  %7432 = vst [vmem:[#allocation35_spill] sm:$0xff] %v6435_v10  ;;  %3464 = vmatprep.subr.bf16.mxu1 %v4883_v41  ;;  %v1715_v13 = vpack.c.bf16 %v6392_v37, %v6353_v51 }
 0x180   :  { %v6440_v43 = vmul.f32 0.5, %v754_v57  ;;  %v7433_v20 = vld [vmem:[#allocation33_spill] sm:$0xff]  ;;  %v7434_v6 = vld [vmem:[#allocation39_spill] sm:$0xff]  ;;  %v6444_v55 = vpop.f32.mrb[59].mxu0  ;;  %v1523_v3 = vadd.f32 1.0, %v5200_v1  ;;  %v7437_v10 = vld [vmem:[#allocation40_spill] sm:$0xff]  ;;  %v1725_v1 = vpack.c.bf16 %v6226_v26, %v6176_v34  ;;  %v6465_v41 = vmul.f32 %v1522_v12, %v6346_v5 }
 0x181   :  { %v6433_v35 = vrot.slane %v6428_v45, %v7431_v21  ;;  %5215 = verf.f32 %v1299_v48  ;;  %v1708_v11 = vpack.c.bf16 %v7434_v6, %v7433_v20  ;;  %v4868_v17 = vld [vmem:[#allocation5 + $0x594] ss:$8 sps:$4 sm:$0xff]   ;;  %7435 = vst [vmem:[#allocation11_spill] sm:$0xff] %v6444_v55  ;;  %v6447_v21 = vmul.f32 %v1505_v9, %v6342_v29  ;;  %v4881_v57 = vld [vmem:[#allocation5 + $0x280] ss:$8 sps:$4 sm:$0xff]   ;;  %v6453_v18 = vpop.f32.mrb[60].mxu1  ;;  %3684 = vmatpush1.bf16.msra.mxu0 %v4860_v39 }
 0x182   :  { %v1296_v7 = vmul.f32 0.70710677, %v681_v14  ;;  %7438 = vst [vmem:[#allocation39_spill] sm:$0xff] %v6453_v18  ;;  %v5204_v48 = vpop.eup %5203  ;;  %v1520_v20 = vadd.f32 1.0, %v5202_v25  ;;  %v7439_v0 = vsub.s32 3, %v7430_v49  ;;  %v7440_v25 = vld [vmem:[#allocation38_spill] sm:$0xff]  ;;  %3636 = vmatprep.mubr.bf16.mxu0 %v1715_v13  ;;  %v1714_v5 = vpack.c.bf16 %v6369_v24, %v6333_v32  ;;  %3685 = vmatprep.subr.bf16.mxu0 %v4868_v17 }
 0x183   :  { %7436 = vst [vmem:[#allocation33_spill] sm:$0xff] %v6447_v21  ;;  %v6451_v54 = vadd.f32 %v7437_v10, %v6433_v35  ;;  %3418 = vmatmul.mubr.bf16.gmra.mrb[76].mxu1 %v1708_v11  ;;  %v4889_v9 = vld [vmem:[#allocation5 + $0x294] ss:$8 sps:$4 sm:$0xff]   ;;  %v5206_v10 = vpop.eup %5205  ;;  %v1538_v6 = vadd.f32 1.0, %v5204_v48  ;;  %v6469_v11 = vadd.f32 %v7440_v25, %v7386_v16  ;;  %v4866_v37 = vld [vmem:[#allocation5 + $0x590] ss:$8 sps:$4 sm:$0xff]   ;;  %v1651_v39 = vmul.f32 %v1523_v3, %v6371_v31 }
 0x184   :  { %v6460_v29 = vrot.slane %v6428_v45, %v7439_v0  ;;  %v5208_v55 = vpop.eup %5207  ;;  %v6472_v0 = vmul.f32 0.5, %v681_v14  ;;  %v7441_v34 = vld [vmem:[#allocation21_spill] sm:$0xff]  ;;  %3427 = vmatprep.mubr.bf16.mxu1 %v1725_v1  ;;  %v7442_v12 = vld [vmem:[#allocation22_spill] sm:$0xff]  ;;  %v4874_v48 = vld [vmem:[#allocation5 + $0x5a4] ss:$8 sps:$4 sm:$0xff]   ;;  %v6484_v25 = vpop.f32.mrb[61].mxu1  ;;  %3465 = vmatpush1.bf16.msra.mxu1 %v4881_v57 }
 0x185   :  { %v1188_v51 = vmul.f32 0.70710677, %v6451_v54  ;;  %v6482_v16 = vadd.f32 %v7442_v12, %v6433_v35  ;;  %7443 = vst [vmem:[#allocation40_spill] sm:$0xff] %v6484_v25  ;;  %v1171_v14 = vmul.f32 0.5, %v6402_v46  ;;  %v7444_v13 = vld [vmem:[#allocation44_spill] sm:$0xff]  ;;  %v6492_v32 = vpop.f32.mrb[62].mxu1  ;;  %v5210_v24 = vpop.eup %5209  ;;  %v6495_v12 = vmul.f32 %v1520_v20, %v6364_v8  ;;  %3637 = vmatmul.mubr.bf16.gmra.mrb[76].mxu0 %v1714_v5  ;;  %3466 = vmatprep.subr.bf16.mxu1 %v4889_v9 }
 0x186   :  { %v6476_v26 = vadd.f32 %v7441_v34, %v6460_v29  ;;  %v6490_v34 = vadd.f32 %v7444_v13, %v6460_v29  ;;  %v4887_v1 = vld [vmem:[#allocation5 + $0x290] ss:$8 sps:$4 sm:$0xff]   ;;  %7445 = vst [vmem:[#allocation38_spill] sm:$0xff] %v6492_v32  ;;  %v1539_v18 = vadd.f32 1.0, %v5208_v55  ;;  %v4895_v46 = vld [vmem:[#allocation5 + $0x2a4] ss:$8 sps:$4 sm:$0xff]   ;;  %v6499_v13 = vmul.f32 %v1538_v6, %v6382_v53  ;;  %3686 = vmatpush1.bf16.msra.mxu0 %v4866_v37 }
 0x187   :  { %5217 = verf.f32 %v1188_v51  ;;  %7446 = vst [vmem:[#allocation21_spill] sm:$0xff] %v6495_v12  ;;  %v5212_v3 = vpop.eup %5211  ;;  %v1521_v51 = vadd.f32 1.0, %v5206_v10  ;;  %v1297_v17 = vmul.f32 0.70710677, %v6469_v11  ;;  %v1204_v57 = vmul.f32 0.70710677, %v6482_v16  ;;  %3687 = vmatprep.subr.bf16.mxu0 %v4874_v48 }
 0x188   :  { %5219 = verf.f32 %v1296_v7  ;;  %v1189_v31 = vmul.f32 0.70710677, %v6476_v26  ;;  %v1554_v32 = vadd.f32 1.0, %v5212_v3  ;;  %v1205_v8 = vmul.f32 0.70710677, %v6490_v34  ;;  %v6506_v20 = vpop.f32.mrb[63].mxu1  ;;  %v6508_v9 = vpop.eup %5213  ;;  %3467 = vmatpush1.bf16.msra.mxu1 %v4887_v1 }
 0x189   :  { %v1724_v55 = vpack.c.bf16 %v6193_v44, %v6166_v22  ;;  %v4872_v7 = vld [vmem:[#allocation5 + $0x5a0] ss:$8 sps:$4 sm:$0xff]   ;;  %7447 = vst [vmem:[#allocation22_spill] sm:$0xff] %v6506_v20  ;;  %v1536_v53 = vadd.f32 1.0, %v5210_v24  ;;  %v1731_v10 = vpack.c.bf16 %v1651_v39, %v6438_v30  ;;  %v1741_v6 = vpack.c.bf16 %v6274_v63, %v6250_v50  ;;  %v4880_v37 = vld [vmem:[#allocation5 + $0x5b4] ss:$8 sps:$4 sm:$0xff]   ;;  %3468 = vmatprep.subr.bf16.mxu1 %v4895_v46 }
 0x18a   :  { %5221 = verf.f32 %v1189_v31  ;;  %v4893_v5 = vld [vmem:[#allocation5 + $0x2a0] ss:$8 sps:$4 sm:$0xff]   ;;  %v1667_v3 = vmul.f32 %v1539_v18, %v6420_v19  ;;  %v6515_v22 = vmul.f32 %v1554_v32, %v6440_v43  ;;  %v1730_v44 = vpack.c.bf16 %v6465_v41, %v6414_v42  ;;  %v4901_v48 = vld [vmem:[#allocation5 + $0x2b4] ss:$8 sps:$4 sm:$0xff]   ;;  %v6519_v30 = vpop.f32.mrb[64].mxu1  ;;  %3688 = vmatpush1.bf16.msra.mxu0 %v4872_v7 }
 0x18b   :  { %5223 = verf.f32 %v1204_v57  ;;  %v5216_v31 = vpop.eup %5215  ;;  %3428 = vmatmul.mubr.bf16.gmra.mrb[80].mxu1 %v1724_v55  ;;  %7448 = vst [vmem:[#allocation44_spill] sm:$0xff] %v6519_v30  ;;  %3646 = vmatprep.mubr.bf16.mxu0 %v1731_v10  ;;  %v1740_v50 = vpack.c.bf16 %v6263_v40, %v6238_v28  ;;  %v7449_v63 = vld [vmem:[#allocation17_spill] sm:$0xff]  ;;  %v7450_v19 = vld [vmem:[#allocation18_spill] sm:$0xff]  ;;  %v803_v43 = vadd.f32 %v6185_v15, %v6433_v35  ;;  %v6527_v1 = vpop.f32.mrb[65].mxu1  ;;  %v6530_v42 = vmul.f32 0.5, %v6469_v11  ;;  %v7453_v28 = vld [vmem:[#allocation47_spill] sm:$0xff] }
 0x18c   :  { %5225 = verf.f32 %v1205_v8  ;;  %v1555_v39 = vadd.f32 1.0, %v5216_v31  ;;  %3437 = vmatprep.mubr.bf16.mxu1 %v1741_v6  ;;  %v1695_v18 = vpack.c.bf16 %v7450_v19, %v7449_v63  ;;  %7451 = vst [vmem:[#allocation17_spill] sm:$0xff] %v6527_v1  ;;  %v4878_v32 = vld [vmem:[#allocation5 + $0x5b0] ss:$8 sps:$4 sm:$0xff]   ;;  %v6538_v40 = vadd.f32 %v7453_v28, %v6433_v35  ;;  %v6540_v57 = vpop.f32.mrb[66].mxu1  ;;  %3689 = vmatprep.subr.bf16.mxu0 %v4880_v37  ;;  %v7489_v30 = vld [vmem:[#allocation16_spill] sm:$0xff] }
 0x18d   :  { %v7452_v24 = vld [vmem:[#allocation46_spill] sm:$0xff]  ;;  %7454 = vst [vmem:[#allocation18_spill] sm:$0xff] %v6540_v57  ;;  %v6543_v15 = vmul.f32 %v1521_v51, %v6373_v59  ;;  %v4886_v11 = vld [vmem:[#allocation5 + $0x5c4] ss:$8 sps:$4 sm:$0xff]   ;;  %3469 = vmatpush1.bf16.msra.mxu1 %v4893_v5  ;;  %v1220_v55 = vmul.f32 0.70710677, %v803_v43  ;;  %v6547_v7 = vadd.f32 %v6215_v56, %v6460_v29  ;;  %v6552_v6 = vmul.f32 %v1536_v53, %v6398_v27 }
 0x18e   :  { %v805_v46 = vadd.f32 %v7452_v24, %v6460_v29  ;;  %v1683_v8 = vmul.f32 %v1555_v39, %v1171_v14  ;;  %v6549_v10 = vpop.f32.mrb[67].mxu1  ;;  %5227 = verf.f32 %v1297_v17  ;;  %v1060_v31 = vmul.f32 0.5, %v6451_v54  ;;  %3647 = vmatmul.mubr.bf16.gmra.mrb[80].mxu0 %v1730_v44  ;;  %v4884_v59 = vld [vmem:[#allocation5 + $0x5c0] ss:$8 sps:$4 sm:$0xff]   ;;  %v4899_v51 = vld [vmem:[#allocation5 + $0x2b0] ss:$8 sps:$4 sm:$0xff]   ;;  %3470 = vmatprep.subr.bf16.mxu1 %v4901_v48 }
 0x18f   :  { %7455 = vst [vmem:[#allocation46_spill] sm:$0xff] %v6543_v15  ;;  %7456 = vst [vmem:[#allocation47_spill] sm:$0xff] %v6549_v10  ;;  %v1061_v5 = vmul.f32 0.5, %v6476_v26  ;;  %5229 = verf.f32 %v1220_v55  ;;  %v4907_v56 = vld [vmem:[#allocation5 + $0x2c4] ss:$8 sps:$4 sm:$0xff]   ;;  %v1076_v17 = vmul.f32 0.5, %v6482_v16  ;;  %3690 = vmatpush1.bf16.msra.mxu0 %v4878_v32  ;;  %v813_v26 = vadd.f32 %v6247_v38, %v6433_v35 }
 0x190   :  { %7457 = vst [vmem:[#allocation68_spill] sm:$0xff] %v6552_v6  ;;  %v1221_v14 = vmul.f32 0.70710677, %v805_v46  ;;  %v1747_v39 = vpack.c.bf16 %v1683_v8, %v1667_v3  ;;  %v1236_v63 = vmul.f32 0.70710677, %v6538_v40  ;;  %v6561_v53 = vpop.f32.mrb[68].mxu1  ;;  %3691 = vmatprep.subr.bf16.mxu0 %v4886_v11  ;;  %v815_v3 = vadd.f32 %v6258_v62, %v6460_v29 }
 0x191   :  { %v5218_v37 = vpop.eup %5217  ;;  %v1237_v54 = vmul.f32 0.70710677, %v6547_v7  ;;  %7458 = vst [vmem:[#allocation69_spill] sm:$0xff] %v6561_v53  ;;  %v4892_v44 = vld [vmem:[#allocation5 + $0x5d4] ss:$8 sps:$4 sm:$0xff]   ;;  %v6569_v48 = vadd.f32 %v6269_v58, %v6433_v35  ;;  %v6571_v16 = vpop.f32.mrb[69].mxu1  ;;  %3471 = vmatpush1.bf16.msra.mxu1 %v4899_v51 }
 0x192   :  { %v6557_v19 = vpop.eup %5219  ;;  %v1444_v27 = vadd.f32 1.0, %v5218_v37  ;;  %5231 = verf.f32 %v1221_v14  ;;  %3656 = vmatprep.mubr.bf16.mxu0 %v1747_v39  ;;  %7459 = vst [vmem:[#allocation70_spill] sm:$0xff] %v6571_v16  ;;  %v1077_v24 = vmul.f32 0.5, %v6490_v34  ;;  %v4890_v28 = vld [vmem:[#allocation5 + $0x5d0] ss:$8 sps:$4 sm:$0xff]   ;;  %v6574_v8 = vmul.f32 0.5, %v803_v43  ;;  %3472 = vmatprep.subr.bf16.mxu1 %v4907_v56 }
 0x193   :  { %5233 = verf.f32 %v1236_v63  ;;  %3438 = vmatmul.mubr.bf16.gmra.mrb[84].mxu1 %v1740_v50  ;;  %v4905_v11 = vld [vmem:[#allocation5 + $0x2c0] ss:$8 sps:$4 sm:$0xff]   ;;  %v6580_v62 = vpop.f32.mrb[70].mxu1  ;;  %v6582_v37 = vmul.f32 0.5, %v805_v46  ;;  %v4913_v39 = vld [vmem:[#allocation5 + $0x2d4] ss:$8 sps:$4 sm:$0xff]   ;;  %v6586_v50 = vadd.f32 %v6307_v23, %v6433_v35  ;;  %3692 = vmatpush1.bf16.msra.mxu0 %v4884_v59 }
 0x194   :  { %v5222_v32 = vpop.eup %5221  ;;  %5235 = verf.f32 %v1237_v54  ;;  %v7460_v38 = vld [vmem:[#allocation52_spill] sm:$0xff]  ;;  %3480 = vmatprep.mubr.bf16.mxu1 %v1695_v18  ;;  %v1252_v34 = vmul.f32 0.70710677, %v813_v26  ;;  %v6588_v63 = vmul.f32 %v1444_v27, %v1060_v31  ;;  %v1268_v41 = vmul.f32 0.70710677, %v6569_v48  ;;  %3693 = vmatprep.subr.bf16.mxu0 %v4892_v44 }
 0x195   :  { %v6578_v55 = vadd.f32 %v7460_v38, %v6460_v29  ;;  %7461 = vst [vmem:[#allocation52_spill] sm:$0xff] %v6580_v62  ;;  %v5224_v14 = vpop.eup %5223  ;;  %v1445_v58 = vadd.f32 1.0, %v5222_v32  ;;  %v1253_v38 = vmul.f32 0.70710677, %v815_v3  ;;  %v4898_v46 = vld [vmem:[#allocation5 + $0x5e4] ss:$8 sps:$4 sm:$0xff]   ;;  %v7463_v31 = vpack.c.bf16 %v6515_v22, %v6499_v13  ;;  %3473 = vmatpush1.bf16.msra.mxu1 %v4905_v11 }
 0x196   :  { %v5226_v43 = vpop.eup %5225  ;;  %v1460_v54 = vadd.f32 1.0, %v5224_v14  ;;  %v1108_v51 = vmul.f32 0.5, %v6538_v40  ;;  %5237 = verf.f32 %v1252_v34  ;;  %v6592_v62 = vpop.f32.mrb[71].mxu1  ;;  %v1109_v59 = vmul.f32 0.5, %v6547_v7  ;;  %v4911_v27 = vld [vmem:[#allocation5 + $0x2d0] ss:$8 sps:$4 sm:$0xff]   ;;  %3474 = vmatprep.subr.bf16.mxu1 %v4913_v39 }
 0x197   :  { %v1573_v32 = vmul.f32 %v1445_v58, %v1061_v5  ;;  %v1461_v18 = vadd.f32 1.0, %v5226_v43  ;;  %7462 = vst [vmem:[#allocation71_spill] sm:$0xff] %v6592_v62  ;;  %3657 = vmatmul.mubr.bf16.gmra.mrb[84].mxu0 %v7463_v31  ;;  %5239 = verf.f32 %v1253_v38  ;;  %v1269_v56 = vmul.f32 0.70710677, %v6578_v55  ;;  %v7464_v44 = vld [vmem:[#allocation32_spill] sm:$0xff] }
 0x198   :  { %v6594_v23 = vmul.f32 %v1460_v54, %v1076_v17  ;;  %5241 = verf.f32 %v1268_v41  ;;  %v1284_v40 = vmul.f32 0.70710677, %v6586_v50  ;;  %v6604_v14 = vadd.f32 %v7464_v44, %v6460_v29  ;;  %v6606_v17 = vpop.eup %5227  ;;  %3694 = vmatpush1.bf16.msra.mxu0 %v4890_v28  ;;  %v4896_v22 = vld [vmem:[#allocation5 + $0x5e0] ss:$8 sps:$4 sm:$0xff]   ;;  %v4919_v7 = vld [vmem:[#allocation5 + $0x2e4] ss:$8 sps:$4 sm:$0xff]  }
 0x199   :  { %v1589_v5 = vmul.f32 %v1461_v18, %v1077_v24  ;;  %5243 = verf.f32 %v1269_v56  ;;  %v6612_v24 = vadd.f32 %v6328_v33, %v6433_v35  ;;  %v7465_v41 = vld [vmem:[#allocation20_spill] sm:$0xff]  ;;  %v5230_v34 = vpop.eup %5229  ;;  %3695 = vmatprep.subr.bf16.mxu0 %v4898_v46  ;;  %v4904_v54 = vld [vmem:[#allocation5 + $0x5f4] ss:$8 sps:$4 sm:$0xff]   ;;  %v6616_v38 = vmul.f32 0.5, %v813_v26  ;;  %3475 = vmatpush1.bf16.msra.mxu1 %v4911_v27 }
 0x19a   :  { %v7466_v11 = vld [vmem:[#allocation24_spill] sm:$0xff]  ;;  %5245 = verf.f32 %v1284_v40  ;;  %v1285_v28 = vmul.f32 0.70710677, %v6604_v14  ;;  %v1476_v39 = vadd.f32 1.0, %v5230_v34  ;;  %v6619_v31 = vmul.f32 0.5, %v815_v3  ;;  %v7469_v3 = vld [vmem:[#allocation19_spill] sm:$0xff]  ;;  %3476 = vmatprep.subr.bf16.mxu1 %v4919_v7 }
 0x19b   :  { %v1701_v43 = vpack.c.bf16 %v1589_v5, %v1573_v32  ;;  %v1300_v56 = vmul.f32 0.70710677, %v6612_v24  ;;  %v7467_v33 = vld [vmem:[#allocation60_spill] sm:$0xff]  ;;  %v4902_v32 = vld [vmem:[#allocation5 + $0x5f0] ss:$8 sps:$4 sm:$0xff]   ;;  %v7468_v5 = vsub.s32 4, %v7430_v49 }
 0x19c   :  { %v5232_v18 = vpop.eup %5231  ;;  %v6624_v35 = vadd.f32 %v7467_v33, %v6460_v29  ;;  %v4917_v26 = vld [vmem:[#allocation5 + $0x2e0] ss:$8 sps:$4 sm:$0xff]   ;;  %5247 = verf.f32 %v1285_v28  ;;  %3696 = vmatpush1.bf16.msra.mxu0 %v4896_v22  ;;  %v6634_v29 = vmul.f32 %v1476_v39, %v6574_v8  ;;  %v4925_v27 = vld [vmem:[#allocation5 + $0x2f4] ss:$8 sps:$4 sm:$0xff]   ;;  %v6637_v28 = vpop.f32.mrb[60].mxu0  ;;  %v1157_v6 = vmul.f32 0.5, %v6604_v14 }
 0x19d   :  { %v5234_v44 = vpop.eup %5233  ;;  %3699 = vmatprep.mubr.bf16.mxu0 %v1701_v43  ;;  %v1477_v46 = vadd.f32 1.0, %v5232_v18  ;;  %v6629_v40 = vrot.slane %v6428_v45, %v7468_v5  ;;  %v7470_v34 = vld [vmem:[#allocation23_spill] sm:$0xff]  ;;  %v1140_v43 = vmul.f32 0.5, %v6569_v48  ;;  %5249 = verf.f32 %v1300_v56  ;;  %7471 = vst [vmem:[#allocation32_spill] sm:$0xff] %v6637_v28  ;;  %3697 = vmatprep.subr.bf16.mxu0 %v4904_v54  ;;  %v7472_v22 = vld [vmem:[#allocation41_spill] sm:$0xff]  ;;  %v6645_v8 = vpop.f32.mrb[61].mxu0 }
 0x19e   :  { %v5236_v13 = vpop.eup %5235  ;;  %v1492_v33 = vadd.f32 1.0, %v5234_v44  ;;  %v4910_v5 = vld [vmem:[#allocation5 + $0x604] ss:$8 sps:$4 sm:$0xff]   ;;  %v1301_v58 = vmul.f32 0.70710677, %v6624_v35  ;;  %7473 = vst [vmem:[#allocation20_spill] sm:$0xff] %v6645_v8  ;;  %3477 = vmatpush1.bf16.msra.mxu1 %v4917_v26 }
 0x19f   :  { %v1605_v18 = vmul.f32 %v1477_v46, %v6582_v37  ;;  %v1493_v62 = vadd.f32 1.0, %v5236_v13  ;;  %v6643_v16 = vadd.f32 %v7472_v22, %v6629_v40  ;;  %v7474_v48 = vsub.s32 5, %v7430_v49  ;;  %v7475_v54 = vld [vmem:[#allocation28_spill] sm:$0xff]  ;;  %v7476_v56 = vld [vmem:[#allocation30_spill] sm:$0xff]  ;;  %v7477_v13 = vld [vmem:[#allocation43_spill] sm:$0xff]  ;;  %v6660_v46 = vpop.f32.mrb[62].mxu0  ;;  %3478 = vmatprep.subr.bf16.mxu1 %v4925_v27 }
 0x1a0   :  { %v6647_v7 = vmul.f32 %v1492_v33, %v1108_v51  ;;  %v6658_v44 = vadd.f32 %v7477_v13, %v6629_v40  ;;  %7478 = vst [vmem:[#allocation24_spill] sm:$0xff] %v6660_v46  ;;  %v5238_v22 = vpop.eup %5237  ;;  %v1141_v51 = vmul.f32 0.5, %v6578_v55  ;;  %v4923_v33 = vld [vmem:[#allocation5 + $0x2f0] ss:$8 sps:$4 sm:$0xff]   ;;  %5251 = verf.f32 %v1301_v58  ;;  %3698 = vmatpush1.bf16.msra.mxu0 %v4902_v32  ;;  %v4908_v37 = vld [vmem:[#allocation5 + $0x600] ss:$8 sps:$4 sm:$0xff]  }
 0x1a1   :  { %v6652_v39 = vrot.slane %v6428_v45, %v7474_v48  ;;  %v1621_v28 = vmul.f32 %v1493_v62, %v1109_v59  ;;  %v1190_v8 = vmul.f32 0.70710677, %v6643_v16  ;;  %v6664_v48 = vpop.f32.mrb[63].mxu0  ;;  %v5240_v53 = vpop.eup %5239  ;;  %v1508_v10 = vadd.f32 1.0, %v5238_v22  ;;  %v4931_v57 = vld [vmem:[#allocation5 + $0x304] ss:$8 sps:$4 sm:$0xff]   ;;  %3740 = vmatprep.subr.bf16.mxu0 %v4910_v5 }
 0x1a2   :  { %7479 = vst [vmem:[#allocation60_spill] sm:$0xff] %v6664_v48  ;;  %v1156_v13 = vmul.f32 0.5, %v6586_v50  ;;  %v7480_v46 = vld [vmem:[#allocation42_spill] sm:$0xff]  ;;  %v5242_v59 = vpop.eup %5241  ;;  %v1509_v26 = vadd.f32 1.0, %v5240_v53  ;;  %v1206_v32 = vmul.f32 0.70710677, %v6658_v44  ;;  %v7481_v55 = vpack.c.bf16 %v6594_v23, %v6588_v63  ;;  %3479 = vmatpush1.bf16.msra.mxu1 %v4923_v33 }
 0x1a3   :  { %v6669_v62 = vadd.f32 %v7480_v46, %v6652_v39  ;;  %v4916_v58 = vld [vmem:[#allocation5 + $0x614] ss:$8 sps:$4 sm:$0xff]   ;;  %5253 = verf.f32 %v1190_v8  ;;  %v1717_v48 = vpack.c.bf16 %v1621_v28, %v1605_v18  ;;  %v5244_v22 = vpop.eup %5243  ;;  %v6675_v27 = vmul.f32 %v1508_v10, %v6616_v38  ;;  %v4929_v18 = vld [vmem:[#allocation5 + $0x300] ss:$8 sps:$4 sm:$0xff]   ;;  %v4914_v14 = vld [vmem:[#allocation5 + $0x610] ss:$8 sps:$4 sm:$0xff]   ;;  %3521 = vmatprep.subr.bf16.mxu1 %v4931_v57 }
 0x1a4   :  { %v1524_v50 = vadd.f32 1.0, %v5242_v59  ;;  %v5246_v1 = vpop.eup %5245  ;;  %3700 = vmatmul.mubr.bf16.vlgmr.msra.gmra.mrb[72].mxu0 %v7481_v55  ;;  %v6683_v53 = vmul.f32 %v1509_v26, %v6619_v31  ;;  %v1525_v28 = vadd.f32 1.0, %v5244_v22  ;;  %5255 = verf.f32 %v1206_v32  ;;  %v7482_v10 = vld [vmem:[#allocation45_spill] sm:$0xff]  ;;  %v6693_v55 = vpop.f32.mrb[64].mxu0  ;;  %v4922_v26 = vld [vmem:[#allocation5 + $0x624] ss:$8 sps:$4 sm:$0xff]  }
 0x1a5   :  { %v1191_v46 = vmul.f32 0.70710677, %v6669_v62  ;;  %v6687_v38 = vadd.f32 %v7482_v10, %v6652_v39  ;;  %3741 = vmatpush1.bf16.msra.mxu0 %v4908_v37  ;;  %v1540_v8 = vadd.f32 1.0, %v5246_v1  ;;  %v4937_v59 = vld [vmem:[#allocation5 + $0x314] ss:$8 sps:$4 sm:$0xff]   ;;  %7485 = vst [vmem:[#allocation19_spill] sm:$0xff] %v6693_v55  ;;  %3709 = vmatprep.mubr.bf16.mxu0 %v1717_v48  ;;  %v7495_v1 = vpack.c.bf16 %v7466_v11, %v7465_v41 }
 0x1a6   :  { %v6689_v5 = vmul.f32 %v1524_v50, %v1140_v43  ;;  %v7483_v63 = vld [vmem:[#allocation25_spill] sm:$0xff]  ;;  %v5248_v33 = vpop.eup %5247  ;;  %3742 = vmatprep.subr.bf16.mxu0 %v4916_v58  ;;  %v1653_v32 = vmul.f32 %v1525_v28, %v1141_v51  ;;  %v1172_v22 = vmul.f32 0.5, %v6612_v24  ;;  %v7486_v43 = vld [vmem:[#allocation34_spill] sm:$0xff]  ;;  %v6699_v57 = vpop.f32.mrb[65].mxu0  ;;  %v7490_v55 = vld [vmem:[#allocation15_spill] sm:$0xff]  ;;  %v6721_v51 = vadd.f32 1.0, %v6508_v9 }
 0x1a7   :  { %5257 = verf.f32 %v1191_v46  ;;  %v7484_v23 = vld [vmem:[#allocation29_spill] sm:$0xff]  ;;  %v1207_v37 = vmul.f32 0.70710677, %v6687_v38  ;;  %v7487_v50 = vld [vmem:[#allocation14_spill] sm:$0xff]  ;;  %7488 = vst [vmem:[#allocation23_spill] sm:$0xff] %v6699_v57  ;;  %v5250_v46 = vpop.eup %5249  ;;  %v6701_v10 = vmul.f32 %v1540_v8, %v1156_v13  ;;  %v1541_v31 = vadd.f32 1.0, %v5248_v33 }
 0x1a8   :  { %v7491_v20 = vpack.c.bf16 %v7489_v30, %v7490_v55  ;;  %v7492_v24 = vld [vmem:[#allocation31_spill] sm:$0xff]  ;;  %v7493_v48 = vld [vmem:[#allocation36_spill] sm:$0xff]  ;;  %v6710_v28 = vpop.f32.mrb[66].mxu0  ;;  %v1556_v12 = vadd.f32 1.0, %v5250_v46  ;;  %v4935_v13 = vld [vmem:[#allocation5 + $0x310] ss:$8 sps:$4 sm:$0xff]   ;;  %v1733_v8 = vpack.c.bf16 %v1653_v32, %v6683_v53 }
 0x1a9   :  { %7494 = vst [vmem:[#allocation41_spill] sm:$0xff] %v6710_v28  ;;  %5259 = verf.f32 %v1207_v37  ;;  %v7496_v30 = vld [vmem:[#allocation54_spill] sm:$0xff]  ;;  %v6718_v33 = vpop.f32.mrb[67].mxu0  ;;  %3743 = vmatpush1.bf16.msra.mxu0 %v4914_v14  ;;  %v4920_v58 = vld [vmem:[#allocation5 + $0x620] ss:$8 sps:$4 sm:$0xff]   ;;  %v1173_v46 = vmul.f32 0.5, %v6624_v35 }
 0x1aa   :  { %3481 = vmatmul.mubr.bf16.vlgmr.msra.gmra.mrb[72].mxu1 %v7491_v20  ;;  %v7497_v20 = vld [vmem:[#allocation58_spill] sm:$0xff]  ;;  %7498 = vst [vmem:[#allocation28_spill] sm:$0xff] %v6718_v33  ;;  %v4943_v41 = vld [vmem:[#allocation5 + $0x324] ss:$8 sps:$4 sm:$0xff]   ;;  %v5252_v37 = vpop.eup %5251  ;;  %3744 = vmatprep.subr.bf16.mxu0 %v4922_v26  ;;  %v6732_v55 = vmul.f32 %v1556_v12, %v1172_v22  ;;  %v7501_v9 = vld [vmem:[#allocation49_spill] sm:$0xff]  ;;  %v1062_v26 = vmul.f32 0.5, %v6643_v16 }
 0x1ab   :  { %3490 = vmatprep.mubr.bf16.mxu1 %v7495_v1  ;;  %3522 = vmatpush1.bf16.msra.mxu1 %v4929_v18  ;;  %v7499_v11 = vld [vmem:[#allocation48_spill] sm:$0xff]  ;;  %v7500_v53 = vld [vmem:[#allocation26_spill] sm:$0xff]  ;;  %v6736_v14 = vadd.f32 %v7501_v9, %v6629_v40  ;;  %v7502_v35 = vld [vmem:[#allocation51_spill] sm:$0xff]  ;;  %v1557_v57 = vadd.f32 1.0, %v5252_v37  ;;  %v1078_v15 = vmul.f32 0.5, %v6658_v44  ;;  %v1079_v44 = vmul.f32 0.5, %v6687_v38 }
 0x1ac   :  { %3523 = vmatprep.subr.bf16.mxu1 %v4937_v59  ;;  %v6726_v18 = vadd.f32 %v7499_v11, %v6629_v40  ;;  %v6730_v32 = vadd.f32 %v7500_v53, %v6652_v39  ;;  %v4928_v1 = vld [vmem:[#allocation5 + $0x634] ss:$8 sps:$4 sm:$0xff]   ;;  %v6740_v59 = vadd.f32 %v7502_v35, %v6652_v39  ;;  %v4926_v28 = vld [vmem:[#allocation5 + $0x630] ss:$8 sps:$4 sm:$0xff]   ;;  %v6746_v53 = vmul.f32 %v1541_v31, %v1157_v6  ;;  %v4941_v12 = vld [vmem:[#allocation5 + $0x320] ss:$8 sps:$4 sm:$0xff]  }
 0x1ad   :  { %v7503_v11 = vld [vmem:[#allocation53_spill] sm:$0xff]  ;;  %v5254_v25 = vpop.eup %5253  ;;  %v4934_v9 = vld [vmem:[#allocation5 + $0x644] ss:$8 sps:$4 sm:$0xff]   ;;  %v7504_v35 = vpack.c.bf16 %v6647_v7, %v6634_v29  ;;  %v1238_v31 = vmul.f32 0.70710677, %v6736_v14  ;;  %3745 = vmatpush1.bf16.msra.mxu0 %v4920_v58  ;;  %v6758_v16 = vmul.f32 %v1557_v57, %v1173_v46  ;;  %v6761_v29 = vpop.f32.mrb[68].mxu0 }
 0x1ae   :  { %v6744_v33 = vadd.f32 %v7503_v11, %v6629_v40  ;;  %v1222_v22 = vmul.f32 0.70710677, %v6726_v18  ;;  %v1748_v11 = vpack.c.bf16 %v6732_v55, %v6701_v10  ;;  %v1223_v6 = vmul.f32 0.70710677, %v6730_v32  ;;  %v4949_v21 = vld [vmem:[#allocation5 + $0x334] ss:$8 sps:$4 sm:$0xff]   ;;  %v5256_v7 = vpop.eup %5255  ;;  %3746 = vmatprep.subr.bf16.mxu0 %v4928_v1 }
 0x1af   :  { %3524 = vmatpush1.bf16.msra.mxu1 %v4935_v13  ;;  %3710 = vmatmul.mubr.bf16.gmra.mrb[76].mxu0 %v7504_v35  ;;  %v1446_v37 = vadd.f32 1.0, %v5254_v25  ;;  %v1063_v13 = vmul.f32 0.5, %v6669_v62  ;;  %v1239_v35 = vmul.f32 0.70710677, %v6740_v59  ;;  %v6766_v57 = vpop.f32.mrb[69].mxu0  ;;  %v7505_v62 = vpack.c.bf16 %v7470_v34, %v7469_v3  ;;  %v7509_v3 = vld [vmem:[#allocation56_spill] sm:$0xff] }
 0x1b0   :  { %3525 = vmatprep.subr.bf16.mxu1 %v4943_v41  ;;  %5261 = verf.f32 %v1222_v22  ;;  %3719 = vmatprep.mubr.bf16.mxu0 %v1733_v8  ;;  %v1254_v58 = vmul.f32 0.70710677, %v6744_v33  ;;  %v1462_v41 = vadd.f32 1.0, %v5256_v7  ;;  %v1749_v1 = vpack.c.bf16 %v6758_v16, %v6746_v53  ;;  %v6775_v38 = vpop.f32.mrb[70].mxu0  ;;  %v7512_v7 = vld [vmem:[#allocation59_spill] sm:$0xff] }
 0x1b1   :  { %5263 = verf.f32 %v1223_v6  ;;  %v5258_v25 = vpop.eup %5257  ;;  %v6768_v46 = vmul.f32 %v1446_v37, %v1062_v26  ;;  %7506 = vst [vmem:[#allocation30_spill] sm:$0xff] %v6775_v38  ;;  %v7507_v22 = vpack.c.bf16 %v7476_v56, %v7475_v54  ;;  %v4947_v6 = vld [vmem:[#allocation5 + $0x330] ss:$8 sps:$4 sm:$0xff]   ;;  %v7508_v26 = vld [vmem:[#allocation55_spill] sm:$0xff]  ;;  %v6786_v34 = vadd.f32 %v7509_v3, %v6629_v40  ;;  %v6788_v53 = vpop.f32.mrb[71].mxu0  ;;  %3747 = vmatpush1.bf16.msra.mxu0 %v4926_v28 }
 0x1b2   :  { %3491 = vmatmul.mubr.bf16.gmra.mrb[76].mxu1 %v7505_v62  ;;  %5265 = verf.f32 %v1238_v31  ;;  %v1447_v8 = vadd.f32 1.0, %v5258_v25  ;;  %v6782_v37 = vadd.f32 %v7508_v26, %v6652_v39  ;;  %7510 = vst [vmem:[#allocation43_spill] sm:$0xff] %v6788_v53  ;;  %v4932_v31 = vld [vmem:[#allocation5 + $0x640] ss:$8 sps:$4 sm:$0xff]   ;;  %v6790_v16 = vmul.f32 %v1462_v41, %v1078_v15  ;;  %v4955_v54 = vld [vmem:[#allocation5 + $0x344] ss:$8 sps:$4 sm:$0xff]   ;;  %3748 = vmatprep.subr.bf16.mxu0 %v4934_v9 }
 0x1b3   :  { %3500 = vmatprep.mubr.bf16.mxu1 %v7507_v22  ;;  %3526 = vmatpush1.bf16.msra.mxu1 %v4941_v12  ;;  %5267 = verf.f32 %v1239_v35  ;;  %v7511_v56 = vld [vmem:[#allocation57_spill] sm:$0xff]  ;;  %v6798_v35 = vadd.f32 %v7512_v7, %v6629_v40  ;;  %v5260_v25 = vpop.eup %5259  ;;  %v6802_v62 = vmul.f32 %v6721_v51, %v6423_v36  ;;  %v6805_v28 = vadd.f32 1.0, %v6557_v19  ;;  %v4953_v3 = vld [vmem:[#allocation5 + $0x340] ss:$8 sps:$4 sm:$0xff]   ;;  %v4994_v22 = vld [vmem:[#allocation5 + $0x6e4] ss:$8 sps:$4 sm:$0xff]  }
 0x1b4   :  { %3527 = vmatprep.subr.bf16.mxu1 %v4949_v21  ;;  %5269 = verf.f32 %v1254_v58  ;;  %v6794_v12 = vadd.f32 %v7511_v56, %v6652_v39  ;;  %v6808_v21 = vadd.f32 1.0, %v6606_v17  ;;  %v4940_v15 = vld [vmem:[#allocation5 + $0x654] ss:$8 sps:$4 sm:$0xff]   ;;  %v1255_v58 = vmul.f32 0.70710677, %v6782_v37 }
 0x1b5   :  { %v6811_v41 = vmul.f32 %v1447_v8, %v1063_v13  ;;  %v1463_v26 = vadd.f32 1.0, %v5260_v25  ;;  %v1270_v36 = vmul.f32 0.70710677, %v6786_v34  ;;  %v7513_v19 = vpack.c.bf16 %v6689_v5, %v6675_v27  ;;  %3749 = vmatpush1.bf16.msra.mxu0 %v4932_v31  ;;  %v4938_v13 = vld [vmem:[#allocation5 + $0x650] ss:$8 sps:$4 sm:$0xff]   ;;  %v7515_v27 = vld [vmem:[#allocation63_spill] sm:$0xff] }
 0x1b6   :  { %v1094_v17 = vmul.f32 0.5, %v6726_v18  ;;  %5271 = verf.f32 %v1255_v58  ;;  %v1271_v51 = vmul.f32 0.70710677, %v6794_v12  ;;  %v1286_v9 = vmul.f32 0.70710677, %v6798_v35  ;;  %3750 = vmatprep.subr.bf16.mxu0 %v4940_v15  ;;  %v7516_v31 = vld [vmem:[#allocation65_spill] sm:$0xff] }
 0x1b7   :  { %3528 = vmatpush1.bf16.msra.mxu1 %v4947_v6  ;;  %3720 = vmatmul.mubr.bf16.gmra.mrb[80].mxu0 %v7513_v19  ;;  %v6822_v8 = vmul.f32 %v1463_v26, %v1079_v44  ;;  %v4961_v56 = vld [vmem:[#allocation5 + $0x354] ss:$8 sps:$4 sm:$0xff]   ;;  %5273 = verf.f32 %v1270_v36  ;;  %v6830_v5 = vadd.f32 %v7515_v27, %v6629_v40  ;;  %v4946_v18 = vld [vmem:[#allocation5 + $0x664] ss:$8 sps:$4 sm:$0xff]   ;;  %v6834_v25 = vadd.f32 %v7516_v31, %v6652_v39  ;;  %v4944_v36 = vld [vmem:[#allocation5 + $0x660] ss:$8 sps:$4 sm:$0xff]  }
 0x1b8   :  { %3529 = vmatprep.subr.bf16.mxu1 %v4955_v54  ;;  %v7514_v6 = vld [vmem:[#allocation62_spill] sm:$0xff]  ;;  %3729 = vmatprep.mubr.bf16.mxu0 %v1749_v1  ;;  %5275 = verf.f32 %v1271_v51  ;;  %v7517_v44 = vsub.s32 6, %v7430_v49  ;;  %v7518_v58 = vsub.s32 7, %v7430_v49  ;;  %v7519_v1 = vpack.c.bf16 %v7484_v23, %v7483_v63 }
 0x1b9   :  { %v6826_v7 = vadd.f32 %v7514_v6, %v6652_v39  ;;  %v4959_v15 = vld [vmem:[#allocation5 + $0x350] ss:$8 sps:$4 sm:$0xff]   ;;  %v1095_v39 = vmul.f32 0.5, %v6730_v32  ;;  %v1703_v19 = vpack.c.bf16 %v6822_v8, %v6811_v41  ;;  %5277 = verf.f32 %v1286_v9  ;;  %3751 = vmatpush1.bf16.msra.mxu0 %v4938_v13  ;;  %v4967_v41 = vld [vmem:[#allocation5 + $0x364] ss:$8 sps:$4 sm:$0xff]  }
 0x1ba   :  { %v6839_v54 = vrot.slane %v6428_v45, %v7517_v44  ;;  %v6844_v26 = vrot.slane %v6428_v45, %v7518_v58  ;;  %v5262_v40 = vpop.eup %5261  ;;  %3501 = vmatmul.mubr.bf16.gmra.mrb[80].mxu1 %v7519_v1  ;;  %v7520_v45 = vpack.c.bf16 %v7487_v50, %v7486_v43  ;;  %v1110_v27 = vmul.f32 0.5, %v6736_v14  ;;  %3752 = vmatprep.subr.bf16.mxu0 %v4946_v18  ;;  %v4950_v1 = vld [vmem:[#allocation5 + $0x670] ss:$8 sps:$4 sm:$0xff]  }
 0x1bb   :  { %v1287_v51 = vmul.f32 0.70710677, %v6826_v7  ;;  %v5264_v6 = vpop.eup %5263  ;;  %3530 = vmatpush1.bf16.msra.mxu1 %v4953_v3  ;;  %v1478_v49 = vadd.f32 1.0, %v5262_v40  ;;  %v1111_v63 = vmul.f32 0.5, %v6740_v59  ;;  %v1302_v23 = vmul.f32 0.70710677, %v6830_v5 }
 0x1bc   :  { %3510 = vmatprep.mubr.bf16.mxu1 %v7520_v45  ;;  %v5266_v32 = vpop.eup %5265  ;;  %3531 = vmatprep.subr.bf16.mxu1 %v4961_v56  ;;  %v1479_v9 = vadd.f32 1.0, %v5264_v6  ;;  %v1303_v8 = vmul.f32 0.70710677, %v6834_v25  ;;  %v6862_v43 = vadd.f32 %v6384_v4, %v6839_v54  ;;  %v4952_v3 = vld [vmem:[#allocation5 + $0x674] ss:$8 sps:$4 sm:$0xff]   ;;  %v6868_v13 = vadd.f32 %v6394_v47, %v6844_v26  ;;  %v7521_v6 = vld [vmem:[#allocation64_spill] sm:$0xff] }
 0x1bd   :  { %5279 = verf.f32 %v1287_v51  ;;  %v5268_v50 = vpop.eup %5267  ;;  %v6864_v14 = vmul.f32 %v1478_v49, %v1094_v17  ;;  %v1494_v59 = vadd.f32 1.0, %v5266_v32  ;;  %v1126_v44 = vmul.f32 0.5, %v6744_v33  ;;  %v4965_v4 = vld [vmem:[#allocation5 + $0x360] ss:$8 sps:$4 sm:$0xff]   ;;  %3753 = vmatpush1.bf16.msra.mxu0 %v4944_v36  ;;  %v4973_v33 = vld [vmem:[#allocation5 + $0x374] ss:$8 sps:$4 sm:$0xff]  }
 0x1be   :  { %5281 = verf.f32 %v1302_v23  ;;  %v5270_v56 = vpop.eup %5269  ;;  %v1495_v31 = vadd.f32 1.0, %v5268_v50  ;;  %v1127_v58 = vmul.f32 0.5, %v6782_v37  ;;  %v6875_v17 = vmul.f32 %v1479_v9, %v1095_v39  ;;  %3754 = vmatprep.subr.bf16.mxu0 %v4952_v3  ;;  %v4971_v23 = vld [vmem:[#allocation5 + $0x370] ss:$8 sps:$4 sm:$0xff]  }
 0x1bf   :  { %5283 = verf.f32 %v1303_v8  ;;  %3532 = vmatpush1.bf16.msra.mxu1 %v4959_v15  ;;  %3730 = vmatmul.mubr.bf16.gmra.mrb[84].mxu0 %v1748_v11  ;;  %v6877_v18 = vmul.f32 %v1494_v59, %v1110_v27  ;;  %v1510_v40 = vadd.f32 1.0, %v5270_v56  ;;  %v1192_v47 = vmul.f32 0.70710677, %v6862_v43  ;;  %v4958_v11 = vld [vmem:[#allocation5 + $0x684] ss:$8 sps:$4 sm:$0xff]  }
 0x1c0   :  { %3533 = vmatprep.subr.bf16.mxu1 %v4967_v41  ;;  %v6880_v51 = vmul.f32 %v1495_v31, %v1111_v63  ;;  %v1193_v37 = vmul.f32 0.70710677, %v6868_v13  ;;  %v6885_v15 = vadd.f32 %v6404_v2, %v6839_v54  ;;  %v6889_v10 = vadd.f32 %v6411_v60, %v6844_v26  ;;  %v5272_v55 = vpop.eup %5271  ;;  %3772 = vmatprep.mubr.bf16.mxu0 %v1703_v19  ;;  %v4979_v8 = vld [vmem:[#allocation5 + $0x384] ss:$8 sps:$4 sm:$0xff]   ;;  %v4986_v39 = vld [vmem:[#allocation5 + $0x6d0] ss:$8 sps:$4 sm:$0xff]  }
 0x1c1   :  { %v1142_v36 = vmul.f32 0.5, %v6786_v34  ;;  %5285 = verf.f32 %v1192_v47  ;;  %v5274_v49 = vpop.eup %5273  ;;  %v7522_v2 = vpack.c.bf16 %v7493_v48, %v7492_v24  ;;  %v1511_v60 = vadd.f32 1.0, %v5272_v55  ;;  %3755 = vmatpush1.bf16.msra.mxu0 %v4950_v1  ;;  %v7524_v47 = vld [vmem:[#allocation61_spill] sm:$0xff] }
 0x1c2   :  { %v1143_v27 = vmul.f32 0.5, %v6794_v12  ;;  %5287 = verf.f32 %v1193_v37  ;;  %v1208_v19 = vmul.f32 0.70710677, %v6885_v15  ;;  %v5276_v63 = vpop.eup %5275  ;;  %v7523_v34 = vpack.c.bf16 %v7497_v20, %v7496_v30  ;;  %v4956_v12 = vld [vmem:[#allocation5 + $0x680] ss:$8 sps:$4 sm:$0xff]   ;;  %3756 = vmatprep.subr.bf16.mxu0 %v4958_v11 }
 0x1c3   :  { %3511 = vmatmul.mubr.bf16.gmra.mrb[84].mxu1 %v7522_v2  ;;  %v6904_v32 = vmul.f32 %v1510_v40, %v1126_v44  ;;  %v1526_v41 = vadd.f32 1.0, %v5274_v49  ;;  %v1209_v9 = vmul.f32 0.70710677, %v6889_v10  ;;  %v5278_v48 = vpop.eup %5277  ;;  %v6909_v50 = vmul.f32 %v1511_v60, %v1127_v58  ;;  %v4964_v20 = vld [vmem:[#allocation5 + $0x694] ss:$8 sps:$4 sm:$0xff]  }
 0x1c4   :  { %3534 = vmatpush1.bf16.msra.mxu1 %v4965_v4  ;;  %3553 = vmatprep.mubr.bf16.mxu1 %v7523_v34  ;;  %v1527_v3 = vadd.f32 1.0, %v5276_v63  ;;  %v1158_v30 = vmul.f32 0.5, %v6798_v35  ;;  %5289 = verf.f32 %v1208_v19  ;;  %v1542_v56 = vadd.f32 1.0, %v5278_v48  ;;  %v4962_v11 = vld [vmem:[#allocation5 + $0x690] ss:$8 sps:$4 sm:$0xff]   ;;  %v7527_v63 = vld [vmem:[#allocation39_spill] sm:$0xff] }
 0x1c5   :  { %3535 = vmatprep.subr.bf16.mxu1 %v4973_v33  ;;  %v6912_v59 = vmul.f32 %v1526_v41, %v1142_v36  ;;  %v1159_v31 = vmul.f32 0.5, %v6826_v7  ;;  %5291 = verf.f32 %v1209_v9  ;;  %v6917_v4 = vmul.f32 %v6808_v21, %v6530_v42  ;;  %v4977_v7 = vld [vmem:[#allocation5 + $0x380] ss:$8 sps:$4 sm:$0xff]   ;;  %3757 = vmatpush1.bf16.msra.mxu0 %v4956_v12  ;;  %v7526_v2 = vld [vmem:[#allocation46_spill] sm:$0xff]  ;;  %v7529_v12 = vld [vmem:[#allocation37_spill] sm:$0xff] }
 0x1c6   :  { %v6919_v40 = vmul.f32 %v1527_v3, %v1143_v27  ;;  %v1174_v58 = vmul.f32 0.5, %v6830_v5  ;;  %v6926_v33 = vmul.f32 %v6805_v28, %v6472_v0  ;;  %v1175_v55 = vmul.f32 0.5, %v6834_v25  ;;  %v4985_v5 = vld [vmem:[#allocation5 + $0x394] ss:$8 sps:$4 sm:$0xff]   ;;  %3758 = vmatprep.subr.bf16.mxu0 %v4964_v20  ;;  %v4970_v27 = vld [vmem:[#allocation5 + $0x6a4] ss:$8 sps:$4 sm:$0xff]  }
 0x1c7   :  { %v5280_v44 = vpop.eup %5279  ;;  %v6931_v36 = vmul.f32 %v1542_v56, %v1158_v30  ;;  %v7525_v28 = vld [vmem:[#allocation33_spill] sm:$0xff]  ;;  %v6941_v34 = vadd.f32 %v7527_v63, %v6839_v54  ;;  %v4968_v9 = vld [vmem:[#allocation5 + $0x6a0] ss:$8 sps:$4 sm:$0xff]   ;;  %v7531_v30 = vld [vmem:[#allocation38_spill] sm:$0xff] }
 0x1c8   :  { %v5282_v1 = vpop.eup %5281  ;;  %3536 = vmatpush1.bf16.msra.mxu1 %v4971_v23  ;;  %v1543_v37 = vadd.f32 1.0, %v5280_v44  ;;  %v7528_v23 = vld [vmem:[#allocation40_spill] sm:$0xff]  ;;  %v6953_v20 = vadd.f32 %v7531_v30, %v6839_v54  ;;  %v4983_v44 = vld [vmem:[#allocation5 + $0x390] ss:$8 sps:$4 sm:$0xff]   ;;  %v1080_v30 = vmul.f32 0.5, %v6885_v15 }
 0x1c9   :  { %v5284_v21 = vpop.eup %5283  ;;  %3537 = vmatprep.subr.bf16.mxu1 %v4979_v8  ;;  %v1558_v49 = vadd.f32 1.0, %v5282_v1  ;;  %v6945_v41 = vadd.f32 %v7528_v23, %v6844_v26  ;;  %v7530_v8 = vld [vmem:[#allocation21_spill] sm:$0xff]  ;;  %3759 = vmatpush1.bf16.msra.mxu0 %v4962_v11  ;;  %v4991_v63 = vld [vmem:[#allocation5 + $0x3a4] ss:$8 sps:$4 sm:$0xff]   ;;  %v7532_v15 = vld [vmem:[#allocation22_spill] sm:$0xff] }
 0x1ca   :  { %v6937_v25 = vmul.f32 %v1543_v37, %v1159_v31  ;;  %v1559_v19 = vadd.f32 1.0, %v5284_v21  ;;  %v1064_v37 = vmul.f32 0.5, %v6862_v43  ;;  %v1224_v21 = vmul.f32 0.70710677, %v6941_v34  ;;  %3760 = vmatprep.subr.bf16.mxu0 %v4970_v27  ;;  %v7533_v56 = vld [vmem:[#allocation44_spill] sm:$0xff]  ;;  %v7534_v60 = vld [vmem:[#allocation17_spill] sm:$0xff] }
 0x1cb   :  { %v6947_v48 = vmul.f32 %v1558_v49, %v1174_v58  ;;  %v5286_v31 = vpop.eup %5285  ;;  %v1065_v58 = vmul.f32 0.5, %v6868_v13  ;;  %v1240_v13 = vmul.f32 0.70710677, %v6953_v20  ;;  %v6976_v3 = vadd.f32 %v7533_v56, %v6839_v54  ;;  %v4989_v42 = vld [vmem:[#allocation5 + $0x3a0] ss:$8 sps:$4 sm:$0xff]  }
 0x1cc   :  { %3538 = vmatpush1.bf16.msra.mxu1 %v4977_v7  ;;  %v6957_v1 = vmul.f32 %v1559_v19, %v1175_v55  ;;  %v5288_v49 = vpop.eup %5287  ;;  %v1448_v23 = vadd.f32 1.0, %v5286_v31  ;;  %v1225_v7 = vmul.f32 0.70710677, %v6945_v41  ;;  %v4976_v55 = vld [vmem:[#allocation5 + $0x6b4] ss:$8 sps:$4 sm:$0xff]   ;;  %5293 = verf.f32 %v1224_v21 }
 0x1cd   :  { %3539 = vmatprep.subr.bf16.mxu1 %v4985_v5  ;;  %v1449_v19 = vadd.f32 1.0, %v5288_v49  ;;  %v1081_v5 = vmul.f32 0.5, %v6889_v10  ;;  %v6972_v31 = vadd.f32 %v7532_v15, %v6844_v26  ;;  %v4974_v49 = vld [vmem:[#allocation5 + $0x6b0] ss:$8 sps:$4 sm:$0xff]   ;;  %v6982_v10 = vadd.f32 %v7534_v60, %v6844_v26  ;;  %3761 = vmatpush1.bf16.msra.mxu0 %v4968_v9  ;;  %v4982_v0 = vld [vmem:[#allocation5 + $0x6c4] ss:$8 sps:$4 sm:$0xff]  }
 0x1ce   :  { %v5290_v11 = vpop.eup %5289  ;;  %5295 = verf.f32 %v1225_v7  ;;  %v6978_v43 = vmul.f32 %v1448_v23, %v1064_v37  ;;  %v4997_v7 = vld [vmem:[#allocation5 + $0x3b4] ss:$8 sps:$4 sm:$0xff]   ;;  %3762 = vmatprep.subr.bf16.mxu0 %v4976_v55  ;;  %v1256_v37 = vmul.f32 0.70710677, %v6976_v3  ;;  %v7535_v60 = vld [vmem:[#allocation68_spill] sm:$0xff] }
 0x1cf   :  { %v5292_v27 = vpop.eup %5291  ;;  %v1464_v21 = vadd.f32 1.0, %v5290_v11  ;;  %5297 = verf.f32 %v1240_v13  ;;  %v6984_v15 = vmul.f32 %v1449_v19, %v1065_v58  ;;  %v1241_v56 = vmul.f32 0.70710677, %v6972_v31  ;;  %v7536_v58 = vld [vmem:[#allocation18_spill] sm:$0xff]  ;;  %v4980_v19 = vld [vmem:[#allocation5 + $0x6c0] ss:$8 sps:$4 sm:$0xff]  }
 0x1d0   :  { %3540 = vmatpush1.bf16.msra.mxu1 %v4983_v44  ;;  %v1465_v35 = vadd.f32 1.0, %v5292_v27  ;;  %v1257_v23 = vmul.f32 0.70710677, %v6982_v10  ;;  %v4995_v55 = vld [vmem:[#allocation5 + $0x3b0] ss:$8 sps:$4 sm:$0xff]   ;;  %v7537_v11 = vld [vmem:[#allocation47_spill] sm:$0xff] }
 0x1d1   :  { %3541 = vmatprep.subr.bf16.mxu1 %v4991_v63  ;;  %v6987_v44 = vmul.f32 %v1464_v21, %v1080_v30  ;;  %5299 = verf.f32 %v1241_v56  ;;  %v6997_v63 = vadd.f32 %v7536_v58, %v6839_v54  ;;  %v7003_v27 = vadd.f32 %v7537_v11, %v6844_v26  ;;  %3763 = vmatpush1.bf16.msra.mxu0 %v4974_v49  ;;  %v4988_v21 = vld [vmem:[#allocation5 + $0x6d4] ss:$8 sps:$4 sm:$0xff]   ;;  %v5003_v56 = vld [vmem:[#allocation5 + $0x3c4] ss:$8 sps:$4 sm:$0xff]  }
 0x1d2   :  { %v6991_v13 = vmul.f32 %v1465_v35, %v1081_v5  ;;  %5301 = verf.f32 %v1256_v37  ;;  %v7538_v35 = vld [vmem:[#allocation69_spill] sm:$0xff]  ;;  %3764 = vmatprep.subr.bf16.mxu0 %v4982_v0  ;;  %v1096_v37 = vmul.f32 0.5, %v6941_v34  ;;  %v5001_v34 = vld [vmem:[#allocation5 + $0x3c0] ss:$8 sps:$4 sm:$0xff]  }
 0x1d3   :  { %v7007_v5 = vadd.f32 %v7538_v35, %v6839_v54  ;;  %5303 = verf.f32 %v1257_v23  ;;  %v1272_v58 = vmul.f32 0.70710677, %v6997_v63  ;;  %v1273_v11 = vmul.f32 0.70710677, %v7003_v27  ;;  %v7539_v35 = vld [vmem:[#allocation70_spill] sm:$0xff]  ;;  %v7541_v23 = vld [vmem:[#allocation71_spill] sm:$0xff] }
 0x1d4   :  { %3542 = vmatpush1.bf16.msra.mxu1 %v4989_v42  ;;  %v7017_v49 = vadd.f32 %v7539_v35, %v6844_v26  ;;  %v7025_v42 = vadd.f32 %v7541_v23, %v6844_v26  ;;  %v1112_v35 = vmul.f32 0.5, %v6953_v20  ;;  %v1097_v26 = vmul.f32 0.5, %v6945_v41 }
 0x1d5   :  { %3543 = vmatprep.subr.bf16.mxu1 %v4997_v7  ;;  %v1288_v30 = vmul.f32 0.70710677, %v7007_v5  ;;  %5305 = verf.f32 %v1272_v58  ;;  %v7540_v7 = vld [vmem:[#allocation52_spill] sm:$0xff]  ;;  %3765 = vmatpush1.bf16.msra.mxu0 %v4980_v19  ;;  %v5009_v58 = vld [vmem:[#allocation5 + $0x3d4] ss:$8 sps:$4 sm:$0xff]   ;;  %v1113_v20 = vmul.f32 0.5, %v6972_v31 }
 0x1d6   :  { %v7021_v9 = vadd.f32 %v7540_v7, %v6839_v54  ;;  %v5294_v0 = vpop.eup %5293  ;;  %5307 = verf.f32 %v1273_v11  ;;  %v1289_v54 = vmul.f32 0.70710677, %v7017_v49  ;;  %3766 = vmatprep.subr.bf16.mxu0 %v4988_v21  ;;  %v1305_v19 = vmul.f32 0.70710677, %v7025_v42  ;;  %v4992_v21 = vld [vmem:[#allocation5 + $0x6e0] ss:$8 sps:$4 sm:$0xff]  }
 0x1d7   :  { %v1480_v24 = vadd.f32 1.0, %v5294_v0  ;;  %5309 = verf.f32 %v1288_v30  ;;  %v5015_v0 = vld [vmem:[#allocation5 + $0x3e4] ss:$8 sps:$4 sm:$0xff]   ;;  %v1129_v31 = vmul.f32 0.5, %v6982_v10 }
 0x1d8   :  { %3544 = vmatpush1.bf16.msra.mxu1 %v4995_v55  ;;  %v5296_v45 = vpop.eup %5295  ;;  %v1304_v55 = vmul.f32 0.70710677, %v7021_v9  ;;  %5311 = verf.f32 %v1289_v54  ;;  %v5006_v10 = vld [vmem:[#allocation5 + $0x704] ss:$8 sps:$4 sm:$0xff]  }
 0x1d9   :  { %3545 = vmatprep.subr.bf16.mxu1 %v5003_v56  ;;  %v5298_v7 = vpop.eup %5297  ;;  %v1481_v23 = vadd.f32 1.0, %v5296_v45  ;;  %v7031_v53 = vmul.f32 %v1480_v24, %v1096_v37  ;;  %v5007_v56 = vld [vmem:[#allocation5 + $0x3d0] ss:$8 sps:$4 sm:$0xff]   ;;  %3767 = vmatpush1.bf16.msra.mxu0 %v4986_v39  ;;  %v5000_v24 = vld [vmem:[#allocation5 + $0x6f4] ss:$8 sps:$4 sm:$0xff]  }
 0x1da   :  { %v1496_v11 = vadd.f32 1.0, %v5298_v7  ;;  %5313 = verf.f32 %v1304_v55  ;;  %3768 = vmatprep.subr.bf16.mxu0 %v4994_v22  ;;  %v1144_v22 = vmul.f32 0.5, %v6997_v63 }
 0x1db   :  { %v5300_v30 = vpop.eup %5299  ;;  %5315 = verf.f32 %v1305_v19  ;;  %v7037_v37 = vmul.f32 %v1481_v23, %v1097_v26  ;;  %v4998_v26 = vld [vmem:[#allocation5 + $0x6f0] ss:$8 sps:$4 sm:$0xff]   ;;  %v5021_v23 = vld [vmem:[#allocation5 + $0x3f4] ss:$8 sps:$4 sm:$0xff]  }
 0x1dc   :  { %3546 = vmatpush1.bf16.msra.mxu1 %v5001_v34  ;;  %v7035_v41 = vmul.f32 %v1496_v11, %v1112_v35  ;;  %v5302_v45 = vpop.eup %5301  ;;  %v1497_v54 = vadd.f32 1.0, %v5300_v30  ;;  %v1128_v34 = vmul.f32 0.5, %v6976_v3  ;;  %v1145_v3 = vmul.f32 0.5, %v7003_v27 }
 0x1dd   :  { %3547 = vmatprep.subr.bf16.mxu1 %v5009_v58  ;;  %v5304_v7 = vpop.eup %5303  ;;  %v1512_v38 = vadd.f32 1.0, %v5302_v45  ;;  %v5013_v58 = vld [vmem:[#allocation5 + $0x3e0] ss:$8 sps:$4 sm:$0xff]   ;;  %3769 = vmatpush1.bf16.msra.mxu0 %v4992_v21  ;;  %v1160_v21 = vmul.f32 0.5, %v7007_v5  ;;  %v1177_v5 = vmul.f32 0.5, %v7025_v42 }
 0x1de   :  { %v7043_v35 = vmul.f32 %v1497_v54, %v1113_v20  ;;  %v1513_v55 = vadd.f32 1.0, %v5304_v7  ;;  %3770 = vmatprep.subr.bf16.mxu0 %v5000_v24  ;;  %v1161_v24 = vmul.f32 0.5, %v7017_v49  ;;  %v5010_v42 = vld [vmem:[#allocation5 + $0x710] ss:$8 sps:$4 sm:$0xff]  }
 0x1df   :  { %v5306_v11 = vpop.eup %5305  ;;  %v7047_v30 = vmul.f32 %v1512_v38, %v1128_v34  ;;  %v5004_v38 = vld [vmem:[#allocation5 + $0x700] ss:$8 sps:$4 sm:$0xff]  }
 0x1e0   :  { %3548 = vmatpush1.bf16.msra.mxu1 %v5007_v56  ;;  %v5308_v19 = vpop.eup %5307  ;;  %v1528_v45 = vadd.f32 1.0, %v5306_v11  ;;  %v1721_v56 = vpack.c.bf16 %v7043_v35, %v7037_v37  ;;  %v7051_v54 = vmul.f32 %v1513_v55, %v1129_v31  ;;  %v1176_v11 = vmul.f32 0.5, %v7021_v9  ;;  %v5012_v55 = vld [vmem:[#allocation5 + $0x714] ss:$8 sps:$4 sm:$0xff]   ;;  %v2010_v35 = vld [vmem:[%s7315_s4] sm:$0x3] }
 0x1e1   :  { %3549 = vmatprep.subr.bf16.mxu1 %v5015_v0  ;;  %v5310_v20 = vpop.eup %5309  ;;  %v1529_v63 = vadd.f32 1.0, %v5308_v19  ;;  %v5019_v0 = vld [vmem:[#allocation5 + $0x3f0] ss:$8 sps:$4 sm:$0xff]   ;;  %3771 = vmatpush1.bf16.msra.mxu0 %v4998_v26 }
 0x1e2   :  { %v7054_v7 = vmul.f32 %v1528_v45, %v1144_v22  ;;  %v1544_v27 = vadd.f32 1.0, %v5310_v20  ;;  %v5312_v39 = vpop.eup %5311  ;;  %3813 = vmatprep.subr.bf16.mxu0 %v5006_v10  ;;  %v5018_v20 = vld [vmem:[#allocation5 + $0x724] ss:$8 sps:$4 sm:$0xff]  }
 0x1e3   :  { %v7057_v34 = vmul.f32 %v1529_v63, %v1145_v3  ;;  %v1545_v19 = vadd.f32 1.0, %v5312_v39  ;;  %v7543_v3 = vpack.c.bf16 %v6880_v51, %v6875_v17  ;;  %v5016_v51 = vld [vmem:[#allocation5 + $0x720] ss:$8 sps:$4 sm:$0xff]  }
 0x1e4   :  { %3550 = vmatpush1.bf16.msra.mxu1 %v5013_v58  ;;  %v5314_v31 = vpop.eup %5313  ;;  %v1736_v58 = vpack.c.bf16 %v7054_v7, %v7047_v30  ;;  %v7063_v45 = vmul.f32 %v1544_v27, %v1160_v21  ;;  %v7544_v21 = vld [vmem:[#allocation50_spill] sm:$0xff]  ;;  %v7545_v27 = vld [vmem:[#allocation27_spill] sm:$0xff] }
 0x1e5   :  { %3551 = vmatprep.subr.bf16.mxu1 %v5021_v23  ;;  %v5316_v22 = vpop.eup %5315  ;;  %v1560_v49 = vadd.f32 1.0, %v5314_v31  ;;  %v1737_v26 = vpack.c.bf16 %v7057_v34, %v7051_v54  ;;  %v7542_v23 = vpack.c.bf16 %v6790_v16, %v6768_v46  ;;  %v7070_v9 = vmul.f32 %v1545_v19, %v1161_v24  ;;  %v5024_v24 = vld [vmem:[#allocation5 + $0x734] ss:$8 sps:$4 sm:$0xff]   ;;  %v5025_v19 = vld [vmem:[#allocation5 + $0x740] ss:$8 sps:$4 sm:$0xff]  }
 0x1e6   :  { %v1561_v39 = vadd.f32 1.0, %v5316_v22  ;;  %v7546_v46 = vpack.c.bf16 %v7544_v21, %v7545_v27  ;;  %v7549_v31 = vpack.c.bf16 %v6919_v40, %v6909_v50  ;;  %v5028_v50 = vld [vmem:[#allocation5 + $0x750] ss:$8 sps:$4 sm:$0xff]   ;;  %v7553_v40 = vpack.c.bf16 %v6957_v1, %v6937_v25  ;;  %v5048_v22 = vld [vmem:[#allocation5 + $0x7b4] ss:$8 sps:$4 sm:$0xff]   ;;  %v7564_v7 = vld [vmem:[#allocation67_spill] sm:$0xff] }
 0x1e7   :  { %3773 = vmatmul.mubr.bf16.vlgmr.msra.gmra.mrb[72].mxu0 %v7542_v23  ;;  %v7075_v10 = vmul.f32 %v1560_v49, %v1176_v11  ;;  %v5022_v11 = vld [vmem:[#allocation5 + $0x730] ss:$8 sps:$4 sm:$0xff]   ;;  %v7557_v1 = vpack.c.bf16 %v6991_v13, %v6984_v15  ;;  %v5051_v13 = vld [vmem:[#allocation5 + $0x7c4] ss:$8 sps:$4 sm:$0xff]   ;;  %v5049_v49 = vld [vmem:[#allocation5 + $0x7c0] ss:$8 sps:$4 sm:$0xff]   ;;  %v7560_v21 = vpack.c.bf16 %v7035_v41, %v7031_v53 }
 0x1e8   :  { %3552 = vmatpush1.bf16.msra.mxu1 %v5019_v0  ;;  %3814 = vmatpush1.bf16.msra.mxu0 %v5004_v38  ;;  %v7077_v63 = vmul.f32 %v1561_v39, %v1177_v5  ;;  %v7547_v0 = vpack.c.bf16 %v6407_v52, %v7521_v6  ;;  %v7548_v38 = vpack.c.bf16 %v6877_v18, %v6864_v14  ;;  %v5027_v52 = vld [vmem:[#allocation5 + $0x744] ss:$8 sps:$4 sm:$0xff]   ;;  %v5030_v14 = vld [vmem:[#allocation5 + $0x754] ss:$8 sps:$4 sm:$0xff]   ;;  %v5034_v25 = vld [vmem:[#allocation5 + $0x770] ss:$8 sps:$4 sm:$0xff]  }
 0x1e9   :  { %3782 = vmatprep.mubr.bf16.mxu0 %v7543_v3  ;;  %3815 = vmatprep.subr.bf16.mxu0 %v5012_v55  ;;  %v1752_v16 = vpack.c.bf16 %v7075_v10, %v7063_v45  ;;  %v7550_v6 = vpack.c.bf16 %v6389_v61, %v7524_v47  ;;  %v7551_v55 = vpack.c.bf16 %v7526_v2, %v7525_v28  ;;  %v5033_v61 = vld [vmem:[#allocation5 + $0x764] ss:$8 sps:$4 sm:$0xff]   ;;  %v5031_v2 = vld [vmem:[#allocation5 + $0x760] ss:$8 sps:$4 sm:$0xff]   ;;  %v5040_v5 = vld [vmem:[#allocation5 + $0x790] ss:$8 sps:$4 sm:$0xff]  }
 0x1ea   :  { %v1753_v17 = vpack.c.bf16 %v7077_v63, %v7070_v9  ;;  %v7552_v18 = vpack.c.bf16 %v6912_v59, %v6904_v32  ;;  %v7554_v47 = vpack.c.bf16 %v7530_v8, %v7529_v12  ;;  %v7555_v28 = vpack.c.bf16 %v6917_v4, %v6802_v62  ;;  %v5036_v32 = vld [vmem:[#allocation5 + $0x774] ss:$8 sps:$4 sm:$0xff]   ;;  %v5039_v12 = vld [vmem:[#allocation5 + $0x784] ss:$8 sps:$4 sm:$0xff]   ;;  %v5037_v4 = vld [vmem:[#allocation5 + $0x780] ss:$8 sps:$4 sm:$0xff]  }
 0x1eb   :  { %3554 = vmatmul.mubr.bf16.vlgmr.msra.gmra.mrb[72].mxu1 %v7546_v46  ;;  %v7556_v59 = vpack.c.bf16 %v6947_v48, %v6931_v36  ;;  %v7558_v62 = vpack.c.bf16 %v6926_v33, %v7535_v60  ;;  %v5042_v8 = vld [vmem:[#allocation5 + $0x794] ss:$8 sps:$4 sm:$0xff]   ;;  %v5045_v36 = vld [vmem:[#allocation5 + $0x7a4] ss:$8 sps:$4 sm:$0xff]   ;;  %v5043_v48 = vld [vmem:[#allocation5 + $0x7a0] ss:$8 sps:$4 sm:$0xff]  }
 0x1ec   :  { %3563 = vmatprep.mubr.bf16.mxu1 %v7547_v0  ;;  %3816 = vmatpush1.bf16.msra.mxu0 %v5010_v42  ;;  %v5046_v15 = vld [vmem:[#allocation5 + $0x7b0] ss:$8 sps:$4 sm:$0xff]   ;;  %v5054_v33 = vld [vmem:[#allocation5 + $0x7d4] ss:$8 sps:$4 sm:$0xff]   ;;  %v5057_v23 = vld [vmem:[#allocation5 + $0x7e4] ss:$8 sps:$4 sm:$0xff]  }
 0x1ed   :  { %3817 = vmatprep.subr.bf16.mxu0 %v5018_v20  ;;  %v5052_v60 = vld [vmem:[#allocation5 + $0x7d0] ss:$8 sps:$4 sm:$0xff]   ;;  %v5055_v39 = vld [vmem:[#allocation5 + $0x7e0] ss:$8 sps:$4 sm:$0xff]   ;;  %v5060_v42 = vld [vmem:[#allocation5 + $0x7f4] ss:$8 sps:$4 sm:$0xff]   ;;  %v7559_v20 = vpack.c.bf16 %v6987_v44, %v6978_v43 }
 0x1ee   :  { %v5058_v3 = vld [vmem:[#allocation5 + $0x7f0] ss:$8 sps:$4 sm:$0xff]   ;;  %v7561_v43 = vld [vmem:[#allocation12_spill] sm:$0xff]  ;;  %v7565_v45 = vld [vmem:[#allocation35_spill] sm:$0xff] }
 0x1ef   :  { %3783 = vmatmul.mubr.bf16.gmra.mrb[76].mxu0 %v7548_v38  ;;  %v106_v53 = vld [vmem:[%s7313_s2 + $0x10] sm:$0x3]  ;;  %v7563_v30 = vld [vmem:[#allocation66_spill] sm:$0xff]  ;;  %v2015_v54 = vrot.slane %v2010_v35, %v7561_v43  ;;  %v7566_v9 = vld [vmem:[#allocation11_spill] sm:$0xff] }
 0x1f0   :  { %3818 = vmatpush1.bf16.msra.mxu0 %v5016_v51  ;;  %3792 = vmatprep.mubr.bf16.mxu0 %v7549_v31  ;;  %v177_v44 = vrot.slane %v106_v53, %v7561_v43  ;;  %v7562_v41 = vld [vmem:[#allocation13_spill] sm:$0xff] }
 0x1f1   :  { %3819 = vmatprep.subr.bf16.mxu0 %v5024_v24  ;;  %v181_v37 = vrot.slane %v106_v53, %v7562_v41 }
 0x1f3   :  { %3564 = vmatmul.mubr.bf16.gmra.mrb[76].mxu1 %v7550_v6  ;;  %v1014_v34 = vadd.f32 %v7564_v7, %v181_v37  ;;  %v1018_v10 = vadd.f32 %v7566_v9, %v181_v37  ;;  %v7575_v9 = vld [vmem:[#allocation30_spill] sm:$0xff] }
 0x1f4   :  { %3573 = vmatprep.mubr.bf16.mxu1 %v7551_v55  ;;  %3820 = vmatpush1.bf16.msra.mxu0 %v5022_v11  ;;  %v7567_v11 = vld [vmem:[#allocation32_spill] sm:$0xff] }
 0x1f5   :  { %3821 = vmatprep.subr.bf16.mxu0 %v5027_v52  ;;  %v1022_v31 = vadd.f32 %v7567_v11, %v177_v44  ;;  %v7568_v55 = vld [vmem:[#allocation20_spill] sm:$0xff] }
 0x1f7   :  { %3793 = vmatmul.mubr.bf16.gmra.mrb[80].mxu0 %v7552_v18  ;;  %v7569_v18 = vld [vmem:[#allocation24_spill] sm:$0xff] }
 0x1f8   :  { %3822 = vmatpush1.bf16.msra.mxu0 %v5025_v19  ;;  %3802 = vmatprep.mubr.bf16.mxu0 %v7553_v40  ;;  %v1024_v19 = vadd.f32 %v7568_v55, %v181_v37  ;;  %v7570_v40 = vld [vmem:[#allocation60_spill] sm:$0xff] }
 0x1f9   :  { %3823 = vmatprep.subr.bf16.mxu0 %v5030_v14 }
 0x1fb   :  { %3574 = vmatmul.mubr.bf16.gmra.mrb[80].mxu1 %v7554_v47  ;;  %v4470_v47 = vadd.f32 %v2015_v54, %v1022_v31 }
 0x1fc   :  { %3583 = vmatprep.mubr.bf16.mxu1 %v7555_v28  ;;  %3824 = vmatpush1.bf16.msra.mxu0 %v5028_v50  ;;  %v1026_v50 = vadd.f32 %v7569_v18, %v177_v44 }
 0x1fd   :  { %3825 = vmatprep.subr.bf16.mxu0 %v5033_v61  ;;  %v1028_v61 = vadd.f32 %v7570_v40, %v181_v37 }
 0x1ff   :  { %3803 = vmatmul.mubr.bf16.gmra.mrb[84].mxu0 %v7556_v59 }
 0x200   :  { %3826 = vmatpush1.bf16.msra.mxu0 %v5031_v2  ;;  %3845 = vmatprep.mubr.bf16.mxu0 %v7557_v1 }
 0x201   :  { %3827 = vmatprep.subr.bf16.mxu0 %v5036_v32 }
 0x203   :  { %3584 = vmatmul.mubr.bf16.gmra.mrb[84].mxu1 %v7558_v62 }
 0x204   :  { %3828 = vmatpush1.bf16.msra.mxu0 %v5034_v25  ;;  %v4478_v25 = vadd.f32 %v2015_v54, %v1026_v50 }
 0x205   :  { %3829 = vmatprep.subr.bf16.mxu0 %v5039_v12 }
 0x208   :  { %3830 = vmatpush1.bf16.msra.mxu0 %v5037_v4  ;;  %v7571_v4 = vld [vmem:[#allocation19_spill] sm:$0xff] }
 0x209   :  { %3831 = vmatprep.subr.bf16.mxu0 %v5042_v8  ;;  %v1032_v8 = vadd.f32 %v7571_v4, %v177_v44 }
 0x20c   :  { %3832 = vmatpush1.bf16.msra.mxu0 %v5040_v5 }
 0x20d   :  { %3833 = vmatprep.subr.bf16.mxu0 %v5045_v36 }
 0x210   :  { %3834 = vmatpush1.bf16.msra.mxu0 %v5043_v48  ;;  %v7572_v48 = vld [vmem:[#allocation23_spill] sm:$0xff] }
 0x211   :  { %3835 = vmatprep.subr.bf16.mxu0 %v5048_v22  ;;  %v1034_v22 = vadd.f32 %v7572_v48, %v181_v37 }
 0x214   :  { %3836 = vmatpush1.bf16.msra.mxu0 %v5046_v15 }
 0x215   :  { %3837 = vmatprep.subr.bf16.mxu0 %v5051_v13  ;;  %v7573_v13 = vld [vmem:[#allocation41_spill] sm:$0xff] }
 0x218   :  { %3838 = vmatpush1.bf16.msra.mxu0 %v5049_v49  ;;  %v1036_v49 = vadd.f32 %v7573_v13, %v177_v44 }
 0x219   :  { %3839 = vmatprep.subr.bf16.mxu0 %v5054_v33  ;;  %v7574_v33 = vld [vmem:[#allocation28_spill] sm:$0xff] }
 0x21c   :  { %3840 = vmatpush1.bf16.msra.mxu0 %v5052_v60  ;;  %v1038_v60 = vadd.f32 %v7574_v33, %v181_v37 }
 0x21d   :  { %3841 = vmatprep.subr.bf16.mxu0 %v5057_v23  ;;  %v4486_v23 = vadd.f32 %v2015_v54, %v1032_v8 }
 0x220   :  { %3842 = vmatpush1.bf16.msra.mxu0 %v5055_v39 }
 0x221   :  { %3843 = vmatprep.subr.bf16.mxu0 %v5060_v42 }
 0x224   :  { %3844 = vmatpush1.bf16.msra.mxu0 %v5058_v3 }
 0x227   :  { %3846 = vmatmul.mubr.bf16.vlgmr.msra.gmra.mrb[72].mxu0 %v7559_v20 }
 0x228   :  { %3855 = vmatprep.mubr.bf16.mxu0 %v1721_v56  ;;  %v1012_v56 = vadd.f32 %v7563_v30, %v177_v44 }
 0x22a   :  { %v4454_v63 = vadd.f32 %v2015_v54, %v1012_v56  ;;  %v1042_v56 = vadd.f32 %v6761_v29, %v177_v44 }
 0x22f   :  { %3856 = vmatmul.mubr.bf16.gmra.mrb[76].mxu0 %v7560_v21  ;;  %v4494_v21 = vadd.f32 %v2015_v54, %v1036_v49 }
 0x230   :  { %3865 = vmatprep.mubr.bf16.mxu0 %v1737_v26  ;;  %v1016_v26 = vadd.f32 %v7565_v45, %v177_v44  ;;  %v1044_v45 = vadd.f32 %v6766_v57, %v181_v37 }
 0x237   :  { %3866 = vmatmul.mubr.bf16.gmra.mrb[80].mxu0 %v1736_v58  ;;  %v2019_v58 = vrot.slane %v2010_v35, %v7562_v41 }
 0x238   :  { %3875 = vmatprep.mubr.bf16.mxu0 %v1753_v17  ;;  %v4462_v17 = vadd.f32 %v2015_v54, %v1016_v26 }
 0x239   :  { %v4458_v46 = vadd.f32 %v2019_v58, %v1014_v34  ;;  %v4466_v38 = vadd.f32 %v2019_v58, %v1018_v10  ;;  %v4474_v2 = vadd.f32 %v2019_v58, %v1024_v19  ;;  %v4482_v62 = vadd.f32 %v2019_v58, %v1028_v61 }
 0x23a   :  { %v4490_v42 = vadd.f32 %v2019_v58, %v1034_v22  ;;  %v4498_v30 = vadd.f32 %v2019_v58, %v1038_v60  ;;  %v1046_v10 = vadd.f32 %v7575_v9, %v177_v44 }
 0x23c   :  { %v4510_v11 = vadd.f32 %v2015_v54, %v1046_v10 }
 0x23f   :  { %3876 = vmatmul.mubr.bf16.gmra.mrb[84].mxu0 %v1752_v16 }
 0x2be   :  { %v3555_v27 = vpop.f32.mrb[72].mxu1 }
 0x2bf   :  { %v4455_v16 = vadd.f32 %v4454_v63, %v3555_v27  ;;  %v3557_v0 = vpop.f32.mrb[73].mxu1  ;;  %v7576_v63 = vld [vmem:[#allocation43_spill] sm:$0xff] }
 0x2c0   :  { %v4459_v51 = vadd.f32 %v4458_v46, %v3557_v0  ;;  %v3559_v24 = vpop.f32.mrb[74].mxu1  ;;  %v1048_v27 = vadd.f32 %v7576_v63, %v181_v37  ;;  %v4502_v46 = vadd.f32 %v2015_v54, %v1042_v56 }
 0x2c1   :  { %v4463_v52 = vadd.f32 %v4462_v17, %v3559_v24  ;;  %v3561_v6 = vpop.f32.mrb[75].mxu1  ;;  %v4506_v17 = vadd.f32 %v2019_v58, %v1044_v45 }
 0x2c2   :  { %v4467_v14 = vadd.f32 %v4466_v38, %v3561_v6  ;;  %v4514_v55 = vadd.f32 %v2019_v58, %v1048_v27 }
 0x2c6   :  { %v3565_v28 = vpop.f32.mrb[76].mxu1 }
 0x2c7   :  { %v4471_v32 = vadd.f32 %v4470_v47, %v3565_v28  ;;  %v3567_v59 = vpop.f32.mrb[77].mxu1 }
 0x2c8   :  { %v4475_v1 = vadd.f32 %v4474_v2, %v3567_v59  ;;  %v3569_v12 = vpop.f32.mrb[78].mxu1 }
 0x2c9   :  { %v4479_v5 = vadd.f32 %v4478_v25, %v3569_v12  ;;  %v3571_v36 = vpop.f32.mrb[79].mxu1 }
 0x2ca   :  { %v4483_v15 = vadd.f32 %v4482_v62, %v3571_v36 }
 0x2ce   :  { %v3575_v39 = vpop.f32.mrb[80].mxu1 }
 0x2cf   :  { %v4487_v3 = vadd.f32 %v4486_v23, %v3575_v39  ;;  %v3577_v20 = vpop.f32.mrb[81].mxu1 }
 0x2d0   :  { %v4491_v53 = vadd.f32 %v4490_v42, %v3577_v20  ;;  %v3579_v35 = vpop.f32.mrb[82].mxu1 }
 0x2d1   :  { %v4495_v7 = vadd.f32 %v4494_v21, %v3579_v35  ;;  %v3581_v34 = vpop.f32.mrb[83].mxu1 }
 0x2d2   :  { %v4499_v26 = vadd.f32 %v4498_v30, %v3581_v34 }
 0x2d6   :  { %v3585_v0 = vpop.f32.mrb[84].mxu1 }
 0x2d7   :  { %v4503_v24 = vadd.f32 %v4502_v46, %v3585_v0  ;;  %v3587_v38 = vpop.f32.mrb[85].mxu1 }
 0x2d8   :  { %v4507_v31 = vadd.f32 %v4506_v17, %v3587_v38  ;;  %v3589_v6 = vpop.f32.mrb[86].mxu1 }
 0x2d9   :  { %v4511_v19 = vadd.f32 %v4510_v11, %v3589_v6  ;;  %v3591_v29 = vpop.f32.mrb[87].mxu1 }
 0x2da   :  { %v4515_v18 = vadd.f32 %v4514_v55, %v3591_v29 }
 0x2fa   :  { %v3847_v50 = vpop.f32.mrb[72].mxu0 }
 0x2fb   :  { %v4456_v40 = vadd.f32 %v4455_v16, %v3847_v50  ;;  %v3849_v57 = vpop.f32.mrb[73].mxu0 }
 0x2fc   :  { %v4460_v61 = vadd.f32 %v4459_v51, %v3849_v57  ;;  %v3851_v47 = vpop.f32.mrb[74].mxu0 }
 0x2fd   :  { %v4464_v44 = vadd.f32 %v4463_v52, %v3851_v47  ;;  %v3853_v28 = vpop.f32.mrb[75].mxu0 }
 0x2fe   :  { %v4468_v37 = vadd.f32 %v4467_v14, %v3853_v28  ;;  %v3902_v2 = vadd.f32 %v4460_v61, %v4456_v40 }
 0x300   :  { %3903 = vadd.xlane.f32.xlu0 %v3902_v2  ;;  %v3905_v25 = vadd.f32 %v4468_v37, %v4464_v44 }
 0x302   :  { %v3857_v59 = vpop.f32.mrb[76].mxu0 }
 0x303   :  { %v4472_v12 = vadd.f32 %v4471_v32, %v3857_v59  ;;  %v3859_v54 = vpop.f32.mrb[77].mxu0 }
 0x304   :  { %v4476_v62 = vadd.f32 %v4475_v1, %v3859_v54  ;;  %v3861_v4 = vpop.f32.mrb[78].mxu0  ;;  %3906 = vadd.xlane.f32.xlu0 %v3905_v25 }
 0x305   :  { %v4480_v58 = vadd.f32 %v4479_v5, %v3861_v4  ;;  %v3863_v8 = vpop.f32.mrb[79].mxu0 }
 0x306   :  { %v4484_v36 = vadd.f32 %v4483_v15, %v3863_v8  ;;  %v3908_v48 = vadd.f32 %v4476_v62, %v4472_v12 }
 0x308   :  { %3909 = vadd.xlane.f32.xlu1 %v3908_v48  ;;  %v3911_v51 = vadd.f32 %v4484_v36, %v4480_v58 }
 0x30a   :  { %v3867_v16 = vpop.f32.mrb[80].mxu0 }
 0x30b   :  { %v4488_v22 = vadd.f32 %v4487_v3, %v3867_v16  ;;  %v3869_v52 = vpop.f32.mrb[81].mxu0 }
 0x30c   :  { %v4492_v13 = vadd.f32 %v4491_v53, %v3869_v52  ;;  %v3871_v14 = vpop.f32.mrb[82].mxu0  ;;  %3912 = vadd.xlane.f32.xlu1 %v3911_v51 }
 0x30d   :  { %v4496_v49 = vadd.f32 %v4495_v7, %v3871_v14  ;;  %v3873_v33 = vpop.f32.mrb[83].mxu0 }
 0x30e   :  { %v4500_v60 = vadd.f32 %v4499_v26, %v3873_v33  ;;  %v3914_v32 = vadd.f32 %v4492_v13, %v4488_v22 }
 0x310   :  { %3915 = vadd.xlane.f32.xlu0 %v3914_v32  ;;  %v3917_v1 = vadd.f32 %v4500_v60, %v4496_v49 }
 0x312   :  { %v3877_v23 = vpop.f32.mrb[84].mxu0  ;;  %3918 = vadd.xlane.f32.xlu1 %v3917_v1 }
 0x313   :  { %v4504_v5 = vadd.f32 %v4503_v24, %v3877_v23  ;;  %v3879_v39 = vpop.f32.mrb[85].mxu0 }
 0x314   :  { %v4508_v15 = vadd.f32 %v4507_v31, %v3879_v39  ;;  %v3881_v42 = vpop.f32.mrb[86].mxu0 }
 0x315   :  { %v4512_v20 = vadd.f32 %v4511_v19, %v3881_v42  ;;  %v3883_v21 = vpop.f32.mrb[87].mxu0 }
 0x316   :  { %v4516_v35 = vadd.f32 %v4515_v18, %v3883_v21  ;;  %v3920_v3 = vadd.f32 %v4508_v15, %v4504_v5 }
 0x318   :  { %3921 = vadd.xlane.f32.xlu0 %v3920_v3  ;;  %v3923_v53 = vadd.f32 %v4516_v35, %v4512_v20 }
 0x31a   :  { %3924 = vadd.xlane.f32.xlu1 %v3923_v53 }
 0x38d   :  { %v3904_v30 = vpop.xlane.xlu0 %3903 }
 0x38e   :  { %v3927_v56 = vmul.f32 0.00390625, %v3904_v30 }
 0x390   :  { %v7169_v7 = vsub.f32 %v4456_v40, %v3927_v56  ;;  %v7171_v34 = vsub.f32 %v4460_v61, %v3927_v56 }
 0x391   :  { %v3907_v45 = vpop.xlane.xlu0 %3906 }
 0x392   :  { %v3928_v26 = vmul.f32 0.00390625, %v3907_v45  ;;  %v3951_v9 = vmul.f32 %v7169_v7, %v7169_v7  ;;  %v3952_v10 = vmul.f32 %v7171_v34, %v7171_v34  ;;  %v4031_v45 = vld [vmem:[%s7316_s5] sm:$0x3]  ;;  %s5413_s5 = smov [#allocation7]  }
 0x394   :  { %v7177_v63 = vsub.f32 %v4464_v44, %v3928_v26  ;;  %v7179_v27 = vsub.f32 %v4468_v37, %v3928_v26  ;;  %v3967_v46 = vadd.f32 %v3952_v10, %v3951_v9  ;;  %v4059_v10 = vld [vmem:[%s7317_s6] sm:$0x3]  ;;  %s4108_s6 = sshll.u32 %s5413_s5, 4  ;;  %s4109_s6 = int_to_ptr.vmem [resolvable:$true] %s4108_s6 }
 0x395   :  { %v3910_v0 = vpop.xlane.xlu1 %3909  ;;  %s5378_s3 = scalar_lea.vmem %s4109_s6, 2048  ;;  %p5383_p3 = scmp.lt.s32.totalorder %s4109_s6, %s4109_s6 }
 0x396   :  { %v3929_v17 = vmul.f32 0.00390625, %v3910_v0  ;;  %3968 = vadd.xlane.f32.xlu0 %v3967_v46  ;;  %v3953_v24 = vmul.f32 %v7177_v63, %v7177_v63  ;;  %v3954_v38 = vmul.f32 %v7179_v27, %v7179_v27  ;;  %v7240_v0 = vrot.slane %v4031_v45, %v7561_v43  ;;  %p5379_p2 = scmp.ne.s32.totalorder %s4109_s6, %s5378_s3  ;;  %p5384_p4 = scmp.lt.s32.totalorder %s5378_s3, %s5378_s3 }
 0x398   :  { %v7185_v11 = vsub.f32 %v4472_v12, %v3929_v17  ;;  %v7187_v31 = vsub.f32 %v4476_v62, %v3929_v17  ;;  %v3970_v6 = vadd.f32 %v3954_v38, %v3953_v24  ;;  %v7243_v17 = vrot.slane %v4031_v45, %v7562_v41  ;;  %p5385_p5 = por %p5384_p4, %p5383_p3 }
 0x399   :  { %v3913_v55 = vpop.xlane.xlu1 %3912 }
 0x39a   :  { %v3930_v19 = vmul.f32 0.00390625, %v3913_v55  ;;  %3971 = vadd.xlane.f32.xlu1 %v3970_v6  ;;  %v3955_v29 = vmul.f32 %v7185_v11, %v7185_v11  ;;  %v3956_v18 = vmul.f32 %v7187_v31, %v7187_v31  ;;  %v7246_v6 = vrot.slane %v4059_v10, %v7561_v43  ;;  %p5386_p6 = pnand %p5385_p5, %p5379_p2 }
 0x39b   :  { %v7249_v55 = vrot.slane %v4059_v10, %v7562_v41 }
 0x39c   :  { %v7193_v50 = vsub.f32 %v4480_v58, %v3930_v19  ;;  %v7195_v40 = vsub.f32 %v4484_v36, %v3930_v19  ;;  %v3973_v57 = vadd.f32 %v3956_v18, %v3955_v29 }
 0x39d   :  { %v3916_v61 = vpop.xlane.xlu0 %3915 }
 0x39e   :  { %v3931_v47 = vmul.f32 0.00390625, %v3916_v61  ;;  %3974 = vadd.xlane.f32.xlu0 %v3973_v57  ;;  %v3957_v44 = vmul.f32 %v7193_v50, %v7193_v50  ;;  %v3958_v28 = vmul.f32 %v7195_v40, %v7195_v40 }
 0x39f   :  { %v3919_v37 = vpop.xlane.xlu1 %3918 }
 0x3a0   :  { %v7201_v2 = vsub.f32 %v4488_v22, %v3931_v47  ;;  %v7203_v59 = vsub.f32 %v4492_v13, %v3931_v47  ;;  %v3932_v25 = vmul.f32 0.00390625, %v3919_v37  ;;  %v3976_v12 = vadd.f32 %v3958_v28, %v3957_v44 }
 0x3a2   :  { %v7205_v54 = vsub.f32 %v4496_v49, %v3932_v25  ;;  %v7207_v62 = vsub.f32 %v4500_v60, %v3932_v25  ;;  %3977 = vadd.xlane.f32.xlu1 %v3976_v12  ;;  %v3959_v4 = vmul.f32 %v7201_v2, %v7201_v2  ;;  %v3960_v58 = vmul.f32 %v7203_v59, %v7203_v59 }
 0x3a4   :  { %v3979_v8 = vadd.f32 %v3960_v58, %v3959_v4  ;;  %v3961_v36 = vmul.f32 %v7205_v54, %v7205_v54  ;;  %v3962_v48 = vmul.f32 %v7207_v62, %v7207_v62 }
 0x3a5   :  { %v3922_v16 = vpop.xlane.xlu0 %3921 }
 0x3a6   :  { %v3933_v51 = vmul.f32 0.00390625, %v3922_v16  ;;  %3980 = vadd.xlane.f32.xlu0 %v3979_v8  ;;  %v3982_v22 = vadd.f32 %v3962_v48, %v3961_v36 }
 0x3a7   :  { %v3925_v52 = vpop.xlane.xlu1 %3924 }
 0x3a8   :  { %v7217_v13 = vsub.f32 %v4504_v5, %v3933_v51  ;;  %v7219_v14 = vsub.f32 %v4508_v15, %v3933_v51  ;;  %v3934_v49 = vmul.f32 0.00390625, %v3925_v52  ;;  %3983 = vadd.xlane.f32.xlu1 %v3982_v22 }
 0x3aa   :  { %v7221_v33 = vsub.f32 %v4512_v20, %v3934_v49  ;;  %v7223_v60 = vsub.f32 %v4516_v35, %v3934_v49  ;;  %v3963_v32 = vmul.f32 %v7217_v13, %v7217_v13  ;;  %v3964_v1 = vmul.f32 %v7219_v14, %v7219_v14 }
 0x3ac   :  { %v3985_v23 = vadd.f32 %v3964_v1, %v3963_v32  ;;  %v3965_v39 = vmul.f32 %v7221_v33, %v7221_v33  ;;  %v3966_v5 = vmul.f32 %v7223_v60, %v7223_v60 }
 0x3ae   :  { %3986 = vadd.xlane.f32.xlu0 %v3985_v23  ;;  %v3988_v15 = vadd.f32 %v3966_v5, %v3965_v39 }
 0x3b0   :  { %3989 = vadd.xlane.f32.xlu1 %v3988_v15 }
 0x423   :  { %v3969_v42 = vpop.xlane.xlu0 %3968 }
 0x424   :  { %v3991_v20 = vmul.f32 0.00390625, %v3969_v42 }
 0x426   :  { %v3999_v21 = vadd.f32 1e-05, %v3991_v20 }
 0x427   :  { %v3972_v35 = vpop.xlane.xlu1 %3971 }
 0x428   :  { %5317 = vrsqrt.f32 %v3999_v21  ;;  %v3992_v3 = vmul.f32 0.00390625, %v3972_v35 }
 0x42a   :  { %v4000_v53 = vadd.f32 1e-05, %v3992_v3 }
 0x42b   :  { %v3975_v30 = vpop.xlane.xlu0 %3974 }
 0x42c   :  { %5319 = vrsqrt.f32 %v4000_v53  ;;  %v3993_v56 = vmul.f32 0.00390625, %v3975_v30 }
 0x42e   :  { %v4001_v26 = vadd.f32 1e-05, %v3993_v56 }
 0x42f   :  { %v3978_v9 = vpop.xlane.xlu1 %3977 }
 0x430   :  { %5321 = vrsqrt.f32 %v4001_v26  ;;  %v3994_v46 = vmul.f32 0.00390625, %v3978_v9 }
 0x432   :  { %v5318_v24 = vpop.eup %5317  ;;  %v4002_v38 = vadd.f32 1e-05, %v3994_v46 }
 0x433   :  { %v4015_v19 = vmul.f32 %v5318_v24, %v7169_v7  ;;  %v4016_v29 = vmul.f32 %v5318_v24, %v7171_v34  ;;  %v3981_v18 = vpop.xlane.xlu0 %3980 }
 0x434   :  { %5323 = vrsqrt.f32 %v4002_v38  ;;  %v3995_v57 = vmul.f32 0.00390625, %v3981_v18 }
 0x435   :  { %v4043_v61 = vmul.f32 %v7240_v0, %v4015_v19  ;;  %v4044_v47 = vmul.f32 %v7243_v17, %v4016_v29  ;;  %v3984_v44 = vpop.xlane.xlu1 %3983 }
 0x436   :  { %v5320_v28 = vpop.eup %5319  ;;  %v4003_v37 = vadd.f32 1e-05, %v3995_v57  ;;  %v3996_v25 = vmul.f32 0.00390625, %v3984_v44 }
 0x437   :  { %v4071_v43 = vadd.f32 %v7246_v6, %v4043_v61  ;;  %v4072_v41 = vadd.f32 %v7249_v55, %v4044_v47  ;;  %v4017_v12 = vmul.f32 %v5320_v28, %v7177_v63  ;;  %v4018_v7 = vmul.f32 %v5320_v28, %v7179_v27 }
 0x438   :  { %5325 = vrsqrt.f32 %v4003_v37  ;;  %v4004_v34 = vadd.f32 1e-05, %v3996_v25 }
 0x439   :  { %4087 = vst [vmem:[#allocation7] sm:$0xff] %v4071_v43  ;;  %4088 = vst [vmem:[#allocation7 + $0x8] sm:$0xff] %v4072_v41  ;;  %v4045_v4 = vmul.f32 %v7240_v0, %v4017_v12  ;;  %v4046_v58 = vmul.f32 %v7243_v17, %v4018_v7 }
 0x43a   :  { %v5322_v8 = vpop.eup %5321  ;;  %5327 = vrsqrt.f32 %v4004_v34 }
 0x43b   :  { %v4073_v36 = vadd.f32 %v7246_v6, %v4045_v4  ;;  %v4074_v48 = vadd.f32 %v7249_v55, %v4046_v58  ;;  %v4019_v16 = vmul.f32 %v5322_v8, %v7185_v11  ;;  %v4020_v63 = vmul.f32 %v5322_v8, %v7187_v31  ;;  %v3987_v51 = vpop.xlane.xlu0 %3986 }
 0x43c   :  { %v3997_v27 = vmul.f32 0.00390625, %v3987_v51 }
 0x43d   :  { %4089 = vst [vmem:[#allocation7 + $0x10] sm:$0xff] %v4073_v36  ;;  %4090 = vst [vmem:[#allocation7 + $0x18] sm:$0xff] %v4074_v48  ;;  %v4047_v22 = vmul.f32 %v7240_v0, %v4019_v16  ;;  %v4048_v52 = vmul.f32 %v7243_v17, %v4020_v63  ;;  %v3990_v49 = vpop.xlane.xlu1 %3989 }
 0x43e   :  { %v5324_v32 = vpop.eup %5323  ;;  %v4005_v1 = vadd.f32 1e-05, %v3997_v27  ;;  %v3998_v23 = vmul.f32 0.00390625, %v3990_v49 }
 0x43f   :  { %v4075_v39 = vadd.f32 %v7246_v6, %v4047_v22  ;;  %v4076_v5 = vadd.f32 %v7249_v55, %v4048_v52  ;;  %v4021_v11 = vmul.f32 %v5324_v32, %v7193_v50  ;;  %v4022_v31 = vmul.f32 %v5324_v32, %v7195_v40 }
 0x440   :  { %5329 = vrsqrt.f32 %v4005_v1  ;;  %v4006_v15 = vadd.f32 1e-05, %v3998_v23 }
 0x441   :  { %4091 = vst [vmem:[#allocation7 + $0x20] sm:$0xff] %v4075_v39  ;;  %4092 = vst [vmem:[#allocation7 + $0x28] sm:$0xff] %v4076_v5  ;;  %v4049_v42 = vmul.f32 %v7240_v0, %v4021_v11  ;;  %v4050_v20 = vmul.f32 %v7243_v17, %v4022_v31 }
 0x442   :  { %v5326_v21 = vpop.eup %5325  ;;  %5331 = vrsqrt.f32 %v4006_v15 }
 0x443   :  { %v4077_v35 = vadd.f32 %v7246_v6, %v4049_v42  ;;  %v4078_v3 = vadd.f32 %v7249_v55, %v4050_v20  ;;  %v4023_v53 = vmul.f32 %v5326_v21, %v7201_v2  ;;  %v4024_v50 = vmul.f32 %v5326_v21, %v7203_v59 }
 0x444   :  { %v5328_v30 = vpop.eup %5327 }
 0x445   :  { %4093 = vst [vmem:[#allocation7 + $0x30] sm:$0xff] %v4077_v35  ;;  %4094 = vst [vmem:[#allocation7 + $0x38] sm:$0xff] %v4078_v3  ;;  %v4051_v40 = vmul.f32 %v7240_v0, %v4023_v53  ;;  %v4052_v56 = vmul.f32 %v7243_v17, %v4024_v50  ;;  %v4025_v45 = vmul.f32 %v5328_v30, %v7205_v54 }
 0x446   :  { %v4026_v26 = vmul.f32 %v5328_v30, %v7207_v62 }
 0x447   :  { %v4079_v9 = vadd.f32 %v7246_v6, %v4051_v40  ;;  %v4080_v10 = vadd.f32 %v7249_v55, %v4052_v56  ;;  %v4053_v46 = vmul.f32 %v7240_v0, %v4025_v45 }
 0x448   :  { %v4054_v2 = vmul.f32 %v7243_v17, %v4026_v26 }
 0x449   :  { %4095 = vst [vmem:[#allocation7 + $0x40] sm:$0xff] %v4079_v9  ;;  %4096 = vst [vmem:[#allocation7 + $0x48] sm:$0xff] %v4080_v10  ;;  %v4081_v59 = vadd.f32 %v7246_v6, %v4053_v46 }
 0x44a   :  { %v4082_v24 = vadd.f32 %v7249_v55, %v4054_v2  ;;  %v5330_v38 = vpop.eup %5329 }
 0x44b   :  { %4097 = vst [vmem:[#allocation7 + $0x50] sm:$0xff] %v4081_v59  ;;  %v4027_v54 = vmul.f32 %v5330_v38, %v7217_v13  ;;  %v4028_v62 = vmul.f32 %v5330_v38, %v7219_v14 }
 0x44c   :  { %4098 = vst [vmem:[#allocation7 + $0x58] sm:$0xff] %v4082_v24  ;;  %v5332_v19 = vpop.eup %5331 }
 0x44d   :  { %v4055_v29 = vmul.f32 %v7240_v0, %v4027_v54  ;;  %v4056_v18 = vmul.f32 %v7243_v17, %v4028_v62  ;;  %v4029_v57 = vmul.f32 %v5332_v19, %v7221_v33  ;;  %v4030_v61 = vmul.f32 %v5332_v19, %v7223_v60 }
 0x44f   :  { %v4083_v47 = vadd.f32 %v7246_v6, %v4055_v29  ;;  %v4084_v44 = vadd.f32 %v7249_v55, %v4056_v18  ;;  %v4057_v28 = vmul.f32 %v7240_v0, %v4029_v57  ;;  %v4058_v13 = vmul.f32 %v7243_v17, %v4030_v61 }
 0x451   :  { %4099 = vst [vmem:[#allocation7 + $0x60] sm:$0xff] %v4083_v47  ;;  %4100 = vst [vmem:[#allocation7 + $0x68] sm:$0xff] %v4084_v44  ;;  %v4085_v14 = vadd.f32 %v7246_v6, %v4057_v28  ;;  %v4086_v37 = vadd.f32 %v7249_v55, %v4058_v13 }
 0x453   :  { %4101 = vst [vmem:[#allocation7 + $0x70] sm:$0xff] %v4085_v14  ;;  %4102 = vst [vmem:[#allocation7 + $0x78] sm:$0xff] %v4086_v37 }
 0x454   :  { %5389 = shalt.err (!%p5386_p6)
}
 0x455   :  { %s5390_s9 = scalar_lea.hbm %s7318_s7, 2048 }
 0x456   :  { %p5391_p7 = scmp.ne.s32.totalorder %s7318_s7, %s5390_s9  ;;  %p5394_p8 = scmp.lt.u32.totalorder %s5390_s9, %s7318_s7 }
 0x458   :  { %p5396_p9 = pnand %p5394_p8, %p5391_p7 }
 0x45a   :  { %5399 = shalt.err (!%p5396_p9)
}
 0x45b   :  { %s5414_s14 = smov 256   ;;  %s5415_s15 = smov 16  }
 0x45c   :  { %4114 = dma.vmem_to_hbm [thread:$0]  %s4109_s6, 2048, %s7318_s7, [#allocation4], %s5414_s14, %s5414_s14, %s5415_s15  }
 0x45d   :  { %5404 = dma.done.wait [#allocation4], 2048  }
 0x45e   :  { %5405 = vsyncadd [#allocation4], 4294965248 }
 0x45f   :  { %4118 = vsyncpa [#allocation3], 1 }
 0x460   :  { %4119 = vsyncpa [#allocation6], 1 }
 0x461   :  { %4120 = vsyncpa [#allocation4], 1 }

</bundles_post_ra>
